<compile_context>
chip_gen: v5e
topology: v5e:2x2
jax: 0.10.0
libtpu: 0.0.40
codegen_flags: <defaults>
</compile_context>

<pallas_src>
import math

import jax
import jax.numpy as jnp
import numpy as np
from jax.experimental import pallas as pl
from jax.experimental.pallas import tpu as pltpu

# ---------------- configuration (small shapes consistent with the module) ----
IMAGE_SIZE = 16
PATCH_SIZE = 4
CHANNELS = 3
NUM_CLASSES = 10
DIM = 32
DEPTH = 2
HEADS = 4
MLP_DIM = 64
BATCH = 2

NUM_PATCHES = (IMAGE_SIZE // PATCH_SIZE) ** 2          # 16
PATCH_DIM = CHANNELS * PATCH_SIZE ** 2                 # 48
SEQ = NUM_PATCHES + 1                                  # 17 (cls token + patches)
SEQ_PAD = 24                                           # padded seq (multiple of 8)
HEAD_DIM = DIM // HEADS                                # 8
SCALE = DIM ** (-0.5)   # NOTE: reference code scales by dim**-0.5 (not head_dim)
LN_EPS = 1e-5           # torch.nn.LayerNorm default eps
OUT_PAD = 128           # lane-dense logits slab (sliced to NUM_CLASSES outside)
NEG_INF = -1e30


def _gelu(x):
    # TODO(synk): torch nn.GELU defaults to the exact erf formulation; the tanh
    # approximation is used here since erf has no guaranteed Mosaic lowering.
    c = math.sqrt(2.0 / math.pi)
    return 0.5 * x * (1.0 + jnp.tanh(c * (x + 0.044715 * x * x * x)))


def _layernorm(x, g, b):
    mu = jnp.mean(x, axis=-1, keepdims=True)
    var = jnp.mean((x - mu) ** 2, axis=-1, keepdims=True)  # biased var (torch LN)
    return (x - mu) * jax.lax.rsqrt(var + LN_EPS) * g + b


# --------------------------------- kernel ------------------------------------
def vit_kernel(x_ref, base_ref, pe_w_ref, sel_ref,
               ln1g_ref, ln1b_ref, wq_ref, wk_ref, wv_ref, wo_ref, bo_ref,
               ln2g_ref, ln2b_ref, w1_ref, b1_ref, w2_ref, b2_ref,
               hw1_ref, hb1_ref, hw2_ref, hb2_ref,
               out_ref):
    B = x_ref.shape[0]
    N = B * SEQ_PAD

    # patch_to_embedding on all (batch * padded-seq) rows in one dense matmul.
    # Row 0 of every padded sequence is zeros (cls slot); rows >= SEQ are pad.
    xp = x_ref[...].reshape(N, PATCH_DIM)
    x = jnp.dot(xp, pe_w_ref[...], preferred_element_type=jnp.float32)
    # "base" (prepared in the wrapper) carries: cls+pos for row 0,
    # pos + linear bias for patch rows, zeros for pad rows.
    base = jnp.broadcast_to(base_ref[...][None], (B, SEQ_PAD, DIM)).reshape(N, DIM)
    x = x + base

    # additive key mask for padded sequence positions (key index >= SEQ).
    key_pos = jax.lax.broadcasted_iota(jnp.int32, (1, 1, SEQ_PAD), 2)
    neg_bias = jnp.where(key_pos < SEQ, 0.0, NEG_INF).astype(jnp.float32)

    for l in range(DEPTH):
        # ---- Residual(PreNorm(Attention)) ----
        h = _layernorm(x, ln1g_ref[l], ln1b_ref[l])
        hb = jnp.broadcast_to(h[None], (HEADS, N, DIM))
        q = jnp.einsum('hnd,hde->hne', hb, wq_ref[l],
                       preferred_element_type=jnp.float32)
        k = jnp.einsum('hnd,hde->hne', hb, wk_ref[l],
                       preferred_element_type=jnp.float32)
        v = jnp.einsum('hnd,hde->hne', hb, wv_ref[l],
                       preferred_element_type=jnp.float32)
        # (HEADS, B*SEQ_PAD, HEAD_DIM) -> (HEADS*B, SEQ_PAD, HEAD_DIM)
        # (tile-aligned leading-dim split: SEQ_PAD is a multiple of 8)
        q = q.reshape(HEADS * B, SEQ_PAD, HEAD_DIM)
        k = k.reshape(HEADS * B, SEQ_PAD, HEAD_DIM)
        v = v.reshape(HEADS * B, SEQ_PAD, HEAD_DIM)

        dots = jnp.einsum('bid,bjd->bij', q, k,
                          preferred_element_type=jnp.float32) * SCALE
        dots = dots + neg_bias                       # mask padded keys
        dots = dots - jnp.max(dots, axis=-1, keepdims=True)
        e = jnp.exp(dots)
        attn = e * pl.reciprocal(jnp.sum(e, axis=-1, keepdims=True), approx=True)
        o = jnp.einsum('bij,bjd->bid', attn, v,
                       preferred_element_type=jnp.float32)

        # un-batch heads: (HEADS*B, SEQ_PAD, d) -> (HEADS, B*SEQ_PAD, d),
        # apply per-head output projection, sum over heads == concat @ Wo.
        o = o.reshape(HEADS, N, HEAD_DIM)
        o = jnp.einsum('hnd,hde->hne', o, wo_ref[l],
                       preferred_element_type=jnp.float32)
        o = jnp.sum(o, axis=0) + bo_ref[l]
        x = x + o

        # ---- Residual(PreNorm(FeedForward)) ----
        h = _layernorm(x, ln2g_ref[l], ln2b_ref[l])
        h = _gelu(jnp.dot(h, w1_ref[l], preferred_element_type=jnp.float32) + b1_ref[l])
        h = jnp.dot(h, w2_ref[l], preferred_element_type=jnp.float32) + b2_ref[l]
        x = x + h

    # mlp_head on the cls token: gather cls rows (row b*SEQ_PAD) via a tiny
    # selection-matrix matmul, then two dense matmuls into a lane-dense slab.
    cls = jnp.dot(sel_ref[...], x, preferred_element_type=jnp.float32)   # (B, DIM)
    hh = _gelu(jnp.dot(cls, hw1_ref[...], preferred_element_type=jnp.float32)
               + hb1_ref[...])
    logits = jnp.dot(hh, hw2_ref[...], preferred_element_type=jnp.float32) + hb2_ref[...]
    out_ref[...] = logits                                                # (B, OUT_PAD)


# --------------------------------- wrapper -----------------------------------
@jax.jit
def vit_forward(x_patches, params):
    B = x_patches.shape[0]

    # ---- layout prep (pure glue / parameter packing, done once per call) ----
    # padded patch tensor: row 0 = cls slot (zeros), rows 1..NUM_PATCHES = patches,
    # rows SEQ..SEQ_PAD-1 = pad (zeros).
    x_pad = jnp.pad(x_patches, ((0, 0), (1, SEQ_PAD - SEQ), (0, 0)))

    pos = params['pos'][0]                                 # (SEQ, DIM)
    base = jnp.zeros((SEQ_PAD, DIM), jnp.float32)
    base = base.at[1:SEQ].set(pos[1:] + params['pe_b'])    # patch rows: pos + bias
    base = base.at[0].set(params['cls'][0, 0] + pos[0])    # cls row: cls + pos (no bias)

    # per-head weight layouts so attention runs as head-batched 3-D matmuls.
    wqkv = params['wqkv'].reshape(DEPTH, DIM, 3, HEADS, HEAD_DIM)
    wq = wqkv[:, :, 0].transpose(0, 2, 1, 3)               # (DEPTH, HEADS, DIM, HEAD_DIM)
    wk = wqkv[:, :, 1].transpose(0, 2, 1, 3)
    wv = wqkv[:, :, 2].transpose(0, 2, 1, 3)
    wo = params['wo'].reshape(DEPTH, HEADS, HEAD_DIM, DIM)  # rows of Wo are (h d)-ordered

    # lane-dense classifier head (pad N from NUM_CLASSES to OUT_PAD).
    hw2p = jnp.pad(params['hw2'], ((0, 0), (0, OUT_PAD - NUM_CLASSES)))
    hb2p = jnp.pad(params['hb2'], ((0, 0), (0, OUT_PAD - NUM_CLASSES)))

    # selection matrix gathering the cls row of each padded sequence.
    sel = jnp.zeros((B, B * SEQ_PAD), jnp.float32)
    sel = sel.at[jnp.arange(B), jnp.arange(B) * SEQ_PAD].set(1.0)

    weights = [base, params['pe_w'], sel,
               params['ln1g'], params['ln1b'], wq, wk, wv, wo, params['bo'],
               params['ln2g'], params['ln2b'], params['w1'], params['b1'],
               params['w2'], params['b2'],
               params['hw1'], params['hb1'], hw2p, hb2p]

    vmem = pl.BlockSpec(memory_space=pltpu.MemorySpace.VMEM)
    out = pl.pallas_call(
        vit_kernel,
        out_shape=jax.ShapeDtypeStruct((B, OUT_PAD), jnp.float32),
        in_specs=[vmem] * (1 + len(weights)),
        out_specs=vmem,
    )(x_pad, *weights)
    return out[:, :NUM_CLASSES]


# ------------------------------ pure-JAX reference ---------------------------
def vit_reference(x_patches, p):
    hp = jax.lax.Precision.HIGHEST
    B = x_patches.shape[0]
    x = jnp.einsum('bnp,pd->bnd', x_patches, p['pe_w'], precision=hp) + p['pe_b']
    cls = jnp.broadcast_to(p['cls'], (B, 1, DIM))
    x = jnp.concatenate([cls, x], axis=1) + p['pos']
    for l in range(DEPTH):
        h = _layernorm(x, p['ln1g'][l], p['ln1b'][l])
        qkv = jnp.einsum('bnd,de->bne', h, p['wqkv'][l], precision=hp)
        qkv = qkv.reshape(B, SEQ, 3, HEADS, HEAD_DIM)
        q = qkv[:, :, 0].transpose(0, 2, 1, 3)
        k = qkv[:, :, 1].transpose(0, 2, 1, 3)
        v = qkv[:, :, 2].transpose(0, 2, 1, 3)
        dots = jnp.einsum('bhid,bhjd->bhij', q, k, precision=hp) * SCALE
        attn = jax.nn.softmax(dots, axis=-1)
        o = jnp.einsum('bhij,bhjd->bhid', attn, v, precision=hp)
        o = o.transpose(0, 2, 1, 3).reshape(B, SEQ, DIM)
        o = jnp.einsum('bnd,de->bne', o, p['wo'][l], precision=hp) + p['bo'][l]
        x = x + o
        h = _layernorm(x, p['ln2g'][l], p['ln2b'][l])
        h = _gelu(jnp.einsum('bnd,de->bne', h, p['w1'][l], precision=hp) + p['b1'][l])
        h = jnp.einsum('bne,ed->bnd', h, p['w2'][l], precision=hp) + p['b2'][l]
        x = x + h
    c = x[:, 0]
    h = _gelu(jnp.dot(c, p['hw1'], precision=hp) + p['hb1'])
    return jnp.dot(h, p['hw2'], precision=hp) + p['hb2']


# --------------------------------- params ------------------------------------
def init_params(key):
    k = jax.random.split(key, 16)
    s = 0.02
    params = {
        'pe_w': jax.random.normal(k[0], (PATCH_DIM, DIM)) * s,
        'pe_b': jnp.zeros((1, DIM)),
        'cls':  jax.random.normal(k[1], (1, 1, DIM)),
        'pos':  jax.random.normal(k[2], (1, SEQ, DIM)),
        'ln1g': jnp.ones((DEPTH, 1, DIM)),
        'ln1b': jnp.zeros((DEPTH, 1, DIM)),
        'wqkv': jax.random.normal(k[3], (DEPTH, DIM, 3 * DIM)) * s,
        'wo':   jax.random.normal(k[4], (DEPTH, DIM, DIM)) * s,
        'bo':   jax.random.normal(k[5], (DEPTH, 1, DIM)) * s,
        'ln2g': jnp.ones((DEPTH, 1, DIM)),
        'ln2b': jnp.zeros((DEPTH, 1, DIM)),
        'w1':   jax.random.normal(k[6], (DEPTH, DIM, MLP_DIM)) * s,
        'b1':   jax.random.normal(k[7], (DEPTH, 1, MLP_DIM)) * s,
        'w2':   jax.random.normal(k[8], (DEPTH, MLP_DIM, DIM)) * s,
        'b2':   jax.random.normal(k[9], (DEPTH, 1, DIM)) * s,
        'hw1':  jax.random.normal(k[10], (DIM, MLP_DIM)) * s,
        'hb1':  jax.random.normal(k[11], (1, MLP_DIM)) * s,
        'hw2':  jax.random.normal(k[12], (MLP_DIM, NUM_CLASSES)) * s,
        'hb2':  jax.random.normal(k[13], (1, NUM_CLASSES)) * s,
    }
    return {n: v.astype(jnp.float32) for n, v in params.items()}


# ----------------------------------- main ------------------------------------
if __name__ == "__main__":
    key = jax.random.PRNGKey(0)
    pkey, xkey = jax.random.split(key)
    params = init_params(pkey)

    # NCHW input, as in PyTorch
    img = jax.random.normal(xkey, (BATCH, CHANNELS, IMAGE_SIZE, IMAGE_SIZE), jnp.float32)

    # patch rearrange (glue): 'b c (h p1) (w p2) -> b (h w) (p1 p2 c)'
    p = PATCH_SIZE
    xp = img.reshape(BATCH, CHANNELS, IMAGE_SIZE // p, p, IMAGE_SIZE // p, p)
    xp = xp.transpose(0, 2, 4, 3, 5, 1)                         # (b, h, w, p1, p2, c)
    xp = xp.reshape(BATCH, NUM_PATCHES, PATCH_DIM)

    out = vit_forward(xp, params)
    out = jax.block_until_ready(out)
    assert out.shape == (BATCH, NUM_CLASSES)

    ref = vit_reference(xp, params)
    np.testing.assert_allclose(np.asarray(out), np.asarray(ref), rtol=2e-2, atol=2e-2)

    print("KERNEL_OK")
</pallas_src>

<mosaic_0001>
module attributes {stable_mosaic.version = 11 : i64} {
  func.func @vit_kernel(%arg0: memref<2x24x48xf32, #tpu.memory_space<vmem>>, %arg1: memref<24x32xf32, #tpu.memory_space<vmem>>, %arg2: memref<48x32xf32, #tpu.memory_space<vmem>>, %arg3: memref<2x48xf32, #tpu.memory_space<vmem>>, %arg4: memref<2x1x32xf32, #tpu.memory_space<vmem>>, %arg5: memref<2x1x32xf32, #tpu.memory_space<vmem>>, %arg6: memref<2x4x32x8xf32, #tpu.memory_space<vmem>>, %arg7: memref<2x4x32x8xf32, #tpu.memory_space<vmem>>, %arg8: memref<2x4x32x8xf32, #tpu.memory_space<vmem>>, %arg9: memref<2x4x8x32xf32, #tpu.memory_space<vmem>>, %arg10: memref<2x1x32xf32, #tpu.memory_space<vmem>>, %arg11: memref<2x1x32xf32, #tpu.memory_space<vmem>>, %arg12: memref<2x1x32xf32, #tpu.memory_space<vmem>>, %arg13: memref<2x32x64xf32, #tpu.memory_space<vmem>>, %arg14: memref<2x1x64xf32, #tpu.memory_space<vmem>>, %arg15: memref<2x64x32xf32, #tpu.memory_space<vmem>>, %arg16: memref<2x1x32xf32, #tpu.memory_space<vmem>>, %arg17: memref<32x64xf32, #tpu.memory_space<vmem>>, %arg18: memref<1x64xf32, #tpu.memory_space<vmem>>, %arg19: memref<64x128xf32, #tpu.memory_space<vmem>>, %arg20: memref<1x128xf32, #tpu.memory_space<vmem>>, %arg21: memref<2x128xf32, #tpu.memory_space<vmem>>) attributes {dimension_semantics = [], scalar_prefetch = 0 : i64, scratch_operands = 0 : i64, tpu.core_type = #tpu.core_type<tc>} {
    %c0 = arith.constant 0 : index
    %c0_0 = arith.constant 0 : index
    %c0_1 = arith.constant 0 : index
    %0 = vector.load %arg0[%c0, %c0_0, %c0_1] : memref<2x24x48xf32, #tpu.memory_space<vmem>>, vector<2x24x48xf32>
    %1 = vector.shape_cast %0 : vector<2x24x48xf32> to vector<48x48xf32>
    %c0_2 = arith.constant 0 : index
    %c0_3 = arith.constant 0 : index
    %2 = vector.load %arg2[%c0_2, %c0_3] : memref<48x32xf32, #tpu.memory_space<vmem>>, vector<48x32xf32>
    %cst = arith.constant dense<0.000000e+00> : vector<48x32xf32>
    %3 = tpu.matmul %1, %2, %cst {dimension_numbers = #tpu.dot_dimension_numbers<[1], [0], [0], [1], [0, 0, 1, 1], [], []>} : vector<48x48xf32>, vector<48x32xf32>, vector<48x32xf32> -> vector<48x32xf32>
    %c0_4 = arith.constant 0 : index
    %c0_5 = arith.constant 0 : index
    %4 = vector.load %arg1[%c0_4, %c0_5] : memref<24x32xf32, #tpu.memory_space<vmem>>, vector<24x32xf32>
    %5 = vector.shape_cast %4 : vector<24x32xf32> to vector<1x24x32xf32>
    %6 = vector.shape_cast %5 : vector<1x24x32xf32> to vector<1x24x32xf32>
    %7 = vector.broadcast %6 : vector<1x24x32xf32> to vector<2x24x32xf32>
    %8 = vector.shape_cast %7 : vector<2x24x32xf32> to vector<48x32xf32>
    %9 = arith.addf %3, %8 : vector<48x32xf32>
    %10 = tpu.iota {dimensions = array<i32: 2>} : vector<1x1x24xi32>
    %c17_i32 = arith.constant 17 : i32
    %11 = vector.broadcast %c17_i32 : i32 to vector<1x1x24xi32>
    %12 = arith.cmpi slt, %10, %11 : vector<1x1x24xi32>
    %cst_6 = arith.constant 0.000000e+00 : f32
    %cst_7 = arith.constant -1.000000e+30 : f32
    %13 = vector.broadcast %cst_6 : f32 to vector<1x1x24xf32>
    %14 = vector.broadcast %cst_7 : f32 to vector<1x1x24xf32>
    %15 = arith.select %12, %13, %14 : vector<1x1x24xi1>, vector<1x1x24xf32>
    %c0_8 = arith.constant 0 : index
    %c0_9 = arith.constant 0 : index
    %c0_10 = arith.constant 0 : index
    %16 = vector.load %arg4[%c0_8, %c0_9, %c0_10] : memref<2x1x32xf32, #tpu.memory_space<vmem>>, vector<1x1x32xf32>
    %17 = vector.shape_cast %16 : vector<1x1x32xf32> to vector<1x32xf32>
    %c0_11 = arith.constant 0 : index
    %c0_12 = arith.constant 0 : index
    %c0_13 = arith.constant 0 : index
    %18 = vector.load %arg5[%c0_11, %c0_12, %c0_13] : memref<2x1x32xf32, #tpu.memory_space<vmem>>, vector<1x1x32xf32>
    %19 = vector.shape_cast %18 : vector<1x1x32xf32> to vector<1x32xf32>
    %cst_14 = arith.constant dense<0.000000e+00> : vector<48xf32>
    %20 = vector.multi_reduction <add>, %9, %cst_14 [1] : vector<48x32xf32> to vector<48xf32>
    %21 = vector.shape_cast %20 : vector<48xf32> to vector<48x1xf32>
    %cst_15 = arith.constant 3.200000e+01 : f32
    %22 = vector.broadcast %cst_15 : f32 to vector<48x1xf32>
    %23 = arith.divf %21, %22 : vector<48x1xf32>
    %24 = vector.broadcast %23 : vector<48x1xf32> to vector<48x32xf32>
    %25 = arith.subf %9, %24 : vector<48x32xf32>
    %26 = arith.mulf %25, %25 : vector<48x32xf32>
    %cst_16 = arith.constant dense<0.000000e+00> : vector<48xf32>
    %27 = vector.multi_reduction <add>, %26, %cst_16 [1] : vector<48x32xf32> to vector<48xf32>
    %28 = vector.shape_cast %27 : vector<48xf32> to vector<48x1xf32>
    %cst_17 = arith.constant 3.200000e+01 : f32
    %29 = vector.broadcast %cst_17 : f32 to vector<48x1xf32>
    %30 = arith.divf %28, %29 : vector<48x1xf32>
    %31 = vector.broadcast %23 : vector<48x1xf32> to vector<48x32xf32>
    %32 = arith.subf %9, %31 : vector<48x32xf32>
    %cst_18 = arith.constant 9.99999974E-6 : f32
    %33 = vector.broadcast %cst_18 : f32 to vector<48x1xf32>
    %34 = arith.addf %30, %33 : vector<48x1xf32>
    %35 = math.rsqrt %34 : vector<48x1xf32>
    %36 = vector.broadcast %35 : vector<48x1xf32> to vector<48x32xf32>
    %37 = arith.mulf %32, %36 : vector<48x32xf32>
    %38 = vector.broadcast %17 : vector<1x32xf32> to vector<48x32xf32>
    %39 = arith.mulf %37, %38 : vector<48x32xf32>
    %40 = vector.broadcast %19 : vector<1x32xf32> to vector<48x32xf32>
    %41 = arith.addf %39, %40 : vector<48x32xf32>
    %42 = vector.shape_cast %41 : vector<48x32xf32> to vector<1x48x32xf32>
    %43 = vector.shape_cast %42 : vector<1x48x32xf32> to vector<1x48x32xf32>
    %44 = vector.broadcast %43 : vector<1x48x32xf32> to vector<4x48x32xf32>
    %c0_19 = arith.constant 0 : index
    %c0_20 = arith.constant 0 : index
    %c0_21 = arith.constant 0 : index
    %c0_22 = arith.constant 0 : index
    %45 = vector.load %arg6[%c0_19, %c0_20, %c0_21, %c0_22] : memref<2x4x32x8xf32, #tpu.memory_space<vmem>>, vector<1x4x32x8xf32>
    %46 = vector.shape_cast %45 : vector<1x4x32x8xf32> to vector<4x32x8xf32>
    "tpu.trace_start"() <{level = 10 : i32, message = "hnd,hde->hne"}> : () -> ()
    %cst_23 = arith.constant dense<0.000000e+00> : vector<4x48x8xf32>
    %47 = tpu.matmul %44, %46, %cst_23 {dimension_numbers = #tpu.dot_dimension_numbers<[2], [1], [1], [2], [0, 0, 0, 1, 1, 2], [0], [0]>} : vector<4x48x32xf32>, vector<4x32x8xf32>, vector<4x48x8xf32> -> vector<4x48x8xf32>
    "tpu.trace_stop"() : () -> ()
    %c0_24 = arith.constant 0 : index
    %c0_25 = arith.constant 0 : index
    %c0_26 = arith.constant 0 : index
    %c0_27 = arith.constant 0 : index
    %48 = vector.load %arg7[%c0_24, %c0_25, %c0_26, %c0_27] : memref<2x4x32x8xf32, #tpu.memory_space<vmem>>, vector<1x4x32x8xf32>
    %49 = vector.shape_cast %48 : vector<1x4x32x8xf32> to vector<4x32x8xf32>
    "tpu.trace_start"() <{level = 10 : i32, message = "hnd,hde->hne"}> : () -> ()
    %cst_28 = arith.constant dense<0.000000e+00> : vector<4x48x8xf32>
    %50 = tpu.matmul %44, %49, %cst_28 {dimension_numbers = #tpu.dot_dimension_numbers<[2], [1], [1], [2], [0, 0, 0, 1, 1, 2], [0], [0]>} : vector<4x48x32xf32>, vector<4x32x8xf32>, vector<4x48x8xf32> -> vector<4x48x8xf32>
    "tpu.trace_stop"() : () -> ()
    %c0_29 = arith.constant 0 : index
    %c0_30 = arith.constant 0 : index
    %c0_31 = arith.constant 0 : index
    %c0_32 = arith.constant 0 : index
    %51 = vector.load %arg8[%c0_29, %c0_30, %c0_31, %c0_32] : memref<2x4x32x8xf32, #tpu.memory_space<vmem>>, vector<1x4x32x8xf32>
    %52 = vector.shape_cast %51 : vector<1x4x32x8xf32> to vector<4x32x8xf32>
    "tpu.trace_start"() <{level = 10 : i32, message = "hnd,hde->hne"}> : () -> ()
    %cst_33 = arith.constant dense<0.000000e+00> : vector<4x48x8xf32>
    %53 = tpu.matmul %44, %52, %cst_33 {dimension_numbers = #tpu.dot_dimension_numbers<[2], [1], [1], [2], [0, 0, 0, 1, 1, 2], [0], [0]>} : vector<4x48x32xf32>, vector<4x32x8xf32>, vector<4x48x8xf32> -> vector<4x48x8xf32>
    "tpu.trace_stop"() : () -> ()
    %54 = vector.shape_cast %47 : vector<4x48x8xf32> to vector<8x24x8xf32>
    %55 = vector.shape_cast %50 : vector<4x48x8xf32> to vector<8x24x8xf32>
    %56 = vector.shape_cast %53 : vector<4x48x8xf32> to vector<8x24x8xf32>
    "tpu.trace_start"() <{level = 10 : i32, message = "bid,bjd->bij"}> : () -> ()
    %cst_34 = arith.constant dense<0.000000e+00> : vector<8x24x24xf32>
    %57 = tpu.matmul %54, %55, %cst_34 {dimension_numbers = #tpu.dot_dimension_numbers<[2], [2], [1], [1], [0, 0, 0, 1, 1, 1], [0], [0]>} : vector<8x24x8xf32>, vector<8x24x8xf32>, vector<8x24x24xf32> -> vector<8x24x24xf32>
    "tpu.trace_stop"() : () -> ()
    %cst_35 = arith.constant 0.176776692 : f32
    %58 = vector.broadcast %cst_35 : f32 to vector<8x24x24xf32>
    %59 = arith.mulf %57, %58 : vector<8x24x24xf32>
    %60 = vector.broadcast %15 : vector<1x1x24xf32> to vector<8x24x24xf32>
    %61 = arith.addf %59, %60 : vector<8x24x24xf32>
    %cst_36 = arith.constant dense<0xFF800000> : vector<8x24xf32>
    %62 = vector.multi_reduction <maximumf>, %61, %cst_36 [2] : vector<8x24x24xf32> to vector<8x24xf32>
    %63 = vector.shape_cast %62 : vector<8x24xf32> to vector<8x24x1xf32>
    %64 = vector.broadcast %63 : vector<8x24x1xf32> to vector<8x24x24xf32>
    %65 = arith.subf %61, %64 : vector<8x24x24xf32>
    %66 = math.exp %65 : vector<8x24x24xf32>
    %cst_37 = arith.constant dense<0.000000e+00> : vector<8x24xf32>
    %67 = vector.multi_reduction <add>, %66, %cst_37 [2] : vector<8x24x24xf32> to vector<8x24xf32>
    %68 = vector.shape_cast %67 : vector<8x24xf32> to vector<8x24x1xf32>
    %69 = tpu.reciprocal %68 {approx = true} : vector<8x24x1xf32> -> vector<8x24x1xf32>
    %70 = vector.broadcast %69 : vector<8x24x1xf32> to vector<8x24x24xf32>
    %71 = arith.mulf %66, %70 : vector<8x24x24xf32>
    "tpu.trace_start"() <{level = 10 : i32, message = "bij,bjd->bid"}> : () -> ()
    %cst_38 = arith.constant dense<0.000000e+00> : vector<8x24x8xf32>
    %72 = tpu.matmul %71, %56, %cst_38 {dimension_numbers = #tpu.dot_dimension_numbers<[2], [1], [1], [2], [0, 0, 0, 1, 1, 2], [0], [0]>} : vector<8x24x24xf32>, vector<8x24x8xf32>, vector<8x24x8xf32> -> vector<8x24x8xf32>
    "tpu.trace_stop"() : () -> ()
    %73 = vector.shape_cast %72 : vector<8x24x8xf32> to vector<4x48x8xf32>
    %c0_39 = arith.constant 0 : index
    %c0_40 = arith.constant 0 : index
    %c0_41 = arith.constant 0 : index
    %c0_42 = arith.constant 0 : index
    %74 = vector.load %arg9[%c0_39, %c0_40, %c0_41, %c0_42] : memref<2x4x8x32xf32, #tpu.memory_space<vmem>>, vector<1x4x8x32xf32>
    %75 = vector.shape_cast %74 : vector<1x4x8x32xf32> to vector<4x8x32xf32>
    "tpu.trace_start"() <{level = 10 : i32, message = "hnd,hde->hne"}> : () -> ()
    %cst_43 = arith.constant dense<0.000000e+00> : vector<4x48x32xf32>
    %76 = tpu.matmul %73, %75, %cst_43 {dimension_numbers = #tpu.dot_dimension_numbers<[2], [1], [1], [2], [0, 0, 0, 1, 1, 2], [0], [0]>} : vector<4x48x8xf32>, vector<4x8x32xf32>, vector<4x48x32xf32> -> vector<4x48x32xf32>
    "tpu.trace_stop"() : () -> ()
    %cst_44 = arith.constant dense<0.000000e+00> : vector<48x32xf32>
    %77 = vector.multi_reduction <add>, %76, %cst_44 [0] : vector<4x48x32xf32> to vector<48x32xf32>
    %c0_45 = arith.constant 0 : index
    %c0_46 = arith.constant 0 : index
    %c0_47 = arith.constant 0 : index
    %78 = vector.load %arg10[%c0_45, %c0_46, %c0_47] : memref<2x1x32xf32, #tpu.memory_space<vmem>>, vector<1x1x32xf32>
    %79 = vector.shape_cast %78 : vector<1x1x32xf32> to vector<1x32xf32>
    %80 = vector.broadcast %79 : vector<1x32xf32> to vector<48x32xf32>
    %81 = arith.addf %77, %80 : vector<48x32xf32>
    %82 = arith.addf %9, %81 : vector<48x32xf32>
    %c0_48 = arith.constant 0 : index
    %c0_49 = arith.constant 0 : index
    %c0_50 = arith.constant 0 : index
    %83 = vector.load %arg11[%c0_48, %c0_49, %c0_50] : memref<2x1x32xf32, #tpu.memory_space<vmem>>, vector<1x1x32xf32>
    %84 = vector.shape_cast %83 : vector<1x1x32xf32> to vector<1x32xf32>
    %c0_51 = arith.constant 0 : index
    %c0_52 = arith.constant 0 : index
    %c0_53 = arith.constant 0 : index
    %85 = vector.load %arg12[%c0_51, %c0_52, %c0_53] : memref<2x1x32xf32, #tpu.memory_space<vmem>>, vector<1x1x32xf32>
    %86 = vector.shape_cast %85 : vector<1x1x32xf32> to vector<1x32xf32>
    %cst_54 = arith.constant dense<0.000000e+00> : vector<48xf32>
    %87 = vector.multi_reduction <add>, %82, %cst_54 [1] : vector<48x32xf32> to vector<48xf32>
    %88 = vector.shape_cast %87 : vector<48xf32> to vector<48x1xf32>
    %cst_55 = arith.constant 3.200000e+01 : f32
    %89 = vector.broadcast %cst_55 : f32 to vector<48x1xf32>
    %90 = arith.divf %88, %89 : vector<48x1xf32>
    %91 = vector.broadcast %90 : vector<48x1xf32> to vector<48x32xf32>
    %92 = arith.subf %82, %91 : vector<48x32xf32>
    %93 = arith.mulf %92, %92 : vector<48x32xf32>
    %cst_56 = arith.constant dense<0.000000e+00> : vector<48xf32>
    %94 = vector.multi_reduction <add>, %93, %cst_56 [1] : vector<48x32xf32> to vector<48xf32>
    %95 = vector.shape_cast %94 : vector<48xf32> to vector<48x1xf32>
    %cst_57 = arith.constant 3.200000e+01 : f32
    %96 = vector.broadcast %cst_57 : f32 to vector<48x1xf32>
    %97 = arith.divf %95, %96 : vector<48x1xf32>
    %98 = vector.broadcast %90 : vector<48x1xf32> to vector<48x32xf32>
    %99 = arith.subf %82, %98 : vector<48x32xf32>
    %cst_58 = arith.constant 9.99999974E-6 : f32
    %100 = vector.broadcast %cst_58 : f32 to vector<48x1xf32>
    %101 = arith.addf %97, %100 : vector<48x1xf32>
    %102 = math.rsqrt %101 : vector<48x1xf32>
    %103 = vector.broadcast %102 : vector<48x1xf32> to vector<48x32xf32>
    %104 = arith.mulf %99, %103 : vector<48x32xf32>
    %105 = vector.broadcast %84 : vector<1x32xf32> to vector<48x32xf32>
    %106 = arith.mulf %104, %105 : vector<48x32xf32>
    %107 = vector.broadcast %86 : vector<1x32xf32> to vector<48x32xf32>
    %108 = arith.addf %106, %107 : vector<48x32xf32>
    %c0_59 = arith.constant 0 : index
    %c0_60 = arith.constant 0 : index
    %c0_61 = arith.constant 0 : index
    %109 = vector.load %arg13[%c0_59, %c0_60, %c0_61] : memref<2x32x64xf32, #tpu.memory_space<vmem>>, vector<1x32x64xf32>
    %110 = vector.shape_cast %109 : vector<1x32x64xf32> to vector<32x64xf32>
    %cst_62 = arith.constant dense<0.000000e+00> : vector<48x64xf32>
    %111 = tpu.matmul %108, %110, %cst_62 {dimension_numbers = #tpu.dot_dimension_numbers<[1], [0], [0], [1], [0, 0, 1, 1], [], []>} : vector<48x32xf32>, vector<32x64xf32>, vector<48x64xf32> -> vector<48x64xf32>
    %c0_63 = arith.constant 0 : index
    %c0_64 = arith.constant 0 : index
    %c0_65 = arith.constant 0 : index
    %112 = vector.load %arg14[%c0_63, %c0_64, %c0_65] : memref<2x1x64xf32, #tpu.memory_space<vmem>>, vector<1x1x64xf32>
    %113 = vector.shape_cast %112 : vector<1x1x64xf32> to vector<1x64xf32>
    %114 = vector.broadcast %113 : vector<1x64xf32> to vector<48x64xf32>
    %115 = arith.addf %111, %114 : vector<48x64xf32>
    %cst_66 = arith.constant 5.000000e-01 : f32
    %116 = vector.broadcast %cst_66 : f32 to vector<48x64xf32>
    %117 = arith.mulf %116, %115 : vector<48x64xf32>
    %cst_67 = arith.constant 4.471500e-02 : f32
    %118 = vector.broadcast %cst_67 : f32 to vector<48x64xf32>
    %119 = arith.mulf %118, %115 : vector<48x64xf32>
    %120 = arith.mulf %119, %115 : vector<48x64xf32>
    %121 = arith.mulf %120, %115 : vector<48x64xf32>
    %122 = arith.addf %115, %121 : vector<48x64xf32>
    %cst_68 = arith.constant 0.797884583 : f32
    %123 = vector.broadcast %cst_68 : f32 to vector<48x64xf32>
    %124 = arith.mulf %123, %122 : vector<48x64xf32>
    %125 = math.tanh %124 : vector<48x64xf32>
    %cst_69 = arith.constant 1.000000e+00 : f32
    %126 = vector.broadcast %cst_69 : f32 to vector<48x64xf32>
    %127 = arith.addf %126, %125 : vector<48x64xf32>
    %128 = arith.mulf %117, %127 : vector<48x64xf32>
    %c0_70 = arith.constant 0 : index
    %c0_71 = arith.constant 0 : index
    %c0_72 = arith.constant 0 : index
    %129 = vector.load %arg15[%c0_70, %c0_71, %c0_72] : memref<2x64x32xf32, #tpu.memory_space<vmem>>, vector<1x64x32xf32>
    %130 = vector.shape_cast %129 : vector<1x64x32xf32> to vector<64x32xf32>
    %cst_73 = arith.constant dense<0.000000e+00> : vector<48x32xf32>
    %131 = tpu.matmul %128, %130, %cst_73 {dimension_numbers = #tpu.dot_dimension_numbers<[1], [0], [0], [1], [0, 0, 1, 1], [], []>} : vector<48x64xf32>, vector<64x32xf32>, vector<48x32xf32> -> vector<48x32xf32>
    %c0_74 = arith.constant 0 : index
    %c0_75 = arith.constant 0 : index
    %c0_76 = arith.constant 0 : index
    %132 = vector.load %arg16[%c0_74, %c0_75, %c0_76] : memref<2x1x32xf32, #tpu.memory_space<vmem>>, vector<1x1x32xf32>
    %133 = vector.shape_cast %132 : vector<1x1x32xf32> to vector<1x32xf32>
    %134 = vector.broadcast %133 : vector<1x32xf32> to vector<48x32xf32>
    %135 = arith.addf %131, %134 : vector<48x32xf32>
    %136 = arith.addf %82, %135 : vector<48x32xf32>
    %c1 = arith.constant 1 : index
    %c0_77 = arith.constant 0 : index
    %c0_78 = arith.constant 0 : index
    %137 = vector.load %arg4[%c1, %c0_77, %c0_78] : memref<2x1x32xf32, #tpu.memory_space<vmem>>, vector<1x1x32xf32>
    %138 = vector.shape_cast %137 : vector<1x1x32xf32> to vector<1x32xf32>
    %c1_79 = arith.constant 1 : index
    %c0_80 = arith.constant 0 : index
    %c0_81 = arith.constant 0 : index
    %139 = vector.load %arg5[%c1_79, %c0_80, %c0_81] : memref<2x1x32xf32, #tpu.memory_space<vmem>>, vector<1x1x32xf32>
    %140 = vector.shape_cast %139 : vector<1x1x32xf32> to vector<1x32xf32>
    %cst_82 = arith.constant dense<0.000000e+00> : vector<48xf32>
    %141 = vector.multi_reduction <add>, %136, %cst_82 [1] : vector<48x32xf32> to vector<48xf32>
    %142 = vector.shape_cast %141 : vector<48xf32> to vector<48x1xf32>
    %cst_83 = arith.constant 3.200000e+01 : f32
    %143 = vector.broadcast %cst_83 : f32 to vector<48x1xf32>
    %144 = arith.divf %142, %143 : vector<48x1xf32>
    %145 = vector.broadcast %144 : vector<48x1xf32> to vector<48x32xf32>
    %146 = arith.subf %136, %145 : vector<48x32xf32>
    %147 = arith.mulf %146, %146 : vector<48x32xf32>
    %cst_84 = arith.constant dense<0.000000e+00> : vector<48xf32>
    %148 = vector.multi_reduction <add>, %147, %cst_84 [1] : vector<48x32xf32> to vector<48xf32>
    %149 = vector.shape_cast %148 : vector<48xf32> to vector<48x1xf32>
    %cst_85 = arith.constant 3.200000e+01 : f32
    %150 = vector.broadcast %cst_85 : f32 to vector<48x1xf32>
    %151 = arith.divf %149, %150 : vector<48x1xf32>
    %152 = vector.broadcast %144 : vector<48x1xf32> to vector<48x32xf32>
    %153 = arith.subf %136, %152 : vector<48x32xf32>
    %cst_86 = arith.constant 9.99999974E-6 : f32
    %154 = vector.broadcast %cst_86 : f32 to vector<48x1xf32>
    %155 = arith.addf %151, %154 : vector<48x1xf32>
    %156 = math.rsqrt %155 : vector<48x1xf32>
    %157 = vector.broadcast %156 : vector<48x1xf32> to vector<48x32xf32>
    %158 = arith.mulf %153, %157 : vector<48x32xf32>
    %159 = vector.broadcast %138 : vector<1x32xf32> to vector<48x32xf32>
    %160 = arith.mulf %158, %159 : vector<48x32xf32>
    %161 = vector.broadcast %140 : vector<1x32xf32> to vector<48x32xf32>
    %162 = arith.addf %160, %161 : vector<48x32xf32>
    %163 = vector.shape_cast %162 : vector<48x32xf32> to vector<1x48x32xf32>
    %164 = vector.shape_cast %163 : vector<1x48x32xf32> to vector<1x48x32xf32>
    %165 = vector.broadcast %164 : vector<1x48x32xf32> to vector<4x48x32xf32>
    %c1_87 = arith.constant 1 : index
    %c0_88 = arith.constant 0 : index
    %c0_89 = arith.constant 0 : index
    %c0_90 = arith.constant 0 : index
    %166 = vector.load %arg6[%c1_87, %c0_88, %c0_89, %c0_90] : memref<2x4x32x8xf32, #tpu.memory_space<vmem>>, vector<1x4x32x8xf32>
    %167 = vector.shape_cast %166 : vector<1x4x32x8xf32> to vector<4x32x8xf32>
    "tpu.trace_start"() <{level = 10 : i32, message = "hnd,hde->hne"}> : () -> ()
    %cst_91 = arith.constant dense<0.000000e+00> : vector<4x48x8xf32>
    %168 = tpu.matmul %165, %167, %cst_91 {dimension_numbers = #tpu.dot_dimension_numbers<[2], [1], [1], [2], [0, 0, 0, 1, 1, 2], [0], [0]>} : vector<4x48x32xf32>, vector<4x32x8xf32>, vector<4x48x8xf32> -> vector<4x48x8xf32>
    "tpu.trace_stop"() : () -> ()
    %c1_92 = arith.constant 1 : index
    %c0_93 = arith.constant 0 : index
    %c0_94 = arith.constant 0 : index
    %c0_95 = arith.constant 0 : index
    %169 = vector.load %arg7[%c1_92, %c0_93, %c0_94, %c0_95] : memref<2x4x32x8xf32, #tpu.memory_space<vmem>>, vector<1x4x32x8xf32>
    %170 = vector.shape_cast %169 : vector<1x4x32x8xf32> to vector<4x32x8xf32>
    "tpu.trace_start"() <{level = 10 : i32, message = "hnd,hde->hne"}> : () -> ()
    %cst_96 = arith.constant dense<0.000000e+00> : vector<4x48x8xf32>
    %171 = tpu.matmul %165, %170, %cst_96 {dimension_numbers = #tpu.dot_dimension_numbers<[2], [1], [1], [2], [0, 0, 0, 1, 1, 2], [0], [0]>} : vector<4x48x32xf32>, vector<4x32x8xf32>, vector<4x48x8xf32> -> vector<4x48x8xf32>
    "tpu.trace_stop"() : () -> ()
    %c1_97 = arith.constant 1 : index
    %c0_98 = arith.constant 0 : index
    %c0_99 = arith.constant 0 : index
    %c0_100 = arith.constant 0 : index
    %172 = vector.load %arg8[%c1_97, %c0_98, %c0_99, %c0_100] : memref<2x4x32x8xf32, #tpu.memory_space<vmem>>, vector<1x4x32x8xf32>
    %173 = vector.shape_cast %172 : vector<1x4x32x8xf32> to vector<4x32x8xf32>
    "tpu.trace_start"() <{level = 10 : i32, message = "hnd,hde->hne"}> : () -> ()
    %cst_101 = arith.constant dense<0.000000e+00> : vector<4x48x8xf32>
    %174 = tpu.matmul %165, %173, %cst_101 {dimension_numbers = #tpu.dot_dimension_numbers<[2], [1], [1], [2], [0, 0, 0, 1, 1, 2], [0], [0]>} : vector<4x48x32xf32>, vector<4x32x8xf32>, vector<4x48x8xf32> -> vector<4x48x8xf32>
    "tpu.trace_stop"() : () -> ()
    %175 = vector.shape_cast %168 : vector<4x48x8xf32> to vector<8x24x8xf32>
    %176 = vector.shape_cast %171 : vector<4x48x8xf32> to vector<8x24x8xf32>
    %177 = vector.shape_cast %174 : vector<4x48x8xf32> to vector<8x24x8xf32>
    "tpu.trace_start"() <{level = 10 : i32, message = "bid,bjd->bij"}> : () -> ()
    %cst_102 = arith.constant dense<0.000000e+00> : vector<8x24x24xf32>
    %178 = tpu.matmul %175, %176, %cst_102 {dimension_numbers = #tpu.dot_dimension_numbers<[2], [2], [1], [1], [0, 0, 0, 1, 1, 1], [0], [0]>} : vector<8x24x8xf32>, vector<8x24x8xf32>, vector<8x24x24xf32> -> vector<8x24x24xf32>
    "tpu.trace_stop"() : () -> ()
    %cst_103 = arith.constant 0.176776692 : f32
    %179 = vector.broadcast %cst_103 : f32 to vector<8x24x24xf32>
    %180 = arith.mulf %178, %179 : vector<8x24x24xf32>
    %181 = vector.broadcast %15 : vector<1x1x24xf32> to vector<8x24x24xf32>
    %182 = arith.addf %180, %181 : vector<8x24x24xf32>
    %cst_104 = arith.constant dense<0xFF800000> : vector<8x24xf32>
    %183 = vector.multi_reduction <maximumf>, %182, %cst_104 [2] : vector<8x24x24xf32> to vector<8x24xf32>
    %184 = vector.shape_cast %183 : vector<8x24xf32> to vector<8x24x1xf32>
    %185 = vector.broadcast %184 : vector<8x24x1xf32> to vector<8x24x24xf32>
    %186 = arith.subf %182, %185 : vector<8x24x24xf32>
    %187 = math.exp %186 : vector<8x24x24xf32>
    %cst_105 = arith.constant dense<0.000000e+00> : vector<8x24xf32>
    %188 = vector.multi_reduction <add>, %187, %cst_105 [2] : vector<8x24x24xf32> to vector<8x24xf32>
    %189 = vector.shape_cast %188 : vector<8x24xf32> to vector<8x24x1xf32>
    %190 = tpu.reciprocal %189 {approx = true} : vector<8x24x1xf32> -> vector<8x24x1xf32>
    %191 = vector.broadcast %190 : vector<8x24x1xf32> to vector<8x24x24xf32>
    %192 = arith.mulf %187, %191 : vector<8x24x24xf32>
    "tpu.trace_start"() <{level = 10 : i32, message = "bij,bjd->bid"}> : () -> ()
    %cst_106 = arith.constant dense<0.000000e+00> : vector<8x24x8xf32>
    %193 = tpu.matmul %192, %177, %cst_106 {dimension_numbers = #tpu.dot_dimension_numbers<[2], [1], [1], [2], [0, 0, 0, 1, 1, 2], [0], [0]>} : vector<8x24x24xf32>, vector<8x24x8xf32>, vector<8x24x8xf32> -> vector<8x24x8xf32>
    "tpu.trace_stop"() : () -> ()
    %194 = vector.shape_cast %193 : vector<8x24x8xf32> to vector<4x48x8xf32>
    %c1_107 = arith.constant 1 : index
    %c0_108 = arith.constant 0 : index
    %c0_109 = arith.constant 0 : index
    %c0_110 = arith.constant 0 : index
    %195 = vector.load %arg9[%c1_107, %c0_108, %c0_109, %c0_110] : memref<2x4x8x32xf32, #tpu.memory_space<vmem>>, vector<1x4x8x32xf32>
    %196 = vector.shape_cast %195 : vector<1x4x8x32xf32> to vector<4x8x32xf32>
    "tpu.trace_start"() <{level = 10 : i32, message = "hnd,hde->hne"}> : () -> ()
    %cst_111 = arith.constant dense<0.000000e+00> : vector<4x48x32xf32>
    %197 = tpu.matmul %194, %196, %cst_111 {dimension_numbers = #tpu.dot_dimension_numbers<[2], [1], [1], [2], [0, 0, 0, 1, 1, 2], [0], [0]>} : vector<4x48x8xf32>, vector<4x8x32xf32>, vector<4x48x32xf32> -> vector<4x48x32xf32>
    "tpu.trace_stop"() : () -> ()
    %cst_112 = arith.constant dense<0.000000e+00> : vector<48x32xf32>
    %198 = vector.multi_reduction <add>, %197, %cst_112 [0] : vector<4x48x32xf32> to vector<48x32xf32>
    %c1_113 = arith.constant 1 : index
    %c0_114 = arith.constant 0 : index
    %c0_115 = arith.constant 0 : index
    %199 = vector.load %arg10[%c1_113, %c0_114, %c0_115] : memref<2x1x32xf32, #tpu.memory_space<vmem>>, vector<1x1x32xf32>
    %200 = vector.shape_cast %199 : vector<1x1x32xf32> to vector<1x32xf32>
    %201 = vector.broadcast %200 : vector<1x32xf32> to vector<48x32xf32>
    %202 = arith.addf %198, %201 : vector<48x32xf32>
    %203 = arith.addf %136, %202 : vector<48x32xf32>
    %c1_116 = arith.constant 1 : index
    %c0_117 = arith.constant 0 : index
    %c0_118 = arith.constant 0 : index
    %204 = vector.load %arg11[%c1_116, %c0_117, %c0_118] : memref<2x1x32xf32, #tpu.memory_space<vmem>>, vector<1x1x32xf32>
    %205 = vector.shape_cast %204 : vector<1x1x32xf32> to vector<1x32xf32>
    %c1_119 = arith.constant 1 : index
    %c0_120 = arith.constant 0 : index
    %c0_121 = arith.constant 0 : index
    %206 = vector.load %arg12[%c1_119, %c0_120, %c0_121] : memref<2x1x32xf32, #tpu.memory_space<vmem>>, vector<1x1x32xf32>
    %207 = vector.shape_cast %206 : vector<1x1x32xf32> to vector<1x32xf32>
    %cst_122 = arith.constant dense<0.000000e+00> : vector<48xf32>
    %208 = vector.multi_reduction <add>, %203, %cst_122 [1] : vector<48x32xf32> to vector<48xf32>
    %209 = vector.shape_cast %208 : vector<48xf32> to vector<48x1xf32>
    %cst_123 = arith.constant 3.200000e+01 : f32
    %210 = vector.broadcast %cst_123 : f32 to vector<48x1xf32>
    %211 = arith.divf %209, %210 : vector<48x1xf32>
    %212 = vector.broadcast %211 : vector<48x1xf32> to vector<48x32xf32>
    %213 = arith.subf %203, %212 : vector<48x32xf32>
    %214 = arith.mulf %213, %213 : vector<48x32xf32>
    %cst_124 = arith.constant dense<0.000000e+00> : vector<48xf32>
    %215 = vector.multi_reduction <add>, %214, %cst_124 [1] : vector<48x32xf32> to vector<48xf32>
    %216 = vector.shape_cast %215 : vector<48xf32> to vector<48x1xf32>
    %cst_125 = arith.constant 3.200000e+01 : f32
    %217 = vector.broadcast %cst_125 : f32 to vector<48x1xf32>
    %218 = arith.divf %216, %217 : vector<48x1xf32>
    %219 = vector.broadcast %211 : vector<48x1xf32> to vector<48x32xf32>
    %220 = arith.subf %203, %219 : vector<48x32xf32>
    %cst_126 = arith.constant 9.99999974E-6 : f32
    %221 = vector.broadcast %cst_126 : f32 to vector<48x1xf32>
    %222 = arith.addf %218, %221 : vector<48x1xf32>
    %223 = math.rsqrt %222 : vector<48x1xf32>
    %224 = vector.broadcast %223 : vector<48x1xf32> to vector<48x32xf32>
    %225 = arith.mulf %220, %224 : vector<48x32xf32>
    %226 = vector.broadcast %205 : vector<1x32xf32> to vector<48x32xf32>
    %227 = arith.mulf %225, %226 : vector<48x32xf32>
    %228 = vector.broadcast %207 : vector<1x32xf32> to vector<48x32xf32>
    %229 = arith.addf %227, %228 : vector<48x32xf32>
    %c1_127 = arith.constant 1 : index
    %c0_128 = arith.constant 0 : index
    %c0_129 = arith.constant 0 : index
    %230 = vector.load %arg13[%c1_127, %c0_128, %c0_129] : memref<2x32x64xf32, #tpu.memory_space<vmem>>, vector<1x32x64xf32>
    %231 = vector.shape_cast %230 : vector<1x32x64xf32> to vector<32x64xf32>
    %cst_130 = arith.constant dense<0.000000e+00> : vector<48x64xf32>
    %232 = tpu.matmul %229, %231, %cst_130 {dimension_numbers = #tpu.dot_dimension_numbers<[1], [0], [0], [1], [0, 0, 1, 1], [], []>} : vector<48x32xf32>, vector<32x64xf32>, vector<48x64xf32> -> vector<48x64xf32>
    %c1_131 = arith.constant 1 : index
    %c0_132 = arith.constant 0 : index
    %c0_133 = arith.constant 0 : index
    %233 = vector.load %arg14[%c1_131, %c0_132, %c0_133] : memref<2x1x64xf32, #tpu.memory_space<vmem>>, vector<1x1x64xf32>
    %234 = vector.shape_cast %233 : vector<1x1x64xf32> to vector<1x64xf32>
    %235 = vector.broadcast %234 : vector<1x64xf32> to vector<48x64xf32>
    %236 = arith.addf %232, %235 : vector<48x64xf32>
    %cst_134 = arith.constant 5.000000e-01 : f32
    %237 = vector.broadcast %cst_134 : f32 to vector<48x64xf32>
    %238 = arith.mulf %237, %236 : vector<48x64xf32>
    %cst_135 = arith.constant 4.471500e-02 : f32
    %239 = vector.broadcast %cst_135 : f32 to vector<48x64xf32>
    %240 = arith.mulf %239, %236 : vector<48x64xf32>
    %241 = arith.mulf %240, %236 : vector<48x64xf32>
    %242 = arith.mulf %241, %236 : vector<48x64xf32>
    %243 = arith.addf %236, %242 : vector<48x64xf32>
    %cst_136 = arith.constant 0.797884583 : f32
    %244 = vector.broadcast %cst_136 : f32 to vector<48x64xf32>
    %245 = arith.mulf %244, %243 : vector<48x64xf32>
    %246 = math.tanh %245 : vector<48x64xf32>
    %cst_137 = arith.constant 1.000000e+00 : f32
    %247 = vector.broadcast %cst_137 : f32 to vector<48x64xf32>
    %248 = arith.addf %247, %246 : vector<48x64xf32>
    %249 = arith.mulf %238, %248 : vector<48x64xf32>
    %c1_138 = arith.constant 1 : index
    %c0_139 = arith.constant 0 : index
    %c0_140 = arith.constant 0 : index
    %250 = vector.load %arg15[%c1_138, %c0_139, %c0_140] : memref<2x64x32xf32, #tpu.memory_space<vmem>>, vector<1x64x32xf32>
    %251 = vector.shape_cast %250 : vector<1x64x32xf32> to vector<64x32xf32>
    %cst_141 = arith.constant dense<0.000000e+00> : vector<48x32xf32>
    %252 = tpu.matmul %249, %251, %cst_141 {dimension_numbers = #tpu.dot_dimension_numbers<[1], [0], [0], [1], [0, 0, 1, 1], [], []>} : vector<48x64xf32>, vector<64x32xf32>, vector<48x32xf32> -> vector<48x32xf32>
    %c1_142 = arith.constant 1 : index
    %c0_143 = arith.constant 0 : index
    %c0_144 = arith.constant 0 : index
    %253 = vector.load %arg16[%c1_142, %c0_143, %c0_144] : memref<2x1x32xf32, #tpu.memory_space<vmem>>, vector<1x1x32xf32>
    %254 = vector.shape_cast %253 : vector<1x1x32xf32> to vector<1x32xf32>
    %255 = vector.broadcast %254 : vector<1x32xf32> to vector<48x32xf32>
    %256 = arith.addf %252, %255 : vector<48x32xf32>
    %257 = arith.addf %203, %256 : vector<48x32xf32>
    %c0_145 = arith.constant 0 : index
    %c0_146 = arith.constant 0 : index
    %258 = vector.load %arg3[%c0_145, %c0_146] : memref<2x48xf32, #tpu.memory_space<vmem>>, vector<2x48xf32>
    %cst_147 = arith.constant dense<0.000000e+00> : vector<2x32xf32>
    %259 = tpu.matmul %258, %257, %cst_147 {dimension_numbers = #tpu.dot_dimension_numbers<[1], [0], [0], [1], [0, 0, 1, 1], [], []>} : vector<2x48xf32>, vector<48x32xf32>, vector<2x32xf32> -> vector<2x32xf32>
    %c0_148 = arith.constant 0 : index
    %c0_149 = arith.constant 0 : index
    %260 = vector.load %arg17[%c0_148, %c0_149] : memref<32x64xf32, #tpu.memory_space<vmem>>, vector<32x64xf32>
    %cst_150 = arith.constant dense<0.000000e+00> : vector<2x64xf32>
    %261 = tpu.matmul %259, %260, %cst_150 {dimension_numbers = #tpu.dot_dimension_numbers<[1], [0], [0], [1], [0, 0, 1, 1], [], []>} : vector<2x32xf32>, vector<32x64xf32>, vector<2x64xf32> -> vector<2x64xf32>
    %c0_151 = arith.constant 0 : index
    %c0_152 = arith.constant 0 : index
    %262 = vector.load %arg18[%c0_151, %c0_152] : memref<1x64xf32, #tpu.memory_space<vmem>>, vector<1x64xf32>
    %263 = vector.broadcast %262 : vector<1x64xf32> to vector<2x64xf32>
    %264 = arith.addf %261, %263 : vector<2x64xf32>
    %cst_153 = arith.constant 5.000000e-01 : f32
    %265 = vector.broadcast %cst_153 : f32 to vector<2x64xf32>
    %266 = arith.mulf %265, %264 : vector<2x64xf32>
    %cst_154 = arith.constant 4.471500e-02 : f32
    %267 = vector.broadcast %cst_154 : f32 to vector<2x64xf32>
    %268 = arith.mulf %267, %264 : vector<2x64xf32>
    %269 = arith.mulf %268, %264 : vector<2x64xf32>
    %270 = arith.mulf %269, %264 : vector<2x64xf32>
    %271 = arith.addf %264, %270 : vector<2x64xf32>
    %cst_155 = arith.constant 0.797884583 : f32
    %272 = vector.broadcast %cst_155 : f32 to vector<2x64xf32>
    %273 = arith.mulf %272, %271 : vector<2x64xf32>
    %274 = math.tanh %273 : vector<2x64xf32>
    %cst_156 = arith.constant 1.000000e+00 : f32
    %275 = vector.broadcast %cst_156 : f32 to vector<2x64xf32>
    %276 = arith.addf %275, %274 : vector<2x64xf32>
    %277 = arith.mulf %266, %276 : vector<2x64xf32>
    %c0_157 = arith.constant 0 : index
    %c0_158 = arith.constant 0 : index
    %278 = vector.load %arg19[%c0_157, %c0_158] : memref<64x128xf32, #tpu.memory_space<vmem>>, vector<64x128xf32>
    %cst_159 = arith.constant dense<0.000000e+00> : vector<2x128xf32>
    %279 = tpu.matmul %277, %278, %cst_159 {dimension_numbers = #tpu.dot_dimension_numbers<[1], [0], [0], [1], [0, 0, 1, 1], [], []>} : vector<2x64xf32>, vector<64x128xf32>, vector<2x128xf32> -> vector<2x128xf32>
    %c0_160 = arith.constant 0 : index
    %c0_161 = arith.constant 0 : index
    %280 = vector.load %arg20[%c0_160, %c0_161] : memref<1x128xf32, #tpu.memory_space<vmem>>, vector<1x128xf32>
    %281 = vector.broadcast %280 : vector<1x128xf32> to vector<2x128xf32>
    %282 = arith.addf %279, %281 : vector<2x128xf32>
    %c0_162 = arith.constant 0 : index
    %c0_163 = arith.constant 0 : index
    %283 = vector.load %arg21[%c0_162, %c0_163] : memref<2x128xf32, #tpu.memory_space<vmem>>, vector<2x128xf32>
    tpu.vector_store %arg21[%c0_162, %c0_163], %282 {strides = array<i32>} : memref<2x128xf32, #tpu.memory_space<vmem>>, vector<2x128xf32>,
    return
  }
}

</mosaic_0001>

<bundles_post_ra>
// kernel: vit_forward.1
= control target key start
LH: loop header
LB: loop body
LE: loop exit
PB: predicated region body
PF: predicated region fallthrough
CT: control target
= control target key end

     0   :  { %s7741_s0 = inlined_call_operand.vmem [shape: f32[2,24,48], index: 0, kind: input, shape index: {}]   ;;  %s7742_s1 = inlined_call_operand.vmem [shape: f32[24,32], index: 1, kind: input, shape index: {}]   ;;  %s7743_s2 = inlined_call_operand.vmem [shape: f32[48,32], index: 2, kind: input, shape index: {}]   ;;  %s7744_s3 = inlined_call_operand.vmem [shape: f32[2,48], index: 3, kind: input, shape index: {}]   ;;  %s7745_s4 = inlined_call_operand.vmem [shape: f32[2,1,32], index: 4, kind: input, shape index: {}]   ;;  %s7746_s5 = inlined_call_operand.vmem [shape: f32[2,1,32], index: 5, kind: input, shape index: {}]   ;;  %s7747_s6 = inlined_call_operand.vmem [shape: f32[2,4,32,8], index: 6, kind: input, shape index: {}]   ;;  %s7748_s7 = inlined_call_operand.vmem [shape: f32[2,4,32,8], index: 7, kind: input, shape index: {}]   ;;  %s7749_s8 = inlined_call_operand.vmem [shape: f32[2,4,32,8], index: 8, kind: input, shape index: {}]   ;;  %s7750_s9 = inlined_call_operand.vmem [shape: f32[2,4,8,32], index: 9, kind: input, shape index: {}]   ;;  %s7751_s10 = inlined_call_operand.vmem [shape: f32[2,1,32], index: 10, kind: input, shape index: {}]   ;;  %s7752_s11 = inlined_call_operand.vmem [shape: f32[2,1,32], index: 11, kind: input, shape index: {}]   ;;  %s7753_s12 = inlined_call_operand.vmem [shape: f32[2,1,32], index: 12, kind: input, shape index: {}]   ;;  %s7754_s13 = inlined_call_operand.vmem [shape: f32[2,32,64], index: 13, kind: input, shape index: {}]   ;;  %s7755_s14 = inlined_call_operand.vmem [shape: f32[2,1,64], index: 14, kind: input, shape index: {}]   ;;  %s7756_s15 = inlined_call_operand.vmem [shape: f32[2,64,32], index: 15, kind: input, shape index: {}]   ;;  %s7757_s16 = inlined_call_operand.vmem [shape: f32[2,1,32], index: 16, kind: input, shape index: {}]   ;;  %s7758_s17 = inlined_call_operand.vmem [shape: f32[32,64], index: 17, kind: input, shape index: {}]   ;;  %s7759_s18 = inlined_call_operand.vmem [shape: f32[1,64], index: 18, kind: input, shape index: {}]   ;;  %s7760_s19 = inlined_call_operand.vmem [shape: f32[64,128], index: 19, kind: input, shape index: {}]   ;;  %s7761_s20 = inlined_call_operand.vmem [shape: f32[1,128], index: 20, kind: input, shape index: {}]   ;;  %s7762_s21 = inlined_call_operand.hbm [shape: f32[2,128], index: 21, kind: output, shape index: {}]  }
   0x1   :  { %7768 = sst [smem:[#allocation5_spill]] %s7741_s0 }
   0x2   :  { %7769 = sst [smem:[#allocation6_spill]] %s7742_s1 }
   0x3   :  { %7770 = sst [smem:[#allocation7_spill]] %s7743_s2 }
   0x4   :  { %7771 = sst [smem:[#allocation8_spill]] %s7744_s3 }
   0x5   :  { %7772 = sst [smem:[#allocation9_spill]] %s7745_s4 }
   0x6   :  { %7773 = sst [smem:[#allocation10_spill]] %s7746_s5 }
   0x7   :  { %s7774_s26 = sld [smem:[#allocation7_spill]]  ;;  %vm84_vm0 = vcmask 392192  }
   0x8   :  { %s7775_s2 = sld [smem:[#allocation5_spill]] }
   0xd   :  { %v80_v0 = vld [vmem:[%s7774_s26 + $0x28] sm:$0xff]  ;;  %v79_v1 = vld [vmem:[%s7774_s26 + $0x20] sm:$0xff]  ;;  %v78_v2 = vld [vmem:[%s7774_s26 + $0x18] sm:$0xff] }
   0xe   :  { %113 = vmatpush.msra.mxu0 %v80_v0  ;;  %v77_v3 = vld [vmem:[%s7774_s26 + $0x10] sm:$0xff]  ;;  %v76_v4 = vld [vmem:[%s7774_s26 + $0x8] sm:$0xff]  ;;  %v75_v5 = vld [vmem:[%s7774_s26] sm:$0xff] }
   0xf   :  { %v69_v6 = vld [vmem:[%s7775_s2] sm:$0xff] }
  0x10   :  { %114 = vmatpush.msra.mxu0 %v79_v1 }
  0x12   :  { %115 = vmatpush.msra.mxu0 %v78_v2 }
  0x14   :  { %116 = vmatpush.msra.mxu0 %v77_v3 }
  0x16   :  { %117 = vmatpush.msra.mxu0 %v76_v4 }
  0x17   :  { %26 = vsyncpa [#allocation3], 0  ;;  %v70_v7 = vld [vmem:[%s7775_s2 + $0x8] sm:$0xff]  ;;  %v71_v8 = vld [vmem:[%s7775_s2 + $0x10] sm:$0xff]  ;;  %s7776_s1 = sld [smem:[#allocation6_spill]]  ;;  %vm144_vm1 = vcmask 261120  }
  0x18   :  { %118 = vmatpush.msra.mxu0 %v75_v5  ;;  %v72_v9 = vld [vmem:[%s7775_s2 + $0x18] sm:$0xff]  ;;  %v73_v10 = vld [vmem:[%s7775_s2 + $0x20] sm:$0xff]  ;;  %v74_v11 = vld [vmem:[%s7775_s2 + $0x28] sm:$0xff]  ;;  %v5426_v33 = vmov 32.0   ;;  %s7777_s0 = sld [smem:[#allocation9_spill]] }
  0x19   :  { %4670 = vmatmul.msk.f32.vlgmr.msra.gmra.mxu0 %vm84_vm0, %v69_v6  ;;  %5132 = vrcp.f32 %v5426_v33  ;;  %v305_v6 = vld [vmem:[%s7747_s6 + $0x18] sm:$0xff]  ;;  %s7778_s5 = sld [smem:[#allocation10_spill]] }
  0x1a   :  { %348 = vmatpush.msra.mxu1 %v305_v6  ;;  %s7779_s26 = sld [smem:[#allocation8_spill]] }
  0x1d   :  { %v81_v12 = vld [vmem:[%s7776_s1] sm:$0xff]  ;;  %v82_v16 = vld [vmem:[%s7776_s1 + $0x8] sm:$0xff]  ;;  %v83_v20 = vld [vmem:[%s7776_s1 + $0x10] sm:$0xff] }
  0x1f   :  { %v5133_v34 = vpop.eup %5132 }
  0x20   :  { %v164_v35 = vmul.f32 32.0, %v5133_v34  ;;  %vm168_vm2 = vweird.f32 %v5133_v34 }
  0x21   :  { %4671 = vmatmul.msk.f32.gmra.mxu0 %vm84_vm0, %v70_v7  ;;  %v309_v7 = vld [vmem:[%s7747_s6 + $0x38] sm:$0xff] }
  0x22   :  { %v165_v36 = vsub.f32 1.0, %v164_v35  ;;  %383 = vmatpush.msra.mxu2 %v309_v7 }
  0x24   :  { %v166_v37 = vmul.f32 %v5133_v34, %v165_v36 }
  0x26   :  { %v167_v38 = vadd.f32 %v5133_v34, %v166_v37 }
  0x28   :  { %v5614_v39 = vsel %vm168_vm2, %v5133_v34, %v167_v38 }
  0x29   :  { %4672 = vmatmul.msk.f32.gmra.mxu0 %vm84_vm0, %v71_v8  ;;  %v313_v8 = vld [vmem:[%s7747_s6 + $0x58] sm:$0xff] }
  0x2a   :  { %418 = vmatpush.msra.mxu3 %v313_v8 }
  0x31   :  { %4673 = vmatmul.msk.f32.gmra.mxu0 %vm84_vm0, %v72_v9  ;;  %v487_v9 = vld [vmem:[%s7748_s7 + $0x58] sm:$0xff] }
  0x32   :  { %574 = vmatpush.msrb.mxu0 %v487_v9 }
  0x39   :  { %4674 = vmatmul.msk.f32.gmra.mxu0 %vm84_vm0, %v73_v10  ;;  %v304_v10 = vld [vmem:[%s7747_s6 + $0x10] sm:$0xff] }
  0x3a   :  { %349 = vmatpush.msra.mxu1 %v304_v10 }
  0x41   :  { %4675 = vmatmul.msk.f32.gmra.mxu0 %vm84_vm0, %v74_v11  ;;  %v308_v11 = vld [vmem:[%s7747_s6 + $0x30] sm:$0xff] }
  0x42   :  { %384 = vmatpush.msra.mxu2 %v308_v11 }
  0x96   :  { %v120_v13 = vpop.f32.mrf.mxu0 }
  0x97   :  { %v5584_v14 = vadd.f32 %v120_v13, %v81_v12  ;;  %v486_v13 = vld [vmem:[%s7748_s7 + $0x50] sm:$0xff] }
  0x98   :  { %575 = vmatpush.msrb.mxu0 %v486_v13  ;;  %v483_v13 = vld [vmem:[%s7748_s7 + $0x38] sm:$0xff] }
  0x99   :  { %v145_v15 = vsel %vm144_vm1, %v5584_v14, 0.0 }
  0x9a   :  { %146 = vadd.xlane.f32.xlu0 %v145_v15  ;;  %v303_v15 = vld [vmem:[%s7747_s6 + $0x8] sm:$0xff] }
  0x9b   :  { %350 = vmatpush.msra.mxu1 %v303_v15 }
  0x9e   :  { %v123_v17 = vpop.f32.mrf.mxu0 }
  0x9f   :  { %v5591_v18 = vadd.f32 %v123_v17, %v82_v16  ;;  %v311_v17 = vld [vmem:[%s7747_s6 + $0x48] sm:$0xff] }
  0xa1   :  { %v148_v19 = vsel %vm144_vm1, %v5591_v18, 0.0 }
  0xa2   :  { %149 = vadd.xlane.f32.xlu0 %v148_v19  ;;  %v485_v19 = vld [vmem:[%s7748_s7 + $0x48] sm:$0xff] }
  0xa3   :  { %576 = vmatpush.msrb.mxu0 %v485_v19  ;;  %v317_v19 = vld [vmem:[%s7747_s6 + $0x78] sm:$0xff] }
  0xa6   :  { %v126_v21 = vpop.f32.mrf.mxu0 }
  0xa7   :  { %v5598_v22 = vadd.f32 %v126_v21, %v83_v20  ;;  %v306_v21 = vld [vmem:[%s7747_s6 + $0x20] sm:$0xff] }
  0xa9   :  { %v151_v23 = vsel %vm144_vm1, %v5598_v22, 0.0 }
  0xaa   :  { %152 = vadd.xlane.f32.xlu1 %v151_v23  ;;  %v310_v23 = vld [vmem:[%s7747_s6 + $0x40] sm:$0xff] }
  0xae   :  { %v129_v24 = vpop.f32.mrf.mxu0 }
  0xaf   :  { %v5602_v25 = vadd.f32 %v129_v24, %v81_v12  ;;  %v312_v12 = vld [vmem:[%s7747_s6 + $0x50] sm:$0xff]  ;;  %v484_v24 = vld [vmem:[%s7748_s7 + $0x40] sm:$0xff] }
  0xb0   :  { %419 = vmatpush.msra.mxu3 %v312_v12  ;;  %577 = vmatpush.msrb.mxu0 %v484_v24  ;;  %v316_v24 = vld [vmem:[%s7747_s6 + $0x70] sm:$0xff] }
  0xb1   :  { %v154_v26 = vsel %vm144_vm1, %v5602_v25, 0.0 }
  0xb2   :  { %155 = vadd.xlane.f32.xlu1 %v154_v26  ;;  %420 = vmatpush.msra.mxu3 %v311_v17 }
  0xb4   :  { %421 = vmatpush.msra.mxu3 %v310_v23 }
  0xb6   :  { %v132_v27 = vpop.f32.mrf.mxu0  ;;  %539 = vmatpush.msrb.mxu3 %v483_v13 }
  0xb7   :  { %v5606_v28 = vadd.f32 %v132_v27, %v82_v16  ;;  %v307_v16 = vld [vmem:[%s7747_s6 + $0x28] sm:$0xff] }
  0xb8   :  { %385 = vmatpush.msra.mxu2 %v307_v16 }
  0xb9   :  { %v157_v29 = vsel %vm144_vm1, %v5606_v28, 0.0 }
  0xba   :  { %158 = vadd.xlane.f32.xlu2 %v157_v29  ;;  %386 = vmatpush.msra.mxu2 %v306_v21  ;;  %v643_v21 = vld [vmem:[%s7749_s8 + $0x58] sm:$0xff] }
  0xbb   :  { %730 = vmatpush.msra.mxu0 %v643_v21  ;;  %v488_v21 = vld [vmem:[%s7748_s7 + $0x60] sm:$0xff] }
  0xbe   :  { %v135_v30 = vpop.f32.mrf.mxu0 }
  0xbf   :  { %v5610_v31 = vadd.f32 %v135_v30, %v83_v20  ;;  %v302_v20 = vld [vmem:[%s7747_s6] sm:$0xff] }
  0xc0   :  { %351 = vmatpush.msra.mxu1 %v302_v20  ;;  %v479_v20 = vld [vmem:[%s7748_s7 + $0x18] sm:$0xff] }
  0xc1   :  { %v160_v32 = vsel %vm144_vm1, %v5610_v31, 0.0  ;;  %504 = vmatpush.msrb.mxu2 %v479_v20  ;;  %v637_v20 = vld [vmem:[%s7749_s8 + $0x28] sm:$0xff] }
  0xc2   :  { %161 = vadd.xlane.f32.xlu2 %v160_v32  ;;  %453 = vmatpush.msrb.mxu1 %v317_v19  ;;  %v633_v19 = vld [vmem:[%s7749_s8 + $0x8] sm:$0xff] }
  0xc4   :  { %454 = vmatpush.msrb.mxu1 %v316_v24  ;;  %v636_v24 = vld [vmem:[%s7749_s8 + $0x20] sm:$0xff] }
 0x10d   :  { %v147_v40 = vpop.xlane.xlu0 %146 }
 0x10e   :  { %v170_v41 = vmul.f32 %v5614_v39, %v147_v40 }
 0x110   :  { %v5618_v42 = vsub.f32 %v5584_v14, %v170_v41 }
 0x112   :  { %v182_v43 = vmul.f32 %v5618_v42, %v5618_v42 }
 0x114   :  { %v188_v44 = vsel %vm144_vm1, %v182_v43, 0.0 }
 0x115   :  { %189 = vadd.xlane.f32.xlu0 %v188_v44  ;;  %v150_v45 = vpop.xlane.xlu0 %149 }
 0x116   :  { %v171_v46 = vmul.f32 %v5614_v39, %v150_v45 }
 0x118   :  { %v5625_v47 = vsub.f32 %v5591_v18, %v171_v46 }
 0x11a   :  { %v183_v48 = vmul.f32 %v5625_v47, %v5625_v47 }
 0x11c   :  { %v191_v49 = vsel %vm144_vm1, %v183_v48, 0.0  ;;  %v5712_v48 = vld [vmem:[%s7777_s0] ss:$0 sm:$0xff] }
 0x11d   :  { %v153_v50 = vpop.xlane.xlu1 %152  ;;  %192 = vadd.xlane.f32.xlu1 %v191_v49 }
 0x11e   :  { %v172_v51 = vmul.f32 %v5614_v39, %v153_v50 }
 0x120   :  { %v5632_v52 = vsub.f32 %v5598_v22, %v172_v51  ;;  %v5717_v51 = vld [vmem:[%s7778_s5] ss:$0 sm:$0xff] }
 0x122   :  { %v184_v53 = vmul.f32 %v5632_v52, %v5632_v52 }
 0x124   :  { %v194_v54 = vsel %vm144_vm1, %v184_v53, 0.0 }
 0x125   :  { %195 = vadd.xlane.f32.xlu2 %v194_v54  ;;  %v156_v55 = vpop.xlane.xlu1 %155 }
 0x126   :  { %v173_v56 = vmul.f32 %v5614_v39, %v156_v55 }
 0x128   :  { %v5639_v57 = vsub.f32 %v5602_v25, %v173_v56 }
 0x12a   :  { %v185_v58 = vmul.f32 %v5639_v57, %v5639_v57 }
 0x12c   :  { %v197_v59 = vsel %vm144_vm1, %v185_v58, 0.0 }
 0x12d   :  { %v159_v60 = vpop.xlane.xlu2 %158  ;;  %198 = vadd.xlane.f32.xlu0 %v197_v59 }
 0x12e   :  { %v174_v61 = vmul.f32 %v5614_v39, %v159_v60 }
 0x130   :  { %v5646_v62 = vsub.f32 %v5606_v28, %v174_v61 }
 0x132   :  { %v186_v63 = vmul.f32 %v5646_v62, %v5646_v62 }
 0x134   :  { %v200_v0 = vsel %vm144_vm1, %v186_v63, 0.0 }
 0x135   :  { %v162_v1 = vpop.xlane.xlu2 %161  ;;  %201 = vadd.xlane.f32.xlu1 %v200_v0 }
 0x136   :  { %v175_v2 = vmul.f32 %v5614_v39, %v162_v1 }
 0x138   :  { %v5653_v3 = vsub.f32 %v5610_v31, %v175_v2 }
 0x13a   :  { %v187_v4 = vmul.f32 %v5653_v3, %v5653_v3 }
 0x13c   :  { %v203_v5 = vsel %vm144_vm1, %v187_v4, 0.0 }
 0x13d   :  { %204 = vadd.xlane.f32.xlu2 %v203_v5 }
 0x188   :  { %v190_v26 = vpop.xlane.xlu0 %189 }
 0x189   :  { %v206_v27 = vmul.f32 %v190_v26, %v5614_v39  ;;  %v478_v26 = vld [vmem:[%s7748_s7 + $0x10] sm:$0xff] }
 0x18a   :  { %505 = vmatpush.msrb.mxu2 %v478_v26  ;;  %v647_v26 = vld [vmem:[%s7749_s8 + $0x78] sm:$0xff] }
 0x18b   :  { %v212_v29 = vadd.f32 1e-05, %v206_v27  ;;  %v482_v27 = vld [vmem:[%s7748_s7 + $0x30] sm:$0xff] }
 0x18c   :  { %540 = vmatpush.msrb.mxu3 %v482_v27  ;;  %v646_v27 = vld [vmem:[%s7749_s8 + $0x70] sm:$0xff] }
 0x18d   :  { %5134 = vrsqrt.f32 %v212_v29  ;;  %vm224_vm4 = vweird.f32 %v212_v29 }
 0x190   :  { %v193_v30 = vpop.xlane.xlu1 %192 }
 0x191   :  { %v207_v32 = vmul.f32 %v193_v30, %v5614_v39 }
 0x193   :  { %v5135_v33 = vpop.eup %5134  ;;  %v213_v34 = vadd.f32 1e-05, %v207_v32  ;;  %v315_v32 = vld [vmem:[%s7747_s6 + $0x68] sm:$0xff] }
 0x194   :  { %v219_v35 = vmul.f32 %v5135_v33, %v212_v29  ;;  %vm225_vm3 = vweird.f32 %v5135_v33  ;;  %455 = vmatpush.msrb.mxu1 %v315_v32 }
 0x195   :  { %5136 = vrsqrt.f32 %v213_v34  ;;  %vm226_vm5 = vmor %vm224_vm4, %vm225_vm3  ;;  %vm234_vm7 = vweird.f32 %v213_v34 }
 0x196   :  { %v220_v36 = vmul.f32 %v5135_v33, %v219_v35 }
 0x198   :  { %v221_v37 = vmul.f32 0.5, %v220_v36  ;;  %v196_v38 = vpop.xlane.xlu2 %195  ;;  %v481_v36 = vld [vmem:[%s7748_s7 + $0x28] sm:$0xff] }
 0x199   :  { %v208_v40 = vmul.f32 %v196_v38, %v5614_v39  ;;  %541 = vmatpush.msrb.mxu3 %v481_v36 }
 0x19a   :  { %v222_v41 = vsub.f32 1.5, %v221_v37  ;;  %v641_v37 = vld [vmem:[%s7749_s8 + $0x48] sm:$0xff] }
 0x19b   :  { %v5137_v43 = vpop.eup %5136  ;;  %v214_v44 = vadd.f32 1e-05, %v208_v40  ;;  %v480_v40 = vld [vmem:[%s7748_s7 + $0x20] sm:$0xff] }
 0x19c   :  { %v223_v45 = vmul.f32 %v5135_v33, %v222_v41  ;;  %v229_v46 = vmul.f32 %v5137_v43, %v213_v34  ;;  %vm235_vm6 = vweird.f32 %v5137_v43  ;;  %542 = vmatpush.msrb.mxu3 %v480_v40 }
 0x19d   :  { %5138 = vrsqrt.f32 %v214_v44  ;;  %vm236_vm8 = vmor %vm234_vm7, %vm235_vm6  ;;  %vm244_vm10 = vweird.f32 %v214_v44  ;;  %vm788_vm7 = vcmask 64512  }
 0x19e   :  { %v227_v49 = vsel %vm226_vm5, %v5135_v33, %v223_v45  ;;  %v230_v50 = vmul.f32 %v5137_v43, %v229_v46  ;;  %v477_v33 = vld [vmem:[%s7748_s7 + $0x8] sm:$0xff] }
 0x19f   :  { %v278_v53 = vmul.f32 %v227_v49, %v5618_v42  ;;  %506 = vmatpush.msrb.mxu2 %v477_v33  ;;  %v314_v49 = vld [vmem:[%s7747_s6 + $0x60] sm:$0xff] }
 0x1a0   :  { %v231_v54 = vmul.f32 0.5, %v230_v50  ;;  %v199_v55 = vpop.xlane.xlu0 %198  ;;  %v476_v50 = vld [vmem:[%s7748_s7] sm:$0xff]  ;;  %456 = vmatpush.msrb.mxu1 %v314_v49 }
 0x1a1   :  { %v287_v56 = vmul.f32 %v5712_v48, %v278_v53  ;;  %v209_v58 = vmul.f32 %v199_v55, %v5614_v39  ;;  %v640_v53 = vld [vmem:[%s7749_s8 + $0x40] sm:$0xff]  ;;  %507 = vmatpush.msrb.mxu2 %v476_v50 }
 0x1a2   :  { %v232_v59 = vsub.f32 1.5, %v231_v54 }
 0x1a3   :  { %v5139_v60 = vpop.eup %5138  ;;  %v5723_v61 = vadd.f32 %v5717_v51, %v287_v56  ;;  %v5725_v63 = vadd.f32 1e-05, %v209_v58 }
 0x1a4   :  { %v233_v0 = vmul.f32 %v5137_v43, %v232_v59  ;;  %v239_v1 = vmul.f32 %v5139_v60, %v214_v44  ;;  %vm245_vm9 = vweird.f32 %v5139_v60 }
 0x1a5   :  { %5140 = vrsqrt.f32 %v5725_v63  ;;  %4676 = vmatmul.msk.f32.vlgmr.msra.gmra.mxu1 %vm144_vm1, %v5723_v61  ;;  %4682 = vmatmul.msk.f32.vlgmr.msra.gmra.mxu2 %vm144_vm1, %v5723_v61  ;;  %vm246_vm11 = vmor %vm244_vm10, %vm245_vm9  ;;  %vm254_vm13 = vweird.f32 %v5725_v63  ;;  %vm1189_vm9 = vcmask 195584  }
 0x1a6   :  { %v237_v42 = vsel %vm236_vm8, %v5137_v43, %v233_v0  ;;  %v240_v2 = vmul.f32 %v5139_v60, %v239_v1  ;;  %4688 = vmatmul.msk.f32.vlgmr.msra.gmra.mxu3 %vm144_vm1, %v5723_v61  ;;  %4712 = vmatmul.msk.f32.vlgmr.msrb.gmra.mxu0 %vm144_vm1, %v5723_v61 }
 0x1a7   :  { %v279_v4 = vmul.f32 %v237_v42, %v5625_v47 }
 0x1a8   :  { %v241_v5 = vmul.f32 0.5, %v240_v2  ;;  %v202_v6 = vpop.xlane.xlu1 %201 }
 0x1a9   :  { %v288_v7 = vmul.f32 %v5712_v48, %v279_v4  ;;  %v210_v8 = vmul.f32 %v202_v6, %v5614_v39 }
 0x1aa   :  { %v242_v9 = vsub.f32 1.5, %v241_v5 }
 0x1ab   :  { %v5739_v10 = vpop.eup %5140  ;;  %v5742_v11 = vadd.f32 %v5717_v51, %v288_v7  ;;  %v5744_v12 = vadd.f32 1e-05, %v210_v8 }
 0x1ac   :  { %v243_v47 = vmul.f32 %v5139_v60, %v242_v9  ;;  %v249_v15 = vmul.f32 %v5739_v10, %v5725_v63  ;;  %vm255_vm12 = vweird.f32 %v5739_v10 }
 0x1ad   :  { %5142 = vrsqrt.f32 %v5744_v12  ;;  %4677 = vmatmul.msk.f32.gmra.mxu1 %vm144_vm1, %v5742_v11  ;;  %4683 = vmatmul.msk.f32.gmra.mxu2 %vm144_vm1, %v5742_v11  ;;  %vm256_vm14 = vmor %vm254_vm13, %vm255_vm12  ;;  %vm264_vm2 = vweird.f32 %v5744_v12 }
 0x1ae   :  { %v247_v16 = vsel %vm246_vm11, %v5139_v60, %v243_v47  ;;  %v250_v17 = vmul.f32 %v5739_v10, %v249_v15  ;;  %4689 = vmatmul.msk.f32.gmra.mxu3 %vm144_vm1, %v5742_v11  ;;  %4713 = vmatmul.msk.f32.gmra.mxu0 %vm144_vm1, %v5742_v11  ;;  %v490_v47 = vld [vmem:[%s7748_s7 + $0x70] sm:$0xff] }
 0x1af   :  { %v280_v23 = vmul.f32 %v247_v16, %v5632_v52  ;;  %v642_v52 = vld [vmem:[%s7749_s8 + $0x50] sm:$0xff] }
 0x1b0   :  { %v251_v29 = vmul.f32 0.5, %v250_v17  ;;  %v205_v30 = vpop.xlane.xlu2 %204  ;;  %731 = vmatpush.msra.mxu0 %v642_v52  ;;  %v634_v15 = vld [vmem:[%s7749_s8 + $0x10] sm:$0xff]  ;;  %v489_v17 = vld [vmem:[%s7748_s7 + $0x68] sm:$0xff] }
 0x1b1   :  { %v289_v34 = vmul.f32 %v5712_v48, %v280_v23  ;;  %v211_v35 = vmul.f32 %v205_v30, %v5614_v39  ;;  %v638_v16 = vld [vmem:[%s7749_s8 + $0x30] sm:$0xff]  ;;  %v632_v23 = vld [vmem:[%s7749_s8] sm:$0xff] }
 0x1b2   :  { %v252_v38 = vsub.f32 1.5, %v251_v29  ;;  %732 = vmatpush.msra.mxu0 %v641_v37  ;;  %v645_v29 = vld [vmem:[%s7749_s8 + $0x68] sm:$0xff]  ;;  %v644_v30 = vld [vmem:[%s7749_s8 + $0x60] sm:$0xff] }
 0x1b3   :  { %v5143_v41 = vpop.eup %5142  ;;  %v5802_v43 = vadd.f32 %v5717_v51, %v289_v34  ;;  %v217_v44 = vadd.f32 1e-05, %v211_v35 }
 0x1b4   :  { %v253_v45 = vmul.f32 %v5739_v10, %v252_v38  ;;  %v259_v46 = vmul.f32 %v5143_v41, %v5744_v12  ;;  %733 = vmatpush.msra.mxu0 %v640_v53  ;;  %vm265_vm15 = vweird.f32 %v5143_v41 }
 0x1b5   :  { %5144 = vrsqrt.f32 %v217_v44  ;;  %4678 = vmatmul.msk.f32.gmra.mxu1 %vm144_vm1, %v5802_v43  ;;  %4684 = vmatmul.msk.f32.gmra.mxu2 %vm144_vm1, %v5802_v43  ;;  %vm266_vm3 = vmor %vm264_vm2, %vm265_vm15  ;;  %vm274_vm5 = vweird.f32 %v217_v44 }
 0x1b6   :  { %v257_v54 = vsel %vm256_vm14, %v5739_v10, %v253_v45  ;;  %v260_v55 = vmul.f32 %v5143_v41, %v259_v46  ;;  %4690 = vmatmul.msk.f32.gmra.mxu3 %vm144_vm1, %v5802_v43  ;;  %4714 = vmatmul.msk.f32.gmra.mxu0 %vm144_vm1, %v5802_v43 }
 0x1b7   :  { %v281_v56 = vmul.f32 %v257_v54, %v5639_v57 }
 0x1b8   :  { %v261_v58 = vmul.f32 0.5, %v260_v55 }
 0x1b9   :  { %v290_v59 = vmul.f32 %v5712_v48, %v281_v56 }
 0x1ba   :  { %v262_v60 = vsub.f32 1.5, %v261_v58 }
 0x1bb   :  { %v5145_v63 = vpop.eup %5144  ;;  %v5830_v0 = vadd.f32 %v5717_v51, %v290_v59 }
 0x1bc   :  { %v263_v1 = vmul.f32 %v5143_v41, %v262_v60  ;;  %v269_v42 = vmul.f32 %v5145_v63, %v217_v44  ;;  %vm275_vm4 = vweird.f32 %v5145_v63 }
 0x1bd   :  { %4679 = vmatmul.msk.f32.gmra.mxu1 %vm144_vm1, %v5830_v0  ;;  %4685 = vmatmul.msk.f32.gmra.mxu2 %vm144_vm1, %v5830_v0  ;;  %vm276_vm6 = vmor %vm274_vm5, %vm275_vm4 }
 0x1be   :  { %v267_v57 = vsel %vm266_vm3, %v5143_v41, %v263_v1  ;;  %v270_v2 = vmul.f32 %v5145_v63, %v269_v42  ;;  %4691 = vmatmul.msk.f32.gmra.mxu3 %vm144_vm1, %v5830_v0  ;;  %4715 = vmatmul.msk.f32.gmra.mxu0 %vm144_vm1, %v5830_v0 }
 0x1bf   :  { %v282_v4 = vmul.f32 %v267_v57, %v5646_v62 }
 0x1c0   :  { %v271_v5 = vmul.f32 0.5, %v270_v2 }
 0x1c1   :  { %v291_v6 = vmul.f32 %v5712_v48, %v282_v4 }
 0x1c2   :  { %v272_v7 = vsub.f32 1.5, %v271_v5 }
 0x1c3   :  { %v5844_v8 = vadd.f32 %v5717_v51, %v291_v6 }
 0x1c4   :  { %v273_v9 = vmul.f32 %v5145_v63, %v272_v7 }
 0x1c5   :  { %4680 = vmatmul.msk.f32.gmra.mxu1 %vm144_vm1, %v5844_v8  ;;  %4686 = vmatmul.msk.f32.gmra.mxu2 %vm144_vm1, %v5844_v8 }
 0x1c6   :  { %v277_v10 = vsel %vm276_vm6, %v5145_v63, %v273_v9  ;;  %4692 = vmatmul.msk.f32.gmra.mxu3 %vm144_vm1, %v5844_v8  ;;  %4716 = vmatmul.msk.f32.gmra.mxu0 %vm144_vm1, %v5844_v8 }
 0x1c7   :  { %v283_v62 = vmul.f32 %v277_v10, %v5653_v3  ;;  %v491_v3 = vld [vmem:[%s7748_s7 + $0x78] sm:$0xff] }
 0x1c8   :  { %609 = vmatpush.msra.mxu1 %v491_v3 }
 0x1c9   :  { %v292_v12 = vmul.f32 %v5712_v48, %v283_v62  ;;  %v635_v48 = vld [vmem:[%s7749_s8 + $0x18] sm:$0xff] }
 0x1ca   :  { %660 = vmatpush.msra.mxu2 %v635_v48  ;;  %610 = vmatpush.msra.mxu1 %v490_v47 }
 0x1cb   :  { %v5857_v13 = vadd.f32 %v5717_v51, %v292_v12  ;;  %v639_v51 = vld [vmem:[%s7749_s8 + $0x38] sm:$0xff] }
 0x1cc   :  { %695 = vmatpush.msra.mxu3 %v639_v51  ;;  %661 = vmatpush.msra.mxu2 %v634_v15 }
 0x1cd   :  { %4681 = vmatmul.msk.f32.gmra.mxu1 %vm144_vm1, %v5857_v13  ;;  %4687 = vmatmul.msk.f32.gmra.mxu2 %vm144_vm1, %v5857_v13 }
 0x1ce   :  { %4693 = vmatmul.msk.f32.gmra.mxu3 %vm144_vm1, %v5857_v13  ;;  %4717 = vmatmul.msk.f32.gmra.mxu0 %vm144_vm1, %v5857_v13 }
 0x1cf   :  { %696 = vmatpush.msra.mxu3 %v638_v16  ;;  %611 = vmatpush.msra.mxu1 %v489_v17 }
 0x1d0   :  { %662 = vmatpush.msra.mxu2 %v633_v19 }
 0x1d1   :  { %697 = vmatpush.msra.mxu3 %v637_v20  ;;  %612 = vmatpush.msra.mxu1 %v488_v21 }
 0x1d2   :  { %663 = vmatpush.msra.mxu2 %v632_v23 }
 0x1d3   :  { %698 = vmatpush.msra.mxu3 %v636_v24 }
 0x1d5   :  { %4694 = vmatmul.msk.f32.vlgmr.msrb.gmra.mxu1 %vm144_vm1, %v5723_v61  ;;  %4700 = vmatmul.msk.f32.vlgmr.msrb.gmra.mxu2 %vm144_vm1, %v5723_v61 }
 0x1d6   :  { %4706 = vmatmul.msk.f32.vlgmr.msrb.gmra.mxu3 %vm144_vm1, %v5723_v61  ;;  %4736 = vmatmul.msk.f32.vlgmr.msra.gmra.mxu0 %vm144_vm1, %v5723_v61 }
 0x1d7   :  { %765 = vmatpush.msrb.mxu1 %v647_v26 }
 0x1d9   :  { %766 = vmatpush.msrb.mxu1 %v646_v27 }
 0x1db   :  { %767 = vmatpush.msrb.mxu1 %v645_v29 }
 0x1dd   :  { %4695 = vmatmul.msk.f32.gmra.mxu1 %vm144_vm1, %v5742_v11  ;;  %4701 = vmatmul.msk.f32.gmra.mxu2 %vm144_vm1, %v5742_v11 }
 0x1de   :  { %4707 = vmatmul.msk.f32.gmra.mxu3 %vm144_vm1, %v5742_v11  ;;  %4737 = vmatmul.msk.f32.gmra.mxu0 %vm144_vm1, %v5742_v11 }
 0x1df   :  { %768 = vmatpush.msrb.mxu1 %v644_v30 }
 0x1e5   :  { %4696 = vmatmul.msk.f32.gmra.mxu1 %vm144_vm1, %v5802_v43  ;;  %4702 = vmatmul.msk.f32.gmra.mxu2 %vm144_vm1, %v5802_v43 }
 0x1e6   :  { %4708 = vmatmul.msk.f32.gmra.mxu3 %vm144_vm1, %v5802_v43  ;;  %4738 = vmatmul.msk.f32.gmra.mxu0 %vm144_vm1, %v5802_v43 }
 0x1ed   :  { %4697 = vmatmul.msk.f32.gmra.mxu1 %vm144_vm1, %v5830_v0  ;;  %4703 = vmatmul.msk.f32.gmra.mxu2 %vm144_vm1, %v5830_v0 }
 0x1ee   :  { %4709 = vmatmul.msk.f32.gmra.mxu3 %vm144_vm1, %v5830_v0  ;;  %4739 = vmatmul.msk.f32.gmra.mxu0 %vm144_vm1, %v5830_v0 }
 0x1f5   :  { %4698 = vmatmul.msk.f32.gmra.mxu1 %vm144_vm1, %v5844_v8  ;;  %4704 = vmatmul.msk.f32.gmra.mxu2 %vm144_vm1, %v5844_v8 }
 0x1f6   :  { %4710 = vmatmul.msk.f32.gmra.mxu3 %vm144_vm1, %v5844_v8  ;;  %4740 = vmatmul.msk.f32.gmra.mxu0 %vm144_vm1, %v5844_v8 }
 0x1fd   :  { %4699 = vmatmul.msk.f32.gmra.mxu1 %vm144_vm1, %v5857_v13  ;;  %4705 = vmatmul.msk.f32.gmra.mxu2 %vm144_vm1, %v5857_v13 }
 0x1fe   :  { %4711 = vmatmul.msk.f32.gmra.mxu3 %vm144_vm1, %v5857_v13  ;;  %4741 = vmatmul.msk.f32.gmra.mxu0 %vm144_vm1, %v5857_v13 }
 0x205   :  { %4718 = vmatmul.msk.f32.vlgmr.msra.gmra.mxu1 %vm144_vm1, %v5723_v61  ;;  %4724 = vmatmul.msk.f32.vlgmr.msra.gmra.mxu2 %vm144_vm1, %v5723_v61 }
 0x206   :  { %4730 = vmatmul.msk.f32.vlgmr.msra.gmra.mxu3 %vm144_vm1, %v5723_v61 }
 0x20d   :  { %4719 = vmatmul.msk.f32.gmra.mxu1 %vm144_vm1, %v5742_v11  ;;  %4725 = vmatmul.msk.f32.gmra.mxu2 %vm144_vm1, %v5742_v11 }
 0x20e   :  { %4731 = vmatmul.msk.f32.gmra.mxu3 %vm144_vm1, %v5742_v11 }
 0x215   :  { %4720 = vmatmul.msk.f32.gmra.mxu1 %vm144_vm1, %v5802_v43  ;;  %4726 = vmatmul.msk.f32.gmra.mxu2 %vm144_vm1, %v5802_v43 }
 0x216   :  { %4732 = vmatmul.msk.f32.gmra.mxu3 %vm144_vm1, %v5802_v43 }
 0x21d   :  { %4721 = vmatmul.msk.f32.gmra.mxu1 %vm144_vm1, %v5830_v0  ;;  %4727 = vmatmul.msk.f32.gmra.mxu2 %vm144_vm1, %v5830_v0 }
 0x21e   :  { %4733 = vmatmul.msk.f32.gmra.mxu3 %vm144_vm1, %v5830_v0 }
 0x222   :  { %v353_v52 = vpop.f32.mrf.mxu1 }
 0x223   :  { %v6015_v44 = vpop.f32.mrf.mxu0 }
 0x225   :  { %4722 = vmatmul.msk.f32.gmra.mxu1 %vm144_vm1, %v5844_v8  ;;  %4728 = vmatmul.msk.f32.gmra.mxu2 %vm144_vm1, %v5844_v8 }
 0x226   :  { %4734 = vmatmul.msk.f32.gmra.mxu3 %vm144_vm1, %v5844_v8 }
 0x228   :  { %v388_v32 = vpop.f32.mrf.mxu2 }
 0x229   :  { %v5993_v33 = vpop.f32.mrf.mxu3 }
 0x22a   :  { %v356_v34 = vpop.f32.mrf.mxu1 }
 0x22b   :  { %v6027_v53 = vpop.f32.mrf.mxu0 }
 0x22d   :  { %4723 = vmatmul.msk.f32.gmra.mxu1 %vm144_vm1, %v5857_v13  ;;  %4729 = vmatmul.msk.f32.gmra.mxu2 %vm144_vm1, %v5857_v13 }
 0x22e   :  { %4735 = vmatmul.msk.f32.gmra.mxu3 %vm144_vm1, %v5857_v13 }
 0x230   :  { %v391_v35 = vpop.f32.mrf.mxu2 }
 0x231   :  { %v6001_v36 = vpop.f32.mrf.mxu3 }
 0x232   :  { %v6003_v37 = vpop.f32.mrf.mxu1 }
 0x233   :  { %v585_v58 = vpop.f32.mrf.mxu0 }
 0x235   :  { %4742 = vmatmul.msk.f32.vlgmr.msrb.gmra.mxu1 %vm144_vm1, %v5723_v61 }
 0x238   :  { %v6007_v38 = vpop.f32.mrf.mxu2 }
 0x239   :  { %v6009_v40 = vpop.f32.mrf.mxu3 }
 0x23a   :  { %v6011_v41 = vpop.f32.mrf.mxu1 }
 0x23b   :  { %v588_v63 = vpop.f32.mrf.mxu0 }
 0x23d   :  { %4743 = vmatmul.msk.f32.gmra.mxu1 %vm144_vm1, %v5742_v11 }
 0x240   :  { %v6017_v45 = vpop.f32.mrf.mxu2 }
 0x241   :  { %v432_v46 = vpop.f32.mrf.mxu3 }
 0x242   :  { %v6019_v49 = vpop.f32.mrf.mxu1 }
 0x243   :  { %v591_v57 = vpop.f32.mrf.mxu0 }
 0x245   :  { %4744 = vmatmul.msk.f32.gmra.mxu1 %vm144_vm1, %v5802_v43 }
 0x248   :  { %v6023_v61 = vpop.f32.mrf.mxu2 }
 0x249   :  { %v6025_v50 = vpop.f32.mrf.mxu3 }
 0x24a   :  { %v6029_v54 = vpop.f32.mrf.mxu1 }
 0x24d   :  { %4745 = vmatmul.msk.f32.gmra.mxu1 %vm144_vm1, %v5830_v0 }
 0x250   :  { %v6033_v11 = vpop.f32.mrf.mxu2 }
 0x251   :  { %v6035_v55 = vpop.f32.mrf.mxu3 }
 0x252   :  { %v6037_v56 = vpop.f32.mrf.mxu1 }
 0x255   :  { %4746 = vmatmul.msk.f32.gmra.mxu1 %vm144_vm1, %v5844_v8  ;;  %v594_v8 = vpop.f32.mrf.mxu0 }
 0x258   :  { %v509_v43 = vpop.f32.mrf.mxu2 }
 0x259   :  { %v544_v59 = vpop.f32.mrf.mxu3 }
 0x25a   :  { %v6041_v60 = vpop.f32.mrf.mxu1 }
 0x25d   :  { %4747 = vmatmul.msk.f32.gmra.mxu1 %vm144_vm1, %v5857_v13  ;;  %v735_v51 = vpop.f32.mrf.mxu0 }
 0x260   :  { %v512_v1 = vpop.f32.mrf.mxu2 }
 0x261   :  { %v547_v0 = vpop.f32.mrf.mxu3 }
 0x262   :  { %v6045_v42 = vpop.f32.mrf.mxu1 }
 0x265   :  { %v738_v17 = vpop.f32.mrf.mxu0 }
 0x268   :  { %v515_v2 = vpop.f32.mrf.mxu2 }
 0x269   :  { %v550_v4 = vpop.f32.mrf.mxu3  ;;  %4748 = vmatpush.xpose.msk.msrb.mxu2 %vm788_vm7, %v515_v2 }
 0x26a   :  { %4760 = vmatpush.xpose.msk.msrb.mxu0 %vm788_vm7, %v550_v4  ;;  %v6049_v5 = vpop.f32.mrf.mxu1 }
 0x26d   :  { %4749 = vmatpush.xpose.msk.msrb.mxu2 %vm788_vm7, %v512_v1  ;;  %v741_v23 = vpop.f32.mrf.mxu0 }
 0x26e   :  { %4761 = vmatpush.xpose.msk.msrb.mxu0 %vm788_vm7, %v547_v0 }
 0x270   :  { %v518_v6 = vpop.f32.mrf.mxu2 }
 0x271   :  { %v553_v7 = vpop.f32.mrf.mxu3  ;;  %4750 = vmatpush.xpose.msk.msrb.mxu2 %vm788_vm7, %v509_v43 }
 0x272   :  { %4762 = vmatpush.xpose.msk.msrb.mxu0 %vm788_vm7, %v544_v59  ;;  %v6055_v9 = vpop.f32.mrf.mxu1 }
 0x274   :  { %4751 = vmatmul.msk.f32.vlgmr.msrb.gmra.mxu2 %vm788_vm7, %v353_v52 }
 0x275   :  { %5110 = vmatpush.xpose.msk.msra.mxu2 %vm788_vm7, %v550_v4  ;;  %4763 = vmatmul.msk.f32.vlgmr.msrb.gmra.mxu0 %vm788_vm7, %v388_v32  ;;  %v744_v30 = vpop.f32.mrf.mxu0 }
 0x276   :  { %4778 = vmatpush.xpose.msk.msra.mxu0 %vm788_vm7, %v594_v8 }
 0x278   :  { %v521_v10 = vpop.f32.mrf.mxu2 }
 0x279   :  { %5111 = vmatpush.xpose.msk.msra.mxu2 %vm788_vm7, %v547_v0  ;;  %v556_v62 = vpop.f32.mrf.mxu3 }
 0x27a   :  { %4779 = vmatpush.xpose.msk.msra.mxu0 %vm788_vm7, %v591_v57  ;;  %v6063_v12 = vpop.f32.mrf.mxu1 }
 0x27c   :  { %4752 = vmatmul.msk.f32.gmra.mxu2 %vm788_vm7, %v356_v34 }
 0x27d   :  { %5112 = vmatpush.xpose.msk.msra.mxu2 %vm788_vm7, %v544_v59  ;;  %4764 = vmatmul.msk.f32.gmra.mxu0 %vm788_vm7, %v391_v35 }
 0x27e   :  { %4780 = vmatpush.xpose.msk.msra.mxu0 %vm788_vm7, %v588_v63 }
 0x280   :  { %v524_v13 = vpop.f32.mrf.mxu2 }
 0x281   :  { %v559_v3 = vpop.f32.mrf.mxu3  ;;  %4754 = vmatpush.xpose.msk.msrb.mxu3 %vm788_vm7, %v524_v13 }
 0x282   :  { %4766 = vmatpush.xpose.msk.msrb.mxu2 %vm788_vm7, %v559_v3  ;;  %v614_v48 = vpop.f32.mrf.mxu1 }
 0x284   :  { %4753 = vmatmul.msk.f32.gmra.mxu2 %vm788_vm7, %v6003_v37 }
 0x285   :  { %4781 = vmatmul.msk.f32.vlgmr.msra.gmra.mxu0 %vm788_vm7, %v432_v46  ;;  %4755 = vmatpush.xpose.msk.msrb.mxu3 %vm788_vm7, %v521_v10 }
 0x286   :  { %4767 = vmatpush.xpose.msk.msrb.mxu2 %vm788_vm7, %v556_v62 }
 0x288   :  { %v665_v47 = vpop.f32.mrf.mxu2 }
 0x289   :  { %v700_v15 = vpop.f32.mrf.mxu3  ;;  %4756 = vmatpush.xpose.msk.msrb.mxu3 %vm788_vm7, %v518_v6 }
 0x28a   :  { %4768 = vmatpush.xpose.msk.msrb.mxu2 %vm788_vm7, %v553_v7  ;;  %v617_v16 = vpop.f32.mrf.mxu1 }
 0x28c   :  { %4757 = vmatmul.msk.f32.vlgmr.msrb.gmra.mxu3 %vm788_vm7, %v6011_v41  ;;  %4765 = vmatmul.msk.f32.vlgmr.msra.gmra.mxu2 %vm788_vm7, %v6007_v38  ;;  %v747_v38 = vpop.f32.mrf.mxu0 }
 0x28d   :  { %4772 = vmatpush.xpose.msk.msra.mxu3 %vm788_vm7, %v585_v58  ;;  %4782 = vmatmul.msk.f32.gmra.mxu0 %vm788_vm7, %v6025_v50  ;;  %v138_v50 = vlaneseq }
 0x290   :  { %v668_v19 = vpop.f32.mrf.mxu2 }
 0x291   :  { %4773 = vmatpush.xpose.msk.msra.mxu3 %vm788_vm7, %v6027_v53  ;;  %v703_v20 = vpop.f32.mrf.mxu3  ;;  %v139_v53 = vand.u32 127, %v138_v50 }
 0x292   :  { %v620_v21 = vpop.f32.mrf.mxu1 }
 0x293   :  { %4784 = vmatpush.xpose.msk.msra.mxu1 %vm788_vm7, %v620_v21  ;;  %vm140_vm8 = vcmp.lt.s32.totalorder %v139_v53, 17 }
 0x294   :  { %4758 = vmatmul.msk.f32.gmra.mxu3 %vm788_vm7, %v6019_v49  ;;  %4769 = vmatmul.msk.f32.vlgmr.msrb.gmra.mxu2 %vm788_vm7, %v6017_v45  ;;  %v750_v45 = vpop.f32.mrf.mxu0 }
 0x295   :  { %4774 = vmatpush.xpose.msk.msra.mxu3 %vm788_vm7, %v6015_v44  ;;  %4783 = vmatmul.msk.f32.gmra.mxu0 %vm788_vm7, %v6035_v55 }
 0x297   :  { %4785 = vmatpush.xpose.msk.msra.mxu1 %vm788_vm7, %v617_v16 }
 0x298   :  { %v671_v24 = vpop.f32.mrf.mxu2 }
 0x299   :  { %v706_v26 = vpop.f32.mrf.mxu3  ;;  %1476 = vmatpush.msrb.mxu3 %v671_v24 }
 0x29a   :  { %v623_v27 = vpop.f32.mrf.mxu1 }
 0x29b   :  { %4786 = vmatpush.xpose.msk.msra.mxu1 %vm788_vm7, %v614_v48  ;;  %1477 = vmatpush.msrb.mxu3 %v668_v19 }
 0x29c   :  { %4759 = vmatmul.msk.f32.gmra.mxu3 %vm788_vm7, %v6029_v54  ;;  %4770 = vmatmul.msk.f32.gmra.mxu2 %vm788_vm7, %v6023_v61 }
 0x29d   :  { %1478 = vmatpush.msrb.mxu3 %v665_v47 }
 0x29e   :  { %4787 = vmatmul.msk.f32.vlgmr.msra.gmra.mxu1 %vm788_vm7, %v6037_v56 }
 0x29f   :  { %1546 = vmatpush.msrb.mxu1 %v706_v26 }
 0x2a0   :  { %v674_v29 = vpop.f32.mrf.mxu2 }
 0x2a1   :  { %1547 = vmatpush.msrb.mxu1 %v703_v20  ;;  %v709_v52 = vpop.f32.mrf.mxu3 }
 0x2a2   :  { %v626_v32 = vpop.f32.mrf.mxu1 }
 0x2a3   :  { %1548 = vmatpush.msrb.mxu1 %v700_v15 }
 0x2a4   :  { %4771 = vmatmul.msk.f32.gmra.mxu2 %vm788_vm7, %v6033_v11  ;;  %4775 = vmatmul.msk.f32.vlgmr.msra.gmra.mxu3 %vm788_vm7, %v5993_v33  ;;  %v5427_v11 = vmov -1e+30  }
 0x2a5   :  { %1616 = vmatpush.msra.mxu3 %v741_v23  ;;  %v6125_v55 = vsel %vm140_vm8, 0.0, %v5427_v11 }
 0x2a6   :  { %4788 = vmatmul.msk.f32.gmra.mxu1 %vm788_vm7, %v6041_v60 }
 0x2a7   :  { %1617 = vmatpush.msra.mxu3 %v738_v17 }
 0x2a8   :  { %v677_v34 = vpop.f32.mrf.mxu2 }
 0x2a9   :  { %v712_v35 = vpop.f32.mrf.mxu3  ;;  %1618 = vmatpush.msra.mxu3 %v735_v51 }
 0x2aa   :  { %v629_v37 = vpop.f32.mrf.mxu1 }
 0x2ab   :  { %4790 = vmatpush.xpose.msk.msra.mxu2 %vm788_vm7, %v629_v37 }
 0x2ac   :  { %4776 = vmatmul.msk.f32.gmra.mxu3 %vm788_vm7, %v6001_v36 }
 0x2ae   :  { %4789 = vmatmul.msk.f32.gmra.mxu1 %vm788_vm7, %v6045_v42 }
 0x2af   :  { %4791 = vmatpush.xpose.msk.msra.mxu2 %vm788_vm7, %v626_v32 }
 0x2b0   :  { %v680_v33 = vpop.f32.mrf.mxu2 }
 0x2b1   :  { %1511 = vmatpush.msrb.mxu0 %v680_v33  ;;  %v715_v44 = vpop.f32.mrf.mxu3 }
 0x2b2   :  { %v770_v41 = vpop.f32.mrf.mxu1 }
 0x2b3   :  { %4792 = vmatpush.xpose.msk.msra.mxu2 %vm788_vm7, %v623_v27  ;;  %1512 = vmatpush.msrb.mxu0 %v677_v34 }
 0x2b4   :  { %4777 = vmatmul.msk.f32.gmra.mxu3 %vm788_vm7, %v6009_v40 }
 0x2b5   :  { %1513 = vmatpush.msrb.mxu0 %v674_v29 }
 0x2b6   :  { %4793 = vmatmul.msk.f32.vlgmr.msra.gmra.mxu2 %vm788_vm7, %v6049_v5 }
 0x2b7   :  { %1581 = vmatpush.msrb.mxu2 %v715_v44  ;;  %1651 = vmatpush.msra.mxu0 %v750_v45 }
 0x2b9   :  { %1582 = vmatpush.msrb.mxu2 %v712_v35  ;;  %1652 = vmatpush.msra.mxu0 %v747_v38 }
 0x2ba   :  { %v773_v36 = vpop.f32.mrf.mxu1 }
 0x2bb   :  { %1583 = vmatpush.msrb.mxu2 %v709_v52  ;;  %1653 = vmatpush.msra.mxu0 %v744_v30 }
 0x2be   :  { %4794 = vmatmul.msk.f32.gmra.mxu2 %vm788_vm7, %v6055_v9 }
 0x2c2   :  { %v776_v46 = vpop.f32.mrf.mxu1 }
 0x2c3   :  { %1686 = vmatpush.msra.mxu1 %v776_v46 }
 0x2c5   :  { %1687 = vmatpush.msra.mxu1 %v773_v36 }
 0x2c6   :  { %4795 = vmatmul.msk.f32.gmra.mxu2 %vm788_vm7, %v6063_v12 }
 0x2c7   :  { %1688 = vmatpush.msra.mxu1 %v770_v41 }
 0x2ca   :  { %v779_v40 = vpop.f32.mrf.mxu1 }
 0x2d2   :  { %v782_v49 = vpop.f32.mrf.mxu1 }
 0x2da   :  { %v785_v61 = vpop.f32.mrf.mxu1 }
 0x2db   :  { %1721 = vmatpush.msra.mxu2 %v785_v61 }
 0x2dd   :  { %1722 = vmatpush.msra.mxu2 %v782_v49 }
 0x2df   :  { %1723 = vmatpush.msra.mxu2 %v779_v40 }
 0x2f2   :  { %v912_v54 = vpop.f32.mrf.mxu0 }
 0x2f3   :  { %v1147_v56 = vmul.f32 0.17677669, %v912_v54 }
 0x2f5   :  { %v6128_v58 = vadd.f32 %v1147_v56, %v6125_v55 }
 0x2f7   :  { %v1208_v43 = vsel %vm1189_vm9, %v6128_v58, -inf  ;;  %v824_v59 = vpop.f32.mrf.mxu2 }
 0x2f8   :  { %1209 = vmax.xlane.f32.xlu1 %v1208_v43  ;;  %v1141_v60 = vmul.f32 0.17677669, %v824_v59 }
 0x2fa   :  { %v915_v63 = vpop.f32.mrf.mxu0  ;;  %v6133_v1 = vadd.f32 %v1141_v60, %v6125_v55 }
 0x2fb   :  { %v1148_v0 = vmul.f32 0.17677669, %v915_v63 }
 0x2fc   :  { %v1190_v42 = vsel %vm1189_vm9, %v6133_v1, -inf }
 0x2fd   :  { %1191 = vmax.xlane.f32.xlu0 %v1190_v42  ;;  %v6138_v4 = vadd.f32 %v1148_v0, %v6125_v55 }
 0x2ff   :  { %v827_v57 = vpop.f32.mrf.mxu2  ;;  %v1211_v6 = vsel %vm1189_vm9, %v6138_v4, -inf }
 0x300   :  { %v1142_v2 = vmul.f32 0.17677669, %v827_v57 }
 0x302   :  { %v6141_v5 = vadd.f32 %v1142_v2, %v6125_v55  ;;  %v1044_v11 = vpop.f32.mrf.mxu0 }
 0x304   :  { %v1193_v7 = vsel %vm1189_vm9, %v6141_v5, -inf }
 0x305   :  { %1212 = vmax.xlane.f32.xlu0 %v1211_v6  ;;  %1194 = vmax.xlane.f32.xlu2 %v1193_v7 }
 0x307   :  { %v830_v8 = vpop.f32.mrf.mxu2 }
 0x308   :  { %v1143_v9 = vmul.f32 0.17677669, %v830_v8 }
 0x30a   :  { %v6148_v10 = vadd.f32 %v1143_v9, %v6125_v55 }
 0x30c   :  { %v1196_v62 = vsel %vm1189_vm9, %v6148_v10, -inf }
 0x30d   :  { %1197 = vmax.xlane.f32.xlu1 %v1196_v62  ;;  %v1047_v62 = vpop.f32.mrf.mxu0 }
 0x30f   :  { %v868_v12 = vpop.f32.mrf.mxu3  ;;  %v918_v13 = vpop.f32.mrf.mxu2 }
 0x310   :  { %v1144_v3 = vmul.f32 0.17677669, %v868_v12  ;;  %v1149_v48 = vmul.f32 0.17677669, %v918_v13 }
 0x312   :  { %v6153_v51 = vadd.f32 %v1149_v48, %v6125_v55  ;;  %v6156_v47 = vadd.f32 %v1144_v3, %v6125_v55  ;;  %v1157_v48 = vmul.f32 0.17677669, %v1047_v62 }
 0x314   :  { %v1214_v15 = vsel %vm1189_vm9, %v6153_v51, -inf  ;;  %v1199_v16 = vsel %vm1189_vm9, %v6156_v47, -inf }
 0x315   :  { %1215 = vmax.xlane.f32.xlu2 %v1214_v15  ;;  %1200 = vmax.xlane.f32.xlu1 %v1199_v16 }
 0x317   :  { %v871_v17 = vpop.f32.mrf.mxu3  ;;  %v956_v19 = vpop.f32.mrf.mxu2 }
 0x318   :  { %v1145_v20 = vmul.f32 0.17677669, %v871_v17  ;;  %v1150_v21 = vmul.f32 0.17677669, %v956_v19  ;;  %v1156_v19 = vmul.f32 0.17677669, %v1044_v11 }
 0x31a   :  { %v6163_v23 = vadd.f32 %v1150_v21, %v6125_v55  ;;  %v6166_v24 = vadd.f32 %v1145_v20, %v6125_v55  ;;  %v6223_v21 = vadd.f32 %v1157_v48, %v6125_v55 }
 0x31b   :  { %v1088_v26 = vpop.f32.mrf.mxu1 }
 0x31c   :  { %v1159_v27 = vmul.f32 0.17677669, %v1088_v26  ;;  %v1217_v29 = vsel %vm1189_vm9, %v6163_v23, -inf  ;;  %v1202_v30 = vsel %vm1189_vm9, %v6166_v24, -inf }
 0x31d   :  { %1218 = vmax.xlane.f32.xlu0 %v1217_v29  ;;  %1203 = vmax.xlane.f32.xlu2 %v1202_v30  ;;  %v1238_v30 = vsel %vm1189_vm9, %v6223_v21, -inf }
 0x31e   :  { %v6173_v35 = vadd.f32 %v1159_v27, %v6125_v55  ;;  %v6226_v27 = vadd.f32 %v1156_v19, %v6125_v55 }
 0x31f   :  { %v874_v52 = vpop.f32.mrf.mxu3  ;;  %v959_v32 = vpop.f32.mrf.mxu2 }
 0x320   :  { %v1151_v34 = vmul.f32 0.17677669, %v959_v32  ;;  %v1146_v38 = vmul.f32 0.17677669, %v874_v52  ;;  %v1244_v41 = vsel %vm1189_vm9, %v6173_v35, -inf  ;;  %v1235_v52 = vsel %vm1189_vm9, %v6226_v27, -inf }
 0x322   :  { %v6176_v37 = vadd.f32 %v1151_v34, %v6125_v55  ;;  %v6183_v46 = vadd.f32 %v1146_v38, %v6125_v55 }
 0x323   :  { %v1091_v44 = vpop.f32.mrf.mxu1 }
 0x324   :  { %v1220_v33 = vsel %vm1189_vm9, %v6176_v37, -inf  ;;  %v1205_v50 = vsel %vm1189_vm9, %v6183_v46, -inf  ;;  %v1160_v54 = vmul.f32 0.17677669, %v1091_v44 }
 0x325   :  { %1221 = vmax.xlane.f32.xlu0 %v1220_v33  ;;  %1245 = vmax.xlane.f32.xlu2 %v1244_v41 }
 0x326   :  { %v6196_v63 = vadd.f32 %v1160_v54, %v6125_v55  ;;  %v1050_v54 = vpop.f32.mrf.mxu0 }
 0x327   :  { %v1000_v45 = vpop.f32.mrf.mxu3  ;;  %v962_v40 = vpop.f32.mrf.mxu2 }
 0x328   :  { %v1153_v36 = vmul.f32 0.17677669, %v1000_v45  ;;  %v1152_v61 = vmul.f32 0.17677669, %v962_v40  ;;  %v1247_v6 = vsel %vm1189_vm9, %v6196_v63, -inf }
 0x32a   :  { %v6186_v49 = vadd.f32 %v1153_v36, %v6125_v55  ;;  %v6193_v59 = vadd.f32 %v1152_v61, %v6125_v55 }
 0x32b   :  { %v1094_v60 = vpop.f32.mrf.mxu1 }
 0x32c   :  { %v1226_v53 = vsel %vm1189_vm9, %v6186_v49, -inf  ;;  %v1161_v42 = vmul.f32 0.17677669, %v1094_v60  ;;  %v1223_v57 = vsel %vm1189_vm9, %v6193_v59, -inf }
 0x32d   :  { %1206 = vmax.xlane.f32.xlu0 %v1205_v50  ;;  %1227 = vmax.xlane.f32.xlu1 %v1226_v53 }
 0x32e   :  { %v6208_v9 = vadd.f32 %v1161_v42, %v6125_v55 }
 0x32f   :  { %v1003_v56 = vpop.f32.mrf.mxu3 }
 0x330   :  { %v1154_v43 = vmul.f32 0.17677669, %v1003_v56  ;;  %v1250_v16 = vsel %vm1189_vm9, %v6208_v9, -inf  ;;  %v1158_v56 = vmul.f32 0.17677669, %v1050_v54 }
 0x332   :  { %v6199_v0 = vadd.f32 %v1154_v43, %v6125_v55 }
 0x334   :  { %v1229_v2 = vsel %vm1189_vm9, %v6199_v0, -inf }
 0x335   :  { %1224 = vmax.xlane.f32.xlu1 %v1223_v57  ;;  %1230 = vmax.xlane.f32.xlu2 %v1229_v2 }
 0x336   :  { %1248 = vmax.xlane.f32.xlu0 %v1247_v6 }
 0x337   :  { %v1006_v7 = vpop.f32.mrf.mxu3 }
 0x338   :  { %v1155_v8 = vmul.f32 0.17677669, %v1006_v7  ;;  %v6253_v7 = vadd.f32 %v1158_v56, %v6125_v55 }
 0x339   :  { %v1132_v12 = vpop.f32.mrf.mxu2 }
 0x33a   :  { %v1162_v13 = vmul.f32 0.17677669, %v1132_v12  ;;  %v6211_v3 = vadd.f32 %v1155_v8, %v6125_v55  ;;  %v1241_v62 = vsel %vm1189_vm9, %v6253_v7, -inf }
 0x33c   :  { %v1232_v15 = vsel %vm1189_vm9, %v6211_v3, -inf  ;;  %v6218_v17 = vadd.f32 %v1162_v13, %v6125_v55 }
 0x33d   :  { %1251 = vmax.xlane.f32.xlu1 %v1250_v16 }
 0x33e   :  { %1233 = vmax.xlane.f32.xlu0 %v1232_v15  ;;  %v1253_v20 = vsel %vm1189_vm9, %v6218_v17, -inf }
 0x33f   :  { %1254 = vmax.xlane.f32.xlu2 %v1253_v20 }
 0x341   :  { %v1135_v26 = vpop.f32.mrf.mxu2 }
 0x342   :  { %v1163_v29 = vmul.f32 0.17677669, %v1135_v26 }
 0x344   :  { %v6233_v32 = vadd.f32 %v1163_v29, %v6125_v55 }
 0x345   :  { %1239 = vmax.xlane.f32.xlu1 %v1238_v30 }
 0x346   :  { %1236 = vmax.xlane.f32.xlu0 %v1235_v52  ;;  %v1256_v33 = vsel %vm1189_vm9, %v6233_v32, -inf }
 0x349   :  { %v1138_v34 = vpop.f32.mrf.mxu2 }
 0x34a   :  { %v1164_v38 = vmul.f32 0.17677669, %v1138_v34 }
 0x34c   :  { %v6238_v41 = vadd.f32 %v1164_v38, %v6125_v55 }
 0x34d   :  { %1257 = vmax.xlane.f32.xlu1 %v1256_v33 }
 0x34e   :  { %v1259_v44 = vsel %vm1189_vm9, %v6238_v41, -inf }
 0x34f   :  { %1260 = vmax.xlane.f32.xlu2 %v1259_v44 }
 0x36b   :  { %v1210_v45 = vpop.xlane.xlu1 %1209 }
 0x36c   :  { %v1268_v36 = vsub.f32 %v6128_v58, %v1210_v45 }
 0x36e   :  { %v1298_v40 = vmul.f32 1.442695, %v1268_v36 }
 0x370   :  { %5146 = vpow2.f32 %v1298_v40  ;;  %v1192_v61 = vpop.xlane.xlu0 %1191 }
 0x371   :  { %v1262_v50 = vsub.f32 %v6133_v1, %v1192_v61 }
 0x373   :  { %v1286_v53 = vmul.f32 1.442695, %v1262_v50 }
 0x375   :  { %5148 = vpow2.f32 %v1286_v53 }
 0x376   :  { %v6244_v11 = vpop.eup %5146 }
 0x377   :  { %v1352_v43 = vsel %vm1189_vm9, %v6244_v11, 0.0 }
 0x378   :  { %1353 = vadd.xlane.f32.xlu1 %v1352_v43  ;;  %v1213_v60 = vpop.xlane.xlu0 %1212  ;;  %v1195_v42 = vpop.xlane.xlu2 %1194 }
 0x379   :  { %v1269_v57 = vsub.f32 %v6138_v4, %v1213_v60  ;;  %v1263_v58 = vsub.f32 %v6141_v5, %v1195_v42 }
 0x37b   :  { %v6250_v2 = vpop.eup %5148  ;;  %v1300_v6 = vmul.f32 1.442695, %v1269_v57  ;;  %v1288_v1 = vmul.f32 1.442695, %v1263_v58 }
 0x37c   :  { %v1334_v8 = vsel %vm1189_vm9, %v6250_v2, 0.0 }
 0x37d   :  { %5150 = vpow2.f32 %v1300_v6  ;;  %1335 = vadd.xlane.f32.xlu2 %v1334_v8 }
 0x37e   :  { %5152 = vpow2.f32 %v1288_v1 }
 0x380   :  { %1242 = vmax.xlane.f32.xlu1 %v1241_v62  ;;  %v1198_v4 = vpop.xlane.xlu1 %1197 }
 0x381   :  { %v1264_v5 = vsub.f32 %v6148_v10, %v1198_v4 }
 0x383   :  { %v6260_v12 = vpop.eup %5150  ;;  %v1290_v13 = vmul.f32 1.442695, %v1264_v5 }
 0x384   :  { %v6262_v48 = vpop.eup %5152  ;;  %v1355_v15 = vsel %vm1189_vm9, %v6260_v12, 0.0 }
 0x385   :  { %5154 = vpow2.f32 %v1290_v13  ;;  %1356 = vadd.xlane.f32.xlu2 %v1355_v15  ;;  %v1337_v16 = vsel %vm1189_vm9, %v6262_v48, 0.0 }
 0x386   :  { %1338 = vadd.xlane.f32.xlu0 %v1337_v16 }
 0x388   :  { %v1216_v19 = vpop.xlane.xlu2 %1215 }
 0x389   :  { %v1270_v20 = vsub.f32 %v6153_v51, %v1216_v19  ;;  %v1201_v51 = vpop.xlane.xlu1 %1200 }
 0x38b   :  { %v6269_v26 = vpop.eup %5154  ;;  %v1302_v10 = vmul.f32 1.442695, %v1270_v20 }
 0x38c   :  { %v1340_v29 = vsel %vm1189_vm9, %v6269_v26, 0.0 }
 0x38d   :  { %5156 = vpow2.f32 %v1302_v10 }
 0x38e   :  { %1341 = vadd.xlane.f32.xlu0 %v1340_v29 }
 0x390   :  { %v1219_v30 = vpop.xlane.xlu0 %1218  ;;  %v1204_v52 = vpop.xlane.xlu2 %1203 }
 0x391   :  { %v1271_v34 = vsub.f32 %v6163_v23, %v1219_v30  ;;  %v1266_v13 = vsub.f32 %v6166_v24, %v1204_v52 }
 0x393   :  { %v6274_v38 = vpop.eup %5156  ;;  %v1304_v33 = vmul.f32 1.442695, %v1271_v34  ;;  %v1294_v10 = vmul.f32 1.442695, %v1266_v13 }
 0x394   :  { %v1358_v44 = vsel %vm1189_vm9, %v6274_v38, 0.0 }
 0x395   :  { %5158 = vpow2.f32 %v1304_v33  ;;  %1359 = vadd.xlane.f32.xlu2 %v1358_v44 }
 0x398   :  { %v1222_v45 = vpop.xlane.xlu0 %1221  ;;  %v1246_v36 = vpop.xlane.xlu2 %1245 }
 0x399   :  { %v1272_v40 = vsub.f32 %v6176_v37, %v1222_v45  ;;  %v1280_v61 = vsub.f32 %v6173_v35, %v1246_v36  ;;  %v1265_v35 = vsub.f32 %v6156_v47, %v1201_v51 }
 0x39b   :  { %v6280_v50 = vpop.eup %5158  ;;  %v1306_v53 = vmul.f32 1.442695, %v1272_v40  ;;  %v1322_v54 = vmul.f32 1.442695, %v1280_v61  ;;  %v1292_v1 = vmul.f32 1.442695, %v1265_v35 }
 0x39c   :  { %v1361_v23 = vsel %vm1189_vm9, %v6280_v50, 0.0 }
 0x39d   :  { %5160 = vpow2.f32 %v1306_v53  ;;  %1362 = vadd.xlane.f32.xlu0 %v1361_v23 }
 0x39e   :  { %5162 = vpow2.f32 %v1322_v54 }
 0x3a0   :  { %v1207_v56 = vpop.xlane.xlu0 %1206  ;;  %v1228_v43 = vpop.xlane.xlu1 %1227 }
 0x3a1   :  { %v1274_v60 = vsub.f32 %v6186_v49, %v1228_v43  ;;  %v1267_v45 = vsub.f32 %v6183_v46, %v1207_v56 }
 0x3a3   :  { %v6285_v42 = vpop.eup %5160  ;;  %v1310_v57 = vmul.f32 1.442695, %v1274_v60  ;;  %v1296_v54 = vmul.f32 1.442695, %v1267_v45 }
 0x3a4   :  { %v6287_v37 = vpop.eup %5162  ;;  %v1364_v58 = vsel %vm1189_vm9, %v6285_v42, 0.0 }
 0x3a5   :  { %v1388_v6 = vsel %vm1189_vm9, %v6287_v37, 0.0  ;;  %1365 = vadd.xlane.f32.xlu0 %v1364_v58  ;;  %5164 = vpow2.f32 %v1310_v57 }
 0x3a6   :  { %1389 = vadd.xlane.f32.xlu2 %v1388_v6  ;;  %5166 = vpow2.f32 %v1292_v1 }
 0x3a8   :  { %v1225_v8 = vpop.xlane.xlu1 %1224  ;;  %v1231_v62 = vpop.xlane.xlu2 %1230 }
 0x3a9   :  { %v1275_v49 = vsub.f32 %v6199_v0, %v1231_v62  ;;  %v1249_v4 = vpop.xlane.xlu0 %1248  ;;  %v1273_v16 = vsub.f32 %v6193_v59, %v1225_v8 }
 0x3aa   :  { %v1281_v5 = vsub.f32 %v6196_v63, %v1249_v4 }
 0x3ab   :  { %v1312_v47 = vmul.f32 1.442695, %v1275_v49  ;;  %v6297_v15 = vpop.eup %5164  ;;  %v1308_v0 = vmul.f32 1.442695, %v1273_v16 }
 0x3ac   :  { %v1324_v19 = vmul.f32 1.442695, %v1281_v5  ;;  %v1370_v20 = vsel %vm1189_vm9, %v6297_v15, 0.0  ;;  %v6302_v63 = vpop.eup %5166 }
 0x3ad   :  { %5168 = vpow2.f32 %v1312_v47  ;;  %1371 = vadd.xlane.f32.xlu1 %v1370_v20 }
 0x3ae   :  { %5170 = vpow2.f32 %v1324_v19 }
 0x3af   :  { %5172 = vpow2.f32 %v1294_v10 }
 0x3b0   :  { %v1252_v29 = vpop.xlane.xlu1 %1251  ;;  %5174 = vpow2.f32 %v1308_v0 }
 0x3b1   :  { %v1234_v30 = vpop.xlane.xlu0 %1233  ;;  %v1282_v34 = vsub.f32 %v6208_v9, %v1252_v29 }
 0x3b2   :  { %v1276_v24 = vsub.f32 %v6211_v3, %v1234_v30  ;;  %v1255_v52 = vpop.xlane.xlu2 %1254  ;;  %v1343_v3 = vsel %vm1189_vm9, %v6302_v63, 0.0 }
 0x3b3   :  { %v6306_v59 = vpop.eup %5168  ;;  %v1283_v44 = vsub.f32 %v6218_v17, %v1255_v52  ;;  %v1326_v40 = vmul.f32 1.442695, %v1282_v34 }
 0x3b4   :  { %v1314_v33 = vmul.f32 1.442695, %v1276_v24  ;;  %v6309_v51 = vpop.eup %5170  ;;  %v1373_v36 = vsel %vm1189_vm9, %v6306_v59, 0.0 }
 0x3b5   :  { %1374 = vadd.xlane.f32.xlu2 %v1373_v36  ;;  %v1391_v9 = vsel %vm1189_vm9, %v6309_v51, 0.0  ;;  %1344 = vadd.xlane.f32.xlu1 %v1343_v3  ;;  %v1328_v61 = vmul.f32 1.442695, %v1283_v44  ;;  %v6318_v53 = vpop.eup %5172 }
 0x3b6   :  { %5176 = vpow2.f32 %v1314_v33  ;;  %1392 = vadd.xlane.f32.xlu0 %v1391_v9  ;;  %v6320_v23 = vpop.eup %5174  ;;  %v1346_v60 = vsel %vm1189_vm9, %v6318_v53, 0.0 }
 0x3b7   :  { %5178 = vpow2.f32 %v1326_v40  ;;  %v1367_v35 = vsel %vm1189_vm9, %v6320_v23, 0.0 }
 0x3b8   :  { %v1240_v17 = vpop.xlane.xlu1 %1239  ;;  %5180 = vpow2.f32 %v1328_v61 }
 0x3b9   :  { %v1237_v46 = vpop.xlane.xlu0 %1236  ;;  %5182 = vpow2.f32 %v1296_v54  ;;  %v1278_v13 = vsub.f32 %v6223_v21, %v1240_v17 }
 0x3ba   :  { %v1277_v43 = vsub.f32 %v6226_v27, %v1237_v46 }
 0x3bb   :  { %v1318_v20 = vmul.f32 1.442695, %v1278_v13 }
 0x3bc   :  { %v6322_v56 = vpop.eup %5176  ;;  %v1316_v58 = vmul.f32 1.442695, %v1277_v43 }
 0x3bd   :  { %v1376_v57 = vsel %vm1189_vm9, %v6322_v56, 0.0  ;;  %1347 = vadd.xlane.f32.xlu2 %v1346_v60  ;;  %1368 = vadd.xlane.f32.xlu1 %v1367_v35  ;;  %v6331_v1 = vpop.eup %5178 }
 0x3be   :  { %1377 = vadd.xlane.f32.xlu0 %v1376_v57  ;;  %v6334_v27 = vpop.eup %5180  ;;  %5184 = vpow2.f32 %v1316_v58  ;;  %v1394_v19 = vsel %vm1189_vm9, %v6331_v1, 0.0 }
 0x3bf   :  { %v6336_v49 = vpop.eup %5182  ;;  %v1397_v16 = vsel %vm1189_vm9, %v6334_v27, 0.0 }
 0x3c0   :  { %v1258_v6 = vpop.xlane.xlu1 %1257 }
 0x3c1   :  { %v1284_v8 = vsub.f32 %v6233_v32, %v1258_v6  ;;  %v1349_v32 = vsel %vm1189_vm9, %v6336_v49, 0.0 }
 0x3c2   :  { %v1261_v62 = vpop.xlane.xlu2 %1260 }
 0x3c3   :  { %v1330_v4 = vmul.f32 1.442695, %v1284_v8  ;;  %v1285_v5 = vsub.f32 %v6238_v41, %v1261_v62 }
 0x3c4   :  { %v6346_v41 = vpop.eup %5184 }
 0x3c5   :  { %5186 = vpow2.f32 %v1330_v4  ;;  %v1332_v47 = vmul.f32 1.442695, %v1285_v5  ;;  %1398 = vadd.xlane.f32.xlu2 %v1397_v16  ;;  %1395 = vadd.xlane.f32.xlu1 %v1394_v19  ;;  %v1379_v29 = vsel %vm1189_vm9, %v6346_v41, 0.0 }
 0x3c6   :  { %1350 = vadd.xlane.f32.xlu0 %v1349_v32 }
 0x3c7   :  { %5188 = vpow2.f32 %v1332_v47 }
 0x3c8   :  { %5190 = vpow2.f32 %v1318_v20 }
 0x3cb   :  { %v6348_v10 = vpop.eup %5186 }
 0x3cc   :  { %v1400_v21 = vsel %vm1189_vm9, %v6348_v10, 0.0 }
 0x3cd   :  { %v6352_v0 = vpop.eup %5188  ;;  %1380 = vadd.xlane.f32.xlu2 %v1379_v29  ;;  %1401 = vadd.xlane.f32.xlu1 %v1400_v21 }
 0x3ce   :  { %v1403_v30 = vsel %vm1189_vm9, %v6352_v0, 0.0  ;;  %v6358_v24 = vpop.eup %5190 }
 0x3cf   :  { %1404 = vadd.xlane.f32.xlu0 %v1403_v30  ;;  %v1382_v52 = vsel %vm1189_vm9, %v6358_v24, 0.0 }
 0x3d5   :  { %1383 = vadd.xlane.f32.xlu1 %v1382_v52 }
 0x3eb   :  { %v1354_v34 = vpop.xlane.xlu1 %1353 }
 0x3ec   :  { %5192 = vrcp.f32 %v1354_v34 }
 0x3f0   :  { %v1336_v33 = vpop.xlane.xlu2 %1335 }
 0x3f1   :  { %5194 = vrcp.f32 %v1336_v33 }
 0x3f2   :  { %v5193_v44 = vpop.eup %5192 }
 0x3f3   :  { %v1436_v45 = vmul.f32 %v5193_v44, %v6244_v11  ;;  %v1243_v36 = vpop.xlane.xlu1 %1242 }
 0x3f4   :  { %v1279_v3 = vsub.f32 %v6253_v7, %v1243_v36 }
 0x3f5   :  { %4802 = vmatmul.msk.f32.vlgmr.msrb.gmra.mxu1 %vm1189_vm9, %v1436_v45 }
 0x3f6   :  { %v1320_v9 = vmul.f32 1.442695, %v1279_v3 }
 0x3f7   :  { %v5195_v40 = vpop.eup %5194 }
 0x3f8   :  { %v1430_v61 = vmul.f32 %v5195_v40, %v6250_v2  ;;  %5196 = vpow2.f32 %v1320_v9  ;;  %v1357_v17 = vpop.xlane.xlu2 %1356 }
 0x3f9   :  { %5198 = vrcp.f32 %v1357_v17  ;;  %v1339_v54 = vpop.xlane.xlu0 %1338 }
 0x3fa   :  { %5200 = vrcp.f32 %v1339_v54  ;;  %4796 = vmatmul.msk.f32.vlgmr.msrb.gmra.mxu3 %vm1189_vm9, %v1430_v61 }
 0x3fe   :  { %v6367_v46 = vpop.eup %5196 }
 0x3ff   :  { %v5199_v43 = vpop.eup %5198  ;;  %v1385_v11 = vsel %vm1189_vm9, %v6367_v46, 0.0 }
 0x400   :  { %v5201_v7 = vpop.eup %5200  ;;  %1386 = vadd.xlane.f32.xlu2 %v1385_v11  ;;  %v1437_v60 = vmul.f32 %v5199_v43, %v6260_v12 }
 0x401   :  { %v1342_v57 = vpop.xlane.xlu0 %1341  ;;  %v1431_v2 = vmul.f32 %v5201_v7, %v6262_v48 }
 0x402   :  { %5202 = vrcp.f32 %v1342_v57  ;;  %4803 = vmatmul.msk.f32.gmra.mxu1 %vm1189_vm9, %v1437_v60 }
 0x403   :  { %4797 = vmatmul.msk.f32.gmra.mxu3 %vm1189_vm9, %v1431_v2 }
 0x408   :  { %v5203_v35 = vpop.eup %5202  ;;  %v1360_v58 = vpop.xlane.xlu2 %1359 }
 0x409   :  { %5204 = vrcp.f32 %v1360_v58  ;;  %v1432_v6 = vmul.f32 %v5203_v35, %v6269_v26 }
 0x40b   :  { %4798 = vmatmul.msk.f32.gmra.mxu3 %vm1189_vm9, %v1432_v6 }
 0x40f   :  { %v5205_v8 = vpop.eup %5204 }
 0x410   :  { %v1363_v62 = vpop.xlane.xlu0 %1362  ;;  %v1438_v4 = vmul.f32 %v5205_v8, %v6274_v38 }
 0x411   :  { %5206 = vrcp.f32 %v1363_v62 }
 0x412   :  { %4804 = vmatmul.msk.f32.gmra.mxu1 %vm1189_vm9, %v1438_v4 }
 0x417   :  { %v5207_v12 = vpop.eup %5206 }
 0x418   :  { %v1439_v48 = vmul.f32 %v5207_v12, %v6280_v50  ;;  %v1366_v5 = vpop.xlane.xlu0 %1365 }
 0x419   :  { %v1390_v13 = vpop.xlane.xlu2 %1389  ;;  %5208 = vrcp.f32 %v1366_v5 }
 0x41a   :  { %5210 = vrcp.f32 %v1390_v13  ;;  %4805 = vmatmul.msk.f32.vlgmr.msrb.gmra.mxu2 %vm1189_vm9, %v1439_v48  ;;  %v1737_v48 = vld [vmem:[%s7750_s9 + $0x18] sm:$0xff] }
 0x41b   :  { %1930 = vmatpush.msrb.mxu2 %v1737_v48 }
 0x41f   :  { %v5209_v47 = vpop.eup %5208 }
 0x420   :  { %v5211_v26 = vpop.eup %5210  ;;  %v1440_v16 = vmul.f32 %v5209_v47, %v6285_v42  ;;  %v1372_v32 = vpop.xlane.xlu1 %1371 }
 0x421   :  { %v1448_v19 = vmul.f32 %v5211_v26, %v6287_v37  ;;  %5212 = vrcp.f32 %v1372_v32  ;;  %v1736_v26 = vld [vmem:[%s7750_s9 + $0x10] sm:$0xff] }
 0x422   :  { %4806 = vmatmul.msk.f32.gmra.mxu2 %vm1189_vm9, %v1440_v16  ;;  %1877 = vmatpush.msrb.mxu1 %v1736_v26 }
 0x423   :  { %4814 = vmatmul.msk.f32.vlgmr.msra.gmra.mxu1 %vm1189_vm9, %v1448_v19 }
 0x427   :  { %v5213_v38 = vpop.eup %5212 }
 0x428   :  { %v1442_v50 = vmul.f32 %v5213_v38, %v6297_v15  ;;  %v1375_v20 = vpop.xlane.xlu2 %1374  ;;  %v1345_v21 = vpop.xlane.xlu1 %1344 }
 0x429   :  { %5214 = vrcp.f32 %v1375_v20  ;;  %v1393_v29 = vpop.xlane.xlu0 %1392 }
 0x42a   :  { %5216 = vrcp.f32 %v1393_v29  ;;  %4808 = vmatmul.msk.f32.vlgmr.msra.gmra.mxu3 %vm1189_vm9, %v1442_v50 }
 0x42b   :  { %5218 = vrcp.f32 %v1345_v21 }
 0x42f   :  { %v5215_v42 = vpop.eup %5214 }
 0x430   :  { %v5217_v30 = vpop.eup %5216  ;;  %v1348_v37 = vpop.xlane.xlu2 %1347  ;;  %v1443_v34 = vmul.f32 %v5215_v42, %v6306_v59 }
 0x431   :  { %v1369_v52 = vpop.xlane.xlu1 %1368  ;;  %v5219_v33 = vpop.eup %5218  ;;  %5220 = vrcp.f32 %v1348_v37  ;;  %v1449_v45 = vmul.f32 %v5217_v30, %v6309_v51 }
 0x432   :  { %v1378_v44 = vpop.xlane.xlu0 %1377  ;;  %v1433_v15 = vmul.f32 %v5219_v33, %v6302_v63  ;;  %4809 = vmatmul.msk.f32.gmra.mxu3 %vm1189_vm9, %v1443_v34 }
 0x433   :  { %5222 = vrcp.f32 %v1378_v44  ;;  %4815 = vmatmul.msk.f32.gmra.mxu1 %vm1189_vm9, %v1449_v45 }
 0x434   :  { %5224 = vrcp.f32 %v1369_v52  ;;  %4799 = vmatmul.msk.f32.vlgmr.msrb.gmra.mxu0 %vm1189_vm9, %v1433_v15 }
 0x437   :  { %v5221_v36 = vpop.eup %5220 }
 0x438   :  { %v1399_v9 = vpop.xlane.xlu2 %1398  ;;  %v1434_v59 = vmul.f32 %v5221_v36, %v6318_v53 }
 0x439   :  { %v5223_v3 = vpop.eup %5222  ;;  %v1396_v40 = vpop.xlane.xlu1 %1395  ;;  %5226 = vrcp.f32 %v1399_v9 }
 0x43a   :  { %v5225_v61 = vpop.eup %5224  ;;  %v1351_v17 = vpop.xlane.xlu0 %1350  ;;  %v1444_v51 = vmul.f32 %v5223_v3, %v6322_v56 }
 0x43b   :  { %5228 = vrcp.f32 %v1351_v17  ;;  %v1441_v63 = vmul.f32 %v5225_v61, %v6320_v23 }
 0x43c   :  { %5230 = vrcp.f32 %v1396_v40  ;;  %4810 = vmatmul.msk.f32.gmra.mxu3 %vm1189_vm9, %v1444_v51  ;;  %4800 = vmatmul.msk.f32.gmra.mxu0 %vm1189_vm9, %v1434_v59 }
 0x43d   :  { %4807 = vmatmul.msk.f32.gmra.mxu2 %vm1189_vm9, %v1441_v63 }
 0x43f   :  { %v5227_v54 = vpop.eup %5226 }
 0x440   :  { %v1381_v11 = vpop.xlane.xlu2 %1380  ;;  %v1451_v60 = vmul.f32 %v5227_v54, %v6334_v27 }
 0x441   :  { %v5229_v43 = vpop.eup %5228  ;;  %v1402_v7 = vpop.xlane.xlu1 %1401  ;;  %5232 = vrcp.f32 %v1381_v11 }
 0x442   :  { %v5231_v53 = vpop.eup %5230  ;;  %v1435_v56 = vmul.f32 %v5229_v43, %v6336_v49  ;;  %5234 = vrcp.f32 %v1402_v7  ;;  %v1405_v2 = vpop.xlane.xlu0 %1404 }
 0x443   :  { %v1450_v23 = vmul.f32 %v5231_v53, %v6331_v1  ;;  %v6457_v53 = vld [vmem:[%s7751_s10] ss:$0 sm:$0xff] }
 0x444   :  { %4801 = vmatmul.msk.f32.gmra.mxu0 %vm1189_vm9, %v1435_v56 }
 0x445   :  { %4816 = vmatmul.msk.f32.gmra.mxu1 %vm1189_vm9, %v1450_v23  ;;  %4817 = vmatmul.msk.f32.vlgmr.msra.gmra.mxu2 %vm1189_vm9, %v1451_v60 }
 0x447   :  { %v5233_v57 = vpop.eup %5232 }
 0x448   :  { %v5235_v35 = vpop.eup %5234  ;;  %v1445_v58 = vmul.f32 %v5233_v57, %v6346_v41  ;;  %v1734_v41 = vld [vmem:[%s7750_s9] sm:$0xff] }
 0x449   :  { %v1384_v6 = vpop.xlane.xlu1 %1383  ;;  %v1452_v27 = vmul.f32 %v5235_v35, %v6348_v10  ;;  %1771 = vmatpush.msrb.mxu3 %v1734_v41  ;;  %v1735_v10 = vld [vmem:[%s7750_s9 + $0x8] sm:$0xff] }
 0x44a   :  { %5236 = vrcp.f32 %v1384_v6  ;;  %1824 = vmatpush.msrb.mxu0 %v1735_v10 }
 0x44b   :  { %5238 = vrcp.f32 %v1405_v2 }
 0x44c   :  { %4811 = vmatmul.msk.f32.vlgmr.msra.gmra.mxu0 %vm1189_vm9, %v1445_v58 }
 0x44d   :  { %4818 = vmatmul.msk.f32.gmra.mxu2 %vm1189_vm9, %v1452_v27 }
 0x450   :  { %v5237_v1 = vpop.eup %5236 }
 0x451   :  { %v5239_v49 = vpop.eup %5238  ;;  %v1446_v8 = vmul.f32 %v5237_v1, %v6358_v24 }
 0x452   :  { %v1453_v62 = vmul.f32 %v5239_v49, %v6352_v0 }
 0x454   :  { %4812 = vmatmul.msk.f32.gmra.mxu0 %vm1189_vm9, %v1446_v8 }
 0x455   :  { %4819 = vmatmul.msk.f32.gmra.mxu2 %vm1189_vm9, %v1453_v62 }
 0x472   :  { %v1550_v5 = vpop.f32.mrf.mxu1 }
 0x473   :  { %v1387_v4 = vpop.xlane.xlu2 %1386 }
 0x474   :  { %5240 = vrcp.f32 %v1387_v4 }
 0x47a   :  { %v5241_v12 = vpop.eup %5240 }
 0x47b   :  { %v1447_v24 = vmul.f32 %v5241_v12, %v6367_v46 }
 0x47d   :  { %4813 = vmatmul.msk.f32.gmra.mxu0 %vm1189_vm9, %v1447_v24  ;;  %v1480_v0 = vpop.f32.mrf.mxu3 }
 0x47e   :  { %4820 = vmatmul.msk.f32.vlgmr.msrb.gmra.mxu3 %vm788_vm7, %v1480_v0 }
 0x47f   :  { %v1553_v47 = vpop.f32.mrf.mxu1 }
 0x485   :  { %4826 = vmatmul.msk.f32.vlgmr.msrb.gmra.mxu0 %vm788_vm7, %v1550_v5 }
 0x486   :  { %v1483_v13 = vpop.f32.mrf.mxu3 }
 0x487   :  { %4821 = vmatmul.msk.f32.gmra.mxu3 %vm788_vm7, %v1483_v13 }
 0x48d   :  { %4827 = vmatmul.msk.f32.gmra.mxu0 %vm788_vm7, %v1553_v47 }
 0x48e   :  { %v1486_v46 = vpop.f32.mrf.mxu3 }
 0x48f   :  { %4822 = vmatmul.msk.f32.gmra.mxu3 %vm788_vm7, %v1486_v46  ;;  %v1556_v16 = vpop.f32.mrf.mxu1 }
 0x495   :  { %4828 = vmatmul.msk.f32.gmra.mxu0 %vm788_vm7, %v1556_v16 }
 0x49d   :  { %v1585_v19 = vpop.f32.mrf.mxu2 }
 0x49e   :  { %4829 = vmatmul.msk.f32.gmra.mxu0 %vm788_vm7, %v1585_v19 }
 0x4a0   :  { %v1690_v32 = vpop.f32.mrf.mxu1 }
 0x4a1   :  { %4838 = vmatmul.msk.f32.vlgmr.msrb.gmra.mxu2 %vm788_vm7, %v1690_v32 }
 0x4a5   :  { %v1588_v38 = vpop.f32.mrf.mxu2 }
 0x4a6   :  { %4830 = vmatmul.msk.f32.gmra.mxu0 %vm788_vm7, %v1588_v38 }
 0x4ad   :  { %v1620_v50 = vpop.f32.mrf.mxu3 }
 0x4ae   :  { %4832 = vmatmul.msk.f32.vlgmr.msrb.gmra.mxu1 %vm788_vm7, %v1620_v50 }
 0x4b0   :  { %v1693_v20 = vpop.f32.mrf.mxu1 }
 0x4b1   :  { %v1515_v21 = vpop.f32.mrf.mxu0  ;;  %4839 = vmatmul.msk.f32.gmra.mxu2 %vm788_vm7, %v1693_v20 }
 0x4b2   :  { %4823 = vmatmul.msk.f32.gmra.mxu3 %vm788_vm7, %v1515_v21 }
 0x4b5   :  { %v1623_v29 = vpop.f32.mrf.mxu3 }
 0x4b6   :  { %4833 = vmatmul.msk.f32.gmra.mxu1 %vm788_vm7, %v1623_v29 }
 0x4b9   :  { %v1518_v42 = vpop.f32.mrf.mxu0 }
 0x4ba   :  { %4824 = vmatmul.msk.f32.gmra.mxu3 %vm788_vm7, %v1518_v42 }
 0x4bf   :  { %v1626_v30 = vpop.f32.mrf.mxu3 }
 0x4c0   :  { %v1591_v37 = vpop.f32.mrf.mxu2  ;;  %4834 = vmatmul.msk.f32.gmra.mxu1 %vm788_vm7, %v1626_v30 }
 0x4c1   :  { %4831 = vmatmul.msk.f32.gmra.mxu0 %vm788_vm7, %v1591_v37  ;;  %v1521_v52 = vpop.f32.mrf.mxu0 }
 0x4c2   :  { %v1696_v34 = vpop.f32.mrf.mxu1  ;;  %4825 = vmatmul.msk.f32.gmra.mxu3 %vm788_vm7, %v1521_v52 }
 0x4c3   :  { %4840 = vmatmul.msk.f32.gmra.mxu2 %vm788_vm7, %v1696_v34 }
 0x4c8   :  { %v1725_v33 = vpop.f32.mrf.mxu2 }
 0x4c9   :  { %v1655_v44 = vpop.f32.mrf.mxu0 }
 0x4ca   :  { %4835 = vmatmul.msk.f32.gmra.mxu1 %vm788_vm7, %v1655_v44 }
 0x4cb   :  { %4841 = vmatmul.msk.f32.gmra.mxu2 %vm788_vm7, %v1725_v33 }
 0x4d0   :  { %v1728_v45 = vpop.f32.mrf.mxu2 }
 0x4d1   :  { %v1658_v15 = vpop.f32.mrf.mxu0 }
 0x4d2   :  { %4836 = vmatmul.msk.f32.gmra.mxu1 %vm788_vm7, %v1658_v15 }
 0x4d3   :  { %4842 = vmatmul.msk.f32.gmra.mxu2 %vm788_vm7, %v1728_v45 }
 0x4d8   :  { %v1731_v36 = vpop.f32.mrf.mxu2 }
 0x4db   :  { %4843 = vmatmul.msk.f32.gmra.mxu2 %vm788_vm7, %v1731_v36 }
 0x4fa   :  { %v1661_v3 = vpop.f32.mrf.mxu0 }
 0x4fb   :  { %4837 = vmatmul.msk.f32.gmra.mxu1 %vm788_vm7, %v1661_v3 }
 0x501   :  { %v1773_v9 = vpop.f32.mrf.mxu3 }
 0x502   :  { %v1826_v40 = vpop.f32.mrf.mxu0  ;;  %v1950_v59 = vsel %vm144_vm1, %v1773_v9, 0.0 }
 0x503   :  { %v1951_v61 = vsel %vm144_vm1, %v1826_v40, 0.0 }
 0x504   :  { %v1952_v17 = vadd.f32 %v1951_v61, %v1950_v59 }
 0x50a   :  { %v1776_v43 = vpop.f32.mrf.mxu3  ;;  %v1829_v11 = vpop.f32.mrf.mxu0 }
 0x50b   :  { %v1957_v23 = vsel %vm144_vm1, %v1776_v43, 0.0  ;;  %v1958_v57 = vsel %vm144_vm1, %v1829_v11, 0.0 }
 0x50c   :  { %v1959_v35 = vadd.f32 %v1958_v57, %v1957_v23 }
 0x512   :  { %v1779_v4 = vpop.f32.mrf.mxu3  ;;  %v1832_v24 = vpop.f32.mrf.mxu0 }
 0x513   :  { %v1964_v48 = vsel %vm144_vm1, %v1779_v4, 0.0  ;;  %v1965_v5 = vsel %vm144_vm1, %v1832_v24, 0.0 }
 0x514   :  { %v1966_v47 = vadd.f32 %v1965_v5, %v1964_v48 }
 0x51b   :  { %v1835_v26 = vpop.f32.mrf.mxu0 }
 0x51c   :  { %v1972_v21 = vsel %vm144_vm1, %v1835_v26, 0.0 }
 0x523   :  { %v1838_v45 = vpop.f32.mrf.mxu0 }
 0x524   :  { %v1932_v51 = vpop.f32.mrf.mxu2  ;;  %v1979_v40 = vsel %vm144_vm1, %v1838_v45, 0.0 }
 0x525   :  { %v1955_v60 = vsel %vm144_vm1, %v1932_v51, 0.0 }
 0x52b   :  { %v1879_v63 = vpop.f32.mrf.mxu1 }
 0x52c   :  { %v1953_v54 = vsel %vm144_vm1, %v1879_v63, 0.0 }
 0x52d   :  { %v1954_v7 = vadd.f32 %v1953_v54, %v1952_v17 }
 0x52f   :  { %v1956_v56 = vadd.f32 %v1955_v60, %v1954_v7 }
 0x531   :  { %v1996_v2 = vadd.f32 %v6457_v53, %v1956_v56 }
 0x533   :  { %v1882_v58 = vpop.f32.mrf.mxu1  ;;  %v6464_v6 = vadd.f32 %v1996_v2, %v5584_v14 }
 0x534   :  { %v1960_v27 = vsel %vm144_vm1, %v1882_v58, 0.0  ;;  %v1935_v1 = vpop.f32.mrf.mxu2 }
 0x535   :  { %v1961_v49 = vadd.f32 %v1960_v27, %v1959_v35  ;;  %v2010_v8 = vsel %vm144_vm1, %v6464_v6, 0.0  ;;  %v1962_v62 = vsel %vm144_vm1, %v1935_v1, 0.0  ;;  %v1782_v46 = vpop.f32.mrf.mxu3 }
 0x536   :  { %2011 = vadd.xlane.f32.xlu0 %v2010_v8  ;;  %v1971_v50 = vsel %vm144_vm1, %v1782_v46, 0.0 }
 0x537   :  { %v1963_v41 = vadd.f32 %v1962_v62, %v1961_v49  ;;  %v1973_v42 = vadd.f32 %v1972_v21, %v1971_v50 }
 0x539   :  { %v1997_v10 = vadd.f32 %v6457_v53, %v1963_v41 }
 0x53b   :  { %v6472_v12 = vadd.f32 %v1997_v10, %v5591_v18 }
 0x53d   :  { %v2013_v14 = vsel %vm144_vm1, %v6472_v12, 0.0  ;;  %v1885_v0 = vpop.f32.mrf.mxu1  ;;  %v1785_v37 = vpop.f32.mrf.mxu3 }
 0x53e   :  { %2014 = vadd.xlane.f32.xlu1 %v2013_v14  ;;  %v1967_v13 = vsel %vm144_vm1, %v1885_v0, 0.0  ;;  %v1978_v3 = vsel %vm144_vm1, %v1785_v37, 0.0  ;;  %v1841_v56 = vpop.f32.mrf.mxu0 }
 0x53f   :  { %v1968_v16 = vadd.f32 %v1967_v13, %v1966_v47  ;;  %v1980_v59 = vadd.f32 %v1979_v40, %v1978_v3  ;;  %v1986_v57 = vsel %vm144_vm1, %v1841_v56, 0.0  ;;  %v2162_v3 = vld [vmem:[%s7754_s13 + $0x10] sm:$0xff]  ;;  %v2160_v40 = vld [vmem:[%s7754_s13] sm:$0xff] }
 0x546   :  { %v1938_v19 = vpop.f32.mrf.mxu2 }
 0x547   :  { %v1969_v18 = vsel %vm144_vm1, %v1938_v19, 0.0  ;;  %v1888_v38 = vpop.f32.mrf.mxu1 }
 0x548   :  { %v1970_v32 = vadd.f32 %v1969_v18, %v1968_v16  ;;  %v1974_v29 = vsel %vm144_vm1, %v1888_v38, 0.0 }
 0x549   :  { %v1975_v52 = vadd.f32 %v1974_v29, %v1973_v42 }
 0x54a   :  { %v1998_v20 = vadd.f32 %v6457_v53, %v1970_v32 }
 0x54c   :  { %v6485_v30 = vadd.f32 %v1998_v20, %v5598_v22 }
 0x54e   :  { %v1941_v34 = vpop.f32.mrf.mxu2  ;;  %v2016_v33 = vsel %vm144_vm1, %v6485_v30, 0.0 }
 0x54f   :  { %v1976_v44 = vsel %vm144_vm1, %v1941_v34, 0.0  ;;  %2017 = vadd.xlane.f32.xlu2 %v2016_v33  ;;  %v1891_v36 = vpop.f32.mrf.mxu1 }
 0x550   :  { %v1977_v15 = vadd.f32 %v1976_v44, %v1975_v52  ;;  %v1981_v22 = vsel %vm144_vm1, %v1891_v36, 0.0  ;;  %v2163_v36 = vld [vmem:[%s7754_s13 + $0x18] sm:$0xff] }
 0x551   :  { %v1982_v17 = vadd.f32 %v1981_v22, %v1980_v59  ;;  %2198 = vmatpush.msra.mxu3 %v2163_v36 }
 0x552   :  { %v1999_v9 = vadd.f32 %v6457_v53, %v1977_v15 }
 0x553   :  { %2199 = vmatpush.msra.mxu3 %v2162_v3 }
 0x554   :  { %v6495_v61 = vadd.f32 %v1999_v9, %v5602_v25  ;;  %v1788_v25 = vpop.f32.mrf.mxu3  ;;  %v2161_v9 = vld [vmem:[%s7754_s13 + $0x8] sm:$0xff] }
 0x555   :  { %v1985_v23 = vsel %vm144_vm1, %v1788_v25, 0.0  ;;  %2200 = vmatpush.msra.mxu3 %v2161_v9 }
 0x556   :  { %v1944_v51 = vpop.f32.mrf.mxu2  ;;  %v2019_v63 = vsel %vm144_vm1, %v6495_v61, 0.0  ;;  %v1987_v2 = vadd.f32 %v1986_v57, %v1985_v23 }
 0x557   :  { %v1983_v54 = vsel %vm144_vm1, %v1944_v51, 0.0  ;;  %2020 = vadd.xlane.f32.xlu0 %v2019_v63  ;;  %2201 = vmatpush.msra.mxu3 %v2160_v40 }
 0x558   :  { %v1984_v43 = vadd.f32 %v1983_v54, %v1982_v17 }
 0x55a   :  { %v2000_v11 = vadd.f32 %v6457_v53, %v1984_v43 }
 0x55c   :  { %v6502_v7 = vadd.f32 %v2000_v11, %v5606_v28 }
 0x55e   :  { %v2022_v60 = vsel %vm144_vm1, %v6502_v7, 0.0  ;;  %v1947_v35 = vpop.f32.mrf.mxu2 }
 0x55f   :  { %2023 = vadd.xlane.f32.xlu1 %v2022_v60  ;;  %v1990_v49 = vsel %vm144_vm1, %v1947_v35, 0.0  ;;  %v6575_v35 = vld [vmem:[%s7752_s11] ss:$0 sm:$0xff] }
 0x578   :  { %v1894_v58 = vpop.f32.mrf.mxu1 }
 0x579   :  { %v1988_v27 = vsel %vm144_vm1, %v1894_v58, 0.0 }
 0x57a   :  { %v1989_v1 = vadd.f32 %v1988_v27, %v1987_v2 }
 0x57c   :  { %v1991_v28 = vadd.f32 %v1990_v49, %v1989_v1  ;;  %v6580_v1 = vld [vmem:[%s7753_s12] ss:$0 sm:$0xff] }
 0x57e   :  { %v2001_v8 = vadd.f32 %v6457_v53, %v1991_v28 }
 0x580   :  { %v6512_v62 = vadd.f32 %v2001_v8, %v5610_v31 }
 0x582   :  { %v2025_v41 = vsel %vm144_vm1, %v6512_v62, 0.0 }
 0x583   :  { %2026 = vadd.xlane.f32.xlu2 %v2025_v41 }
 0x5a9   :  { %v2012_v10 = vpop.xlane.xlu0 %2011 }
 0x5aa   :  { %v2028_v4 = vmul.f32 %v2012_v10, %v5614_v39 }
 0x5ac   :  { %v6518_v24 = vsub.f32 %v6464_v6, %v2028_v4 }
 0x5ae   :  { %v2040_v14 = vmul.f32 %v6518_v24, %v6518_v24 }
 0x5b0   :  { %v2046_v0 = vsel %vm144_vm1, %v2040_v14, 0.0 }
 0x5b1   :  { %v2015_v48 = vpop.xlane.xlu1 %2014  ;;  %2047 = vadd.xlane.f32.xlu0 %v2046_v0 }
 0x5b2   :  { %v2029_v31 = vmul.f32 %v2015_v48, %v5614_v39 }
 0x5b4   :  { %v6525_v53 = vsub.f32 %v6472_v12, %v2029_v31 }
 0x5b6   :  { %v2041_v5 = vmul.f32 %v6525_v53, %v6525_v53 }
 0x5b8   :  { %v2049_v13 = vsel %vm144_vm1, %v2041_v5, 0.0 }
 0x5b9   :  { %2050 = vadd.xlane.f32.xlu1 %v2049_v13 }
 0x5c2   :  { %v2018_v47 = vpop.xlane.xlu2 %2017 }
 0x5c3   :  { %v2030_v46 = vmul.f32 %v2018_v47, %v5614_v39 }
 0x5c5   :  { %v6532_v26 = vsub.f32 %v6485_v30, %v2030_v46 }
 0x5c7   :  { %v2042_v16 = vmul.f32 %v6532_v26, %v6532_v26 }
 0x5c9   :  { %v2052_v19 = vsel %vm144_vm1, %v2042_v16, 0.0 }
 0x5ca   :  { %v2021_v18 = vpop.xlane.xlu0 %2020  ;;  %2053 = vadd.xlane.f32.xlu2 %v2052_v19 }
 0x5cb   :  { %v2031_v32 = vmul.f32 %v2021_v18, %v5614_v39 }
 0x5cd   :  { %v6539_v38 = vsub.f32 %v6495_v61, %v2031_v32 }
 0x5cf   :  { %v2043_v50 = vmul.f32 %v6539_v38, %v6539_v38 }
 0x5d1   :  { %v2055_v20 = vsel %vm144_vm1, %v2043_v50, 0.0 }
 0x5d2   :  { %2056 = vadd.xlane.f32.xlu0 %v2055_v20  ;;  %v2024_v21 = vpop.xlane.xlu1 %2023 }
 0x5d3   :  { %v2032_v29 = vmul.f32 %v2024_v21, %v5614_v39 }
 0x5d5   :  { %v6546_v42 = vsub.f32 %v6502_v7, %v2032_v29 }
 0x5d7   :  { %v2044_v37 = vmul.f32 %v6546_v42, %v6546_v42 }
 0x5d9   :  { %v2058_v52 = vsel %vm144_vm1, %v2044_v37, 0.0 }
 0x5da   :  { %2059 = vadd.xlane.f32.xlu1 %v2058_v52 }
 0x5f6   :  { %v2027_v34 = vpop.xlane.xlu2 %2026 }
 0x5f7   :  { %v2033_v33 = vmul.f32 %v2027_v34, %v5614_v39 }
 0x5f9   :  { %v6553_v44 = vsub.f32 %v6512_v62, %v2033_v33 }
 0x5fb   :  { %v2045_v45 = vmul.f32 %v6553_v44, %v6553_v44 }
 0x5fd   :  { %v2061_v15 = vsel %vm144_vm1, %v2045_v45, 0.0 }
 0x5fe   :  { %2062 = vadd.xlane.f32.xlu2 %v2061_v15 }
 0x624   :  { %v2048_v22 = vpop.xlane.xlu0 %2047 }
 0x625   :  { %v2064_v59 = vmul.f32 %v2048_v22, %v5614_v39 }
 0x627   :  { %v2070_v17 = vadd.f32 1e-05, %v2064_v59 }
 0x629   :  { %5242 = vrsqrt.f32 %v2070_v17  ;;  %vm2082_vm11 = vweird.f32 %v2070_v17 }
 0x62c   :  { %v2051_v51 = vpop.xlane.xlu1 %2050 }
 0x62d   :  { %v2065_v63 = vmul.f32 %v2051_v51, %v5614_v39 }
 0x62f   :  { %v5243_v54 = vpop.eup %5242  ;;  %v2071_v43 = vadd.f32 1e-05, %v2065_v63 }
 0x630   :  { %v2077_v11 = vmul.f32 %v5243_v54, %v2070_v17  ;;  %vm2083_vm10 = vweird.f32 %v5243_v54 }
 0x631   :  { %5244 = vrsqrt.f32 %v2071_v43  ;;  %vm2084_vm12 = vmor %vm2082_vm11, %vm2083_vm10  ;;  %vm2092_vm14 = vweird.f32 %v2071_v43 }
 0x632   :  { %v2078_v60 = vmul.f32 %v5243_v54, %v2077_v11 }
 0x634   :  { %v2079_v25 = vmul.f32 0.5, %v2078_v60 }
 0x636   :  { %v2080_v56 = vsub.f32 1.5, %v2079_v25 }
 0x637   :  { %v5245_v23 = vpop.eup %5244 }
 0x638   :  { %v2081_v57 = vmul.f32 %v5243_v54, %v2080_v56  ;;  %v2087_v2 = vmul.f32 %v5245_v23, %v2071_v43  ;;  %vm2093_vm13 = vweird.f32 %v5245_v23 }
 0x639   :  { %vm2094_vm15 = vmor %vm2092_vm14, %vm2093_vm13 }
 0x63a   :  { %v2085_v58 = vsel %vm2084_vm12, %v5243_v54, %v2081_v57  ;;  %v2088_v27 = vmul.f32 %v5245_v23, %v2087_v2 }
 0x63b   :  { %v2136_v49 = vmul.f32 %v2085_v58, %v6518_v24 }
 0x63c   :  { %v2089_v28 = vmul.f32 0.5, %v2088_v27 }
 0x63d   :  { %v2054_v8 = vpop.xlane.xlu2 %2053  ;;  %v2145_v41 = vmul.f32 %v6575_v35, %v2136_v49 }
 0x63e   :  { %v2066_v10 = vmul.f32 %v2054_v8, %v5614_v39  ;;  %v2090_v4 = vsub.f32 1.5, %v2089_v28 }
 0x63f   :  { %v2154_v14 = vadd.f32 %v6580_v1, %v2145_v41 }
 0x640   :  { %v2072_v0 = vadd.f32 1e-05, %v2066_v10  ;;  %v2091_v48 = vmul.f32 %v5245_v23, %v2090_v4 }
 0x641   :  { %4844 = vmatmul.msk.f32.vlgmr.msra.gmra.mxu3 %vm144_vm1, %v2154_v14 }
 0x642   :  { %5246 = vrsqrt.f32 %v2072_v0  ;;  %v2095_v31 = vsel %vm2094_vm15, %v5245_v23, %v2091_v48  ;;  %vm2102_vm3 = vweird.f32 %v2072_v0 }
 0x643   :  { %v2137_v24 = vmul.f32 %v2095_v31, %v6525_v53  ;;  %v2282_v31 = vld [vmem:[%s7756_s15 + $0x38] sm:$0xff] }
 0x644   :  { %2314 = vmatpush.msra.mxu0 %v2282_v31 }
 0x645   :  { %v2057_v5 = vpop.xlane.xlu0 %2056  ;;  %v2146_v47 = vmul.f32 %v6575_v35, %v2137_v24  ;;  %v2281_v24 = vld [vmem:[%s7756_s15 + $0x30] sm:$0xff] }
 0x646   :  { %v2067_v13 = vmul.f32 %v2057_v5, %v5614_v39  ;;  %2315 = vmatpush.msra.mxu0 %v2281_v24  ;;  %v2277_v5 = vld [vmem:[%s7756_s15 + $0x10] sm:$0xff] }
 0x647   :  { %v2155_v19 = vadd.f32 %v6580_v1, %v2146_v47  ;;  %v2275_v47 = vld [vmem:[%s7756_s15] sm:$0xff] }
 0x648   :  { %v5247_v46 = vpop.eup %5246  ;;  %v2073_v16 = vadd.f32 1e-05, %v2067_v13  ;;  %v2276_v13 = vld [vmem:[%s7756_s15 + $0x8] sm:$0xff] }
 0x649   :  { %v2097_v18 = vmul.f32 %v5247_v46, %v2072_v0  ;;  %4845 = vmatmul.msk.f32.gmra.mxu3 %vm144_vm1, %v2155_v19  ;;  %vm2103_vm2 = vweird.f32 %v5247_v46 }
 0x64a   :  { %5248 = vrsqrt.f32 %v2073_v16  ;;  %vm2104_vm4 = vmor %vm2102_vm3, %vm2103_vm2  ;;  %vm2112_vm6 = vweird.f32 %v2073_v16  ;;  %vm2287_vm2 = vcmask 523264  }
 0x64b   :  { %v2098_v32 = vmul.f32 %v5247_v46, %v2097_v18 }
 0x64d   :  { %v2099_v50 = vmul.f32 0.5, %v2098_v32  ;;  %v2060_v20 = vpop.xlane.xlu1 %2059 }
 0x64e   :  { %v2068_v21 = vmul.f32 %v2060_v20, %v5614_v39 }
 0x64f   :  { %v2100_v29 = vsub.f32 1.5, %v2099_v50 }
 0x650   :  { %v5249_v53 = vpop.eup %5248  ;;  %v2074_v37 = vadd.f32 1e-05, %v2068_v21 }
 0x651   :  { %v2101_v52 = vmul.f32 %v5247_v46, %v2100_v29  ;;  %v2107_v34 = vmul.f32 %v5249_v53, %v2073_v16  ;;  %vm2113_vm5 = vweird.f32 %v5249_v53 }
 0x652   :  { %5250 = vrsqrt.f32 %v2074_v37  ;;  %vm2114_vm8 = vmor %vm2112_vm6, %vm2113_vm5  ;;  %vm2122_vm11 = vweird.f32 %v2074_v37 }
 0x653   :  { %v2105_v33 = vsel %vm2104_vm4, %v5247_v46, %v2101_v52  ;;  %v2108_v45 = vmul.f32 %v5249_v53, %v2107_v34  ;;  %v6637_v46 = vld [vmem:[%s7755_s14] ss:$0 sm:$0xff] }
 0x654   :  { %v2138_v15 = vmul.f32 %v2105_v33, %v6532_v26 }
 0x655   :  { %v2109_v36 = vmul.f32 0.5, %v2108_v45 }
 0x656   :  { %v2147_v3 = vmul.f32 %v6575_v35, %v2138_v15 }
 0x657   :  { %v2110_v9 = vsub.f32 1.5, %v2109_v36 }
 0x658   :  { %v5251_v40 = vpop.eup %5250  ;;  %v2156_v22 = vadd.f32 %v6580_v1, %v2147_v3 }
 0x659   :  { %v2111_v59 = vmul.f32 %v5249_v53, %v2110_v9  ;;  %v2117_v17 = vmul.f32 %v5251_v40, %v2074_v37  ;;  %vm2123_vm10 = vweird.f32 %v5251_v40 }
 0x65a   :  { %4846 = vmatmul.msk.f32.gmra.mxu3 %vm144_vm1, %v2156_v22  ;;  %vm2124_vm12 = vmor %vm2122_vm11, %vm2123_vm10 }
 0x65b   :  { %v2115_v51 = vsel %vm2114_vm8, %v5249_v53, %v2111_v59  ;;  %v2118_v63 = vmul.f32 %v5251_v40, %v2117_v17 }
 0x65c   :  { %v2139_v54 = vmul.f32 %v2115_v51, %v6539_v38 }
 0x65d   :  { %v2119_v43 = vmul.f32 0.5, %v2118_v63 }
 0x65e   :  { %v2148_v26 = vmul.f32 %v6575_v35, %v2139_v54 }
 0x65f   :  { %v2120_v11 = vsub.f32 1.5, %v2119_v43 }
 0x660   :  { %v2157_v60 = vadd.f32 %v6580_v1, %v2148_v26 }
 0x661   :  { %v2121_v25 = vmul.f32 %v5251_v40, %v2120_v11 }
 0x662   :  { %4847 = vmatmul.msk.f32.gmra.mxu3 %vm144_vm1, %v2157_v60 }
 0x663   :  { %v2125_v56 = vsel %vm2124_vm12, %v5251_v40, %v2121_v25 }
 0x664   :  { %v2140_v23 = vmul.f32 %v2125_v56, %v6546_v42 }
 0x666   :  { %v2149_v57 = vmul.f32 %v6575_v35, %v2140_v23 }
 0x668   :  { %v2158_v2 = vadd.f32 %v6580_v1, %v2149_v57 }
 0x66a   :  { %4848 = vmatmul.msk.f32.gmra.mxu3 %vm144_vm1, %v2158_v2 }
 0x671   :  { %v2063_v38 = vpop.xlane.xlu2 %2062 }
 0x672   :  { %v2069_v58 = vmul.f32 %v2063_v38, %v5614_v39 }
 0x674   :  { %v2075_v27 = vadd.f32 1e-05, %v2069_v58 }
 0x676   :  { %5252 = vrsqrt.f32 %v2075_v27  ;;  %vm2132_vm14 = vweird.f32 %v2075_v27 }
 0x67c   :  { %v5253_v49 = vpop.eup %5252 }
 0x67d   :  { %v2127_v28 = vmul.f32 %v5253_v49, %v2075_v27  ;;  %vm2133_vm13 = vweird.f32 %v5253_v49 }
 0x67e   :  { %vm2134_vm15 = vmor %vm2132_vm14, %vm2133_vm13 }
 0x67f   :  { %v2128_v8 = vmul.f32 %v5253_v49, %v2127_v28 }
 0x681   :  { %v2129_v41 = vmul.f32 0.5, %v2128_v8 }
 0x683   :  { %v2130_v10 = vsub.f32 1.5, %v2129_v41 }
 0x685   :  { %v2131_v4 = vmul.f32 %v5253_v49, %v2130_v10 }
 0x687   :  { %v2135_v42 = vsel %vm2134_vm15, %v5253_v49, %v2131_v4 }
 0x688   :  { %v2141_v14 = vmul.f32 %v2135_v42, %v6553_v44  ;;  %v2280_v44 = vld [vmem:[%s7756_s15 + $0x28] sm:$0xff] }
 0x689   :  { %2316 = vmatpush.msra.mxu0 %v2280_v44 }
 0x68a   :  { %v2150_v0 = vmul.f32 %v6575_v35, %v2141_v14  ;;  %v2279_v35 = vld [vmem:[%s7756_s15 + $0x20] sm:$0xff] }
 0x68b   :  { %2317 = vmatpush.msra.mxu0 %v2279_v35 }
 0x68c   :  { %v2159_v48 = vadd.f32 %v6580_v1, %v2150_v0  ;;  %v2278_v1 = vld [vmem:[%s7756_s15 + $0x18] sm:$0xff] }
 0x68d   :  { %2318 = vmatpush.msra.mxu0 %v2278_v1 }
 0x68e   :  { %4849 = vmatmul.msk.f32.gmra.mxu3 %vm144_vm1, %v2159_v48 }
 0x68f   :  { %2319 = vmatpush.msra.mxu0 %v2277_v5 }
 0x691   :  { %2320 = vmatpush.msra.mxu0 %v2276_v13 }
 0x693   :  { %2321 = vmatpush.msra.mxu0 %v2275_v47 }
 0x6c4   :  { %v2203_v16 = vpop.f32.mrf.mxu3 }
 0x6c5   :  { %v2204_v19 = vadd.f32 %v6637_v46, %v2203_v16 }
 0x6c7   :  { %v2227_v18 = vmul.f32 0.044715, %v2204_v19  ;;  %v2221_v36 = vmul.f32 0.5, %v2204_v19 }
 0x6c9   :  { %v2233_v32 = vmul.f32 %v2227_v18, %v2204_v19 }
 0x6cb   :  { %v2239_v50 = vmul.f32 %v2233_v32, %v2204_v19 }
 0x6cc   :  { %v2206_v20 = vpop.f32.mrf.mxu3 }
 0x6cd   :  { %v2245_v21 = vadd.f32 %v2239_v50, %v2204_v19  ;;  %v2207_v29 = vadd.f32 %v6637_v46, %v2206_v20 }
 0x6cf   :  { %v2251_v53 = vmul.f32 0.7978846, %v2245_v21  ;;  %v2228_v37 = vmul.f32 0.044715, %v2207_v29  ;;  %v2222_v51 = vmul.f32 0.5, %v2207_v29 }
 0x6d1   :  { %5254 = vtanh.f32 %v2251_v53  ;;  %v2234_v52 = vmul.f32 %v2228_v37, %v2207_v29 }
 0x6d3   :  { %v2240_v34 = vmul.f32 %v2234_v52, %v2207_v29 }
 0x6d5   :  { %v2246_v33 = vadd.f32 %v2240_v34, %v2207_v29  ;;  %v5122_v34 = vld [vmem:[%s7757_s16] ss:$0 sm:$0xff] }
 0x6d7   :  { %v5255_v45 = vpop.eup %5254  ;;  %v2252_v15 = vmul.f32 0.7978846, %v2246_v33 }
 0x6d8   :  { %v2263_v3 = vadd.f32 1.0, %v5255_v45 }
 0x6d9   :  { %5256 = vtanh.f32 %v2252_v15 }
 0x6da   :  { %v2269_v9 = vmul.f32 %v2263_v3, %v2221_v36 }
 0x6dc   :  { %4850 = vmatmul.msk.f32.vlgmr.msra.gmra.mxu0 %vm2287_vm2, %v2269_v9 }
 0x6dd   :  { %v2209_v40 = vpop.f32.mrf.mxu3 }
 0x6de   :  { %v2210_v22 = vadd.f32 %v6637_v46, %v2209_v40 }
 0x6df   :  { %v5257_v59 = vpop.eup %5256 }
 0x6e0   :  { %v2229_v17 = vmul.f32 0.044715, %v2210_v22  ;;  %v2264_v63 = vadd.f32 1.0, %v5257_v59  ;;  %v2223_v41 = vmul.f32 0.5, %v2210_v22 }
 0x6e2   :  { %v2235_v54 = vmul.f32 %v2229_v17, %v2210_v22  ;;  %v2270_v43 = vmul.f32 %v2264_v63, %v2222_v51 }
 0x6e4   :  { %v2241_v26 = vmul.f32 %v2235_v54, %v2210_v22  ;;  %4851 = vmatmul.msk.f32.gmra.mxu0 %vm2287_vm2, %v2270_v43 }
 0x6e5   :  { %v2212_v11 = vpop.f32.mrf.mxu3 }
 0x6e6   :  { %v2213_v60 = vadd.f32 %v6637_v46, %v2212_v11  ;;  %v2247_v25 = vadd.f32 %v2241_v26, %v2210_v22 }
 0x6e8   :  { %v2230_v56 = vmul.f32 0.044715, %v2213_v60  ;;  %v2253_v23 = vmul.f32 0.7978846, %v2247_v25  ;;  %v2224_v24 = vmul.f32 0.5, %v2213_v60 }
 0x6ea   :  { %v2236_v57 = vmul.f32 %v2230_v56, %v2213_v60  ;;  %5258 = vtanh.f32 %v2253_v23 }
 0x6ec   :  { %v2242_v2 = vmul.f32 %v2236_v57, %v2213_v60 }
 0x6ed   :  { %v2215_v38 = vpop.f32.mrf.mxu3 }
 0x6ee   :  { %v2216_v58 = vadd.f32 %v6637_v46, %v2215_v38  ;;  %v2248_v27 = vadd.f32 %v2242_v2, %v2213_v60 }
 0x6f0   :  { %v5259_v49 = vpop.eup %5258  ;;  %v2231_v28 = vmul.f32 0.044715, %v2216_v58  ;;  %v2254_v8 = vmul.f32 0.7978846, %v2248_v27  ;;  %v2225_v5 = vmul.f32 0.5, %v2216_v58 }
 0x6f1   :  { %v2265_v10 = vadd.f32 1.0, %v5259_v49 }
 0x6f2   :  { %v2237_v4 = vmul.f32 %v2231_v28, %v2216_v58  ;;  %5260 = vtanh.f32 %v2254_v8 }
 0x6f3   :  { %v2271_v42 = vmul.f32 %v2265_v10, %v2223_v41 }
 0x6f4   :  { %v2243_v14 = vmul.f32 %v2237_v4, %v2216_v58 }
 0x6f5   :  { %4852 = vmatmul.msk.f32.gmra.mxu0 %vm2287_vm2, %v2271_v42 }
 0x6f6   :  { %v2249_v0 = vadd.f32 %v2243_v14, %v2216_v58 }
 0x6f8   :  { %v5261_v48 = vpop.eup %5260  ;;  %v2255_v31 = vmul.f32 0.7978846, %v2249_v0 }
 0x6f9   :  { %v2266_v44 = vadd.f32 1.0, %v5261_v48 }
 0x6fa   :  { %5262 = vtanh.f32 %v2255_v31 }
 0x6fb   :  { %v2272_v35 = vmul.f32 %v2266_v44, %v2224_v24 }
 0x6fd   :  { %4853 = vmatmul.msk.f32.gmra.mxu0 %vm2287_vm2, %v2272_v35 }
 0x700   :  { %v5263_v1 = vpop.eup %5262 }
 0x701   :  { %v2267_v13 = vadd.f32 1.0, %v5263_v1 }
 0x703   :  { %v2273_v47 = vmul.f32 %v2267_v13, %v2225_v5 }
 0x705   :  { %4854 = vmatmul.msk.f32.gmra.mxu0 %vm2287_vm2, %v2273_v47 }
 0x711   :  { %v2218_v16 = vpop.f32.mrf.mxu3 }
 0x712   :  { %v2219_v19 = vadd.f32 %v6637_v46, %v2218_v16 }
 0x714   :  { %v2232_v18 = vmul.f32 0.044715, %v2219_v19  ;;  %v2226_v53 = vmul.f32 0.5, %v2219_v19 }
 0x716   :  { %v2238_v32 = vmul.f32 %v2232_v18, %v2219_v19 }
 0x718   :  { %v2244_v50 = vmul.f32 %v2238_v32, %v2219_v19 }
 0x71a   :  { %v2250_v20 = vadd.f32 %v2244_v50, %v2219_v19  ;;  %v4861_v50 = vld [vmem:[%s7747_s6 + $0x98] sm:$0xff] }
 0x71b   :  { %2548 = vmatpush.msra.mxu1 %v4861_v50 }
 0x71c   :  { %v2256_v21 = vmul.f32 0.7978846, %v2250_v20  ;;  %v4865_v20 = vld [vmem:[%s7747_s6 + $0xb8] sm:$0xff] }
 0x71d   :  { %2583 = vmatpush.msra.mxu2 %v4865_v20 }
 0x71e   :  { %5264 = vtanh.f32 %v2256_v21  ;;  %v4869_v21 = vld [vmem:[%s7747_s6 + $0xd8] sm:$0xff] }
 0x71f   :  { %2618 = vmatpush.msrb.mxu3 %v4869_v21 }
 0x724   :  { %v5265_v29 = vpop.eup %5264 }
 0x725   :  { %v2268_v37 = vadd.f32 1.0, %v5265_v29  ;;  %v4873_v29 = vld [vmem:[%s7747_s6 + $0xf8] sm:$0xff] }
 0x726   :  { %2653 = vmatpush.msrb.mxu0 %v4873_v29 }
 0x727   :  { %v2274_v52 = vmul.f32 %v2268_v37, %v2226_v53  ;;  %v4860_v53 = vld [vmem:[%s7747_s6 + $0x90] sm:$0xff] }
 0x728   :  { %v4864_v37 = vld [vmem:[%s7747_s6 + $0xb0] sm:$0xff]  ;;  %2549 = vmatpush.msra.mxu1 %v4860_v53 }
 0x729   :  { %4855 = vmatmul.msk.f32.gmra.mxu0 %vm2287_vm2, %v2274_v52  ;;  %v4868_v52 = vld [vmem:[%s7747_s6 + $0xd0] sm:$0xff]  ;;  %2584 = vmatpush.msra.mxu2 %v4864_v37 }
 0x72a   :  { %2619 = vmatpush.msrb.mxu3 %v4868_v52 }
 0x759   :  { %v2323_v33 = vpop.f32.mrf.mxu0 }
 0x75a   :  { %v2324_v45 = vadd.f32 %v5122_v34, %v2323_v33  ;;  %v4859_v33 = vld [vmem:[%s7747_s6 + $0x88] sm:$0xff] }
 0x75b   :  { %2550 = vmatpush.msra.mxu1 %v4859_v33 }
 0x75c   :  { %v6655_v46 = vadd.f32 %v2324_v45, %v6464_v6  ;;  %v4863_v45 = vld [vmem:[%s7747_s6 + $0xa8] sm:$0xff] }
 0x75d   :  { %2585 = vmatpush.msra.mxu2 %v4863_v45 }
 0x75e   :  { %v2351_v15 = vsel %vm144_vm1, %v6655_v46, 0.0 }
 0x75f   :  { %2352 = vadd.xlane.f32.xlu0 %v2351_v15  ;;  %v4867_v15 = vld [vmem:[%s7747_s6 + $0xc8] sm:$0xff] }
 0x760   :  { %2620 = vmatpush.msrb.mxu3 %v4867_v15 }
 0x761   :  { %v2326_v36 = vpop.f32.mrf.mxu0 }
 0x762   :  { %v2327_v3 = vadd.f32 %v5122_v34, %v2326_v36  ;;  %v4871_v36 = vld [vmem:[%s7747_s6 + $0xe8] sm:$0xff] }
 0x764   :  { %v6660_v9 = vadd.f32 %v2327_v3, %v6472_v12  ;;  %v4858_v3 = vld [vmem:[%s7747_s6 + $0x80] sm:$0xff] }
 0x765   :  { %2551 = vmatpush.msra.mxu1 %v4858_v3 }
 0x766   :  { %v2354_v40 = vsel %vm144_vm1, %v6660_v9, 0.0 }
 0x767   :  { %2355 = vadd.xlane.f32.xlu1 %v2354_v40  ;;  %v4862_v40 = vld [vmem:[%s7747_s6 + $0xa0] sm:$0xff] }
 0x768   :  { %2586 = vmatpush.msra.mxu2 %v4862_v40 }
 0x772   :  { %v2329_v22 = vpop.f32.mrf.mxu0 }
 0x773   :  { %v2330_v59 = vadd.f32 %v5122_v34, %v2329_v22  ;;  %v4866_v22 = vld [vmem:[%s7747_s6 + $0xc0] sm:$0xff] }
 0x774   :  { %2621 = vmatpush.msrb.mxu3 %v4866_v22 }
 0x775   :  { %v6665_v17 = vadd.f32 %v2330_v59, %v6485_v30  ;;  %v4870_v59 = vld [vmem:[%s7747_s6 + $0xe0] sm:$0xff] }
 0x777   :  { %v2357_v6 = vsel %vm144_vm1, %v6665_v17, 0.0 }
 0x778   :  { %2358 = vadd.xlane.f32.xlu2 %v2357_v6 }
 0x77a   :  { %v2332_v51 = vpop.f32.mrf.mxu0 }
 0x77b   :  { %v2333_v63 = vadd.f32 %v5122_v34, %v2332_v51 }
 0x77d   :  { %v6670_v54 = vadd.f32 %v2333_v63, %v6495_v61 }
 0x77f   :  { %v2360_v12 = vsel %vm144_vm1, %v6670_v54, 0.0 }
 0x780   :  { %2361 = vadd.xlane.f32.xlu0 %v2360_v12 }
 0x782   :  { %v2335_v43 = vpop.f32.mrf.mxu0 }
 0x783   :  { %v2336_v26 = vadd.f32 %v5122_v34, %v2335_v43 }
 0x785   :  { %v6675_v11 = vadd.f32 %v2336_v26, %v6502_v7 }
 0x787   :  { %v2363_v30 = vsel %vm144_vm1, %v6675_v11, 0.0 }
 0x788   :  { %2364 = vadd.xlane.f32.xlu1 %v2363_v30 }
 0x7a6   :  { %v2338_v60 = vpop.f32.mrf.mxu0 }
 0x7a7   :  { %v2339_v25 = vadd.f32 %v5122_v34, %v2338_v60  ;;  %v4872_v34 = vld [vmem:[%s7747_s6 + $0xf0] sm:$0xff] }
 0x7a8   :  { %2654 = vmatpush.msrb.mxu0 %v4872_v34 }
 0x7a9   :  { %v6680_v56 = vadd.f32 %v2339_v25, %v6512_v62 }
 0x7aa   :  { %2655 = vmatpush.msrb.mxu0 %v4871_v36 }
 0x7ab   :  { %v2366_v61 = vsel %vm144_vm1, %v6680_v56, 0.0 }
 0x7ac   :  { %2367 = vadd.xlane.f32.xlu2 %v2366_v61  ;;  %2656 = vmatpush.msrb.mxu0 %v4870_v59 }
 0x7d2   :  { %v2353_v23 = vpop.xlane.xlu0 %2352 }
 0x7d3   :  { %v2369_v57 = vmul.f32 %v2353_v23, %v5614_v39 }
 0x7d5   :  { %v6686_v2 = vsub.f32 %v6655_v46, %v2369_v57 }
 0x7d7   :  { %v2381_v7 = vmul.f32 %v6686_v2, %v6686_v2 }
 0x7d9   :  { %v2387_v38 = vsel %vm144_vm1, %v2381_v7, 0.0 }
 0x7da   :  { %v2356_v58 = vpop.xlane.xlu1 %2355  ;;  %2388 = vadd.xlane.f32.xlu0 %v2387_v38 }
 0x7db   :  { %v2370_v62 = vmul.f32 %v2356_v58, %v5614_v39  ;;  %v6779_v58 = vld [vmem:[%s7777_s0 + $0x1] ss:$0 sm:$0xff] }
 0x7dd   :  { %v6693_v27 = vsub.f32 %v6660_v9, %v2370_v62 }
 0x7df   :  { %v2382_v49 = vmul.f32 %v6693_v27, %v6693_v27 }
 0x7e1   :  { %v2390_v28 = vsel %vm144_vm1, %v2382_v49, 0.0 }
 0x7e2   :  { %2391 = vadd.xlane.f32.xlu1 %v2390_v28  ;;  %v6784_v28 = vld [vmem:[%s7778_s5 + $0x1] ss:$0 sm:$0xff] }
 0x7eb   :  { %v2359_v8 = vpop.xlane.xlu2 %2358 }
 0x7ec   :  { %v2371_v41 = vmul.f32 %v2359_v8, %v5614_v39 }
 0x7ee   :  { %v6700_v10 = vsub.f32 %v6665_v17, %v2371_v41 }
 0x7f0   :  { %v2383_v4 = vmul.f32 %v6700_v10, %v6700_v10 }
 0x7f2   :  { %v2393_v42 = vsel %vm144_vm1, %v2383_v4, 0.0 }
 0x7f3   :  { %v2362_v14 = vpop.xlane.xlu0 %2361  ;;  %2394 = vadd.xlane.f32.xlu2 %v2393_v42 }
 0x7f4   :  { %v2372_v0 = vmul.f32 %v2362_v14, %v5614_v39 }
 0x7f6   :  { %v6707_v48 = vsub.f32 %v6670_v54, %v2372_v0 }
 0x7f8   :  { %v2384_v31 = vmul.f32 %v6707_v48, %v6707_v48 }
 0x7fa   :  { %v2396_v24 = vsel %vm144_vm1, %v2384_v31, 0.0 }
 0x7fb   :  { %v2365_v44 = vpop.xlane.xlu1 %2364  ;;  %2397 = vadd.xlane.f32.xlu0 %v2396_v24 }
 0x7fc   :  { %v2373_v35 = vmul.f32 %v2365_v44, %v5614_v39 }
 0x7fe   :  { %v6714_v1 = vsub.f32 %v6675_v11, %v2373_v35 }
 0x800   :  { %v2385_v5 = vmul.f32 %v6714_v1, %v6714_v1 }
 0x802   :  { %v2399_v13 = vsel %vm144_vm1, %v2385_v5, 0.0 }
 0x803   :  { %2400 = vadd.xlane.f32.xlu1 %v2399_v13 }
 0x81f   :  { %v2368_v47 = vpop.xlane.xlu2 %2367 }
 0x820   :  { %v2374_v16 = vmul.f32 %v2368_v47, %v5614_v39 }
 0x822   :  { %v6721_v19 = vsub.f32 %v6680_v56, %v2374_v16 }
 0x824   :  { %v2386_v18 = vmul.f32 %v6721_v19, %v6721_v19 }
 0x826   :  { %v2402_v32 = vsel %vm144_vm1, %v2386_v18, 0.0 }
 0x827   :  { %2403 = vadd.xlane.f32.xlu2 %v2402_v32 }
 0x84d   :  { %v2389_v6 = vpop.xlane.xlu0 %2388 }
 0x84e   :  { %v2405_v51 = vmul.f32 %v2389_v6, %v5614_v39 }
 0x850   :  { %v2411_v63 = vadd.f32 1e-05, %v2405_v51 }
 0x852   :  { %5266 = vrsqrt.f32 %v2411_v63  ;;  %vm2423_vm4 = vweird.f32 %v2411_v63 }
 0x855   :  { %v2392_v12 = vpop.xlane.xlu1 %2391 }
 0x856   :  { %v2406_v43 = vmul.f32 %v2392_v12, %v5614_v39 }
 0x858   :  { %v5267_v26 = vpop.eup %5266  ;;  %v2412_v30 = vadd.f32 1e-05, %v2406_v43 }
 0x859   :  { %v2418_v60 = vmul.f32 %v5267_v26, %v2411_v63  ;;  %vm2424_vm3 = vweird.f32 %v5267_v26 }
 0x85a   :  { %5268 = vrsqrt.f32 %v2412_v30  ;;  %vm2425_vm5 = vmor %vm2423_vm4, %vm2424_vm3  ;;  %vm2433_vm8 = vweird.f32 %v2412_v30 }
 0x85b   :  { %v2419_v25 = vmul.f32 %v5267_v26, %v2418_v60 }
 0x85d   :  { %v2420_v61 = vmul.f32 0.5, %v2419_v25 }
 0x85f   :  { %v2421_v23 = vsub.f32 1.5, %v2420_v61 }
 0x860   :  { %v5269_v57 = vpop.eup %5268 }
 0x861   :  { %v2422_v7 = vmul.f32 %v5267_v26, %v2421_v23  ;;  %v2428_v38 = vmul.f32 %v5269_v57, %v2412_v30  ;;  %vm2434_vm6 = vweird.f32 %v5269_v57 }
 0x862   :  { %vm2435_vm10 = vmor %vm2433_vm8, %vm2434_vm6 }
 0x863   :  { %v2426_v62 = vsel %vm2425_vm5, %v5267_v26, %v2422_v7  ;;  %v2429_v49 = vmul.f32 %v5269_v57, %v2428_v38  ;;  %v4905_v38 = vld [vmem:[%s7748_s7 + $0xb8] sm:$0xff] }
 0x864   :  { %v2477_v8 = vmul.f32 %v2426_v62, %v6686_v2  ;;  %v4909_v62 = vld [vmem:[%s7748_s7 + $0xd8] sm:$0xff]  ;;  %2740 = vmatpush.msrb.mxu2 %v4905_v38 }
 0x865   :  { %v2430_v41 = vmul.f32 0.5, %v2429_v49  ;;  %v4913_v49 = vld [vmem:[%s7748_s7 + $0xf8] sm:$0xff]  ;;  %2775 = vmatpush.msra.mxu3 %v4909_v62 }
 0x866   :  { %v2395_v4 = vpop.xlane.xlu2 %2394  ;;  %v2486_v42 = vmul.f32 %v6779_v58, %v2477_v8  ;;  %v4900_v8 = vld [vmem:[%s7748_s7 + $0x90] sm:$0xff]  ;;  %2810 = vmatpush.msra.mxu0 %v4913_v49 }
 0x867   :  { %v2407_v14 = vmul.f32 %v2395_v4, %v5614_v39  ;;  %v2431_v0 = vsub.f32 1.5, %v2430_v41  ;;  %v4904_v41 = vld [vmem:[%s7748_s7 + $0xb0] sm:$0xff] }
 0x868   :  { %v6790_v31 = vadd.f32 %v6784_v28, %v2486_v42  ;;  %v4908_v4 = vld [vmem:[%s7748_s7 + $0xd0] sm:$0xff]  ;;  %2741 = vmatpush.msrb.mxu2 %v4904_v41 }
 0x869   :  { %v2413_v24 = vadd.f32 1e-05, %v2407_v14  ;;  %v2432_v44 = vmul.f32 %v5269_v57, %v2431_v0  ;;  %v4912_v14 = vld [vmem:[%s7748_s7 + $0xf0] sm:$0xff]  ;;  %v4899_v0 = vld [vmem:[%s7748_s7 + $0x88] sm:$0xff]  ;;  %2776 = vmatpush.msra.mxu3 %v4908_v4 }
 0x86a   :  { %4874 = vmatmul.msk.f32.vlgmr.msra.gmra.mxu1 %vm144_vm1, %v6790_v31  ;;  %4880 = vmatmul.msk.f32.vlgmr.msra.gmra.mxu2 %vm144_vm1, %v6790_v31 }
 0x86b   :  { %5270 = vrsqrt.f32 %v2413_v24  ;;  %v2436_v2 = vsel %vm2435_vm10, %v5269_v57, %v2432_v44  ;;  %4886 = vmatmul.msk.f32.vlgmr.msrb.gmra.mxu3 %vm144_vm1, %v6790_v31  ;;  %4892 = vmatmul.msk.f32.vlgmr.msrb.gmra.mxu0 %vm144_vm1, %v6790_v31  ;;  %vm2443_vm12 = vweird.f32 %v2413_v24 }
 0x86c   :  { %v2478_v35 = vmul.f32 %v2436_v2, %v6693_v27  ;;  %v4907_v2 = vld [vmem:[%s7748_s7 + $0xc8] sm:$0xff]  ;;  %2811 = vmatpush.msra.mxu0 %v4912_v14 }
 0x86d   :  { %2777 = vmatpush.msra.mxu3 %v4907_v2 }
 0x86e   :  { %v2398_v5 = vpop.xlane.xlu0 %2397  ;;  %v2487_v13 = vmul.f32 %v6779_v58, %v2478_v35  ;;  %v4911_v35 = vld [vmem:[%s7748_s7 + $0xe8] sm:$0xff] }
 0x86f   :  { %v2408_v47 = vmul.f32 %v2398_v5, %v5614_v39  ;;  %v4898_v5 = vld [vmem:[%s7748_s7 + $0x80] sm:$0xff]  ;;  %2812 = vmatpush.msra.mxu0 %v4911_v35 }
 0x870   :  { %v6804_v18 = vadd.f32 %v6784_v28, %v2487_v13  ;;  %v4902_v13 = vld [vmem:[%s7748_s7 + $0xa0] sm:$0xff] }
 0x871   :  { %v5271_v16 = vpop.eup %5270  ;;  %v2414_v32 = vadd.f32 1e-05, %v2408_v47  ;;  %v4906_v47 = vld [vmem:[%s7748_s7 + $0xc0] sm:$0xff] }
 0x872   :  { %v2438_v50 = vmul.f32 %v5271_v16, %v2413_v24  ;;  %4875 = vmatmul.msk.f32.gmra.mxu1 %vm144_vm1, %v6804_v18  ;;  %4881 = vmatmul.msk.f32.gmra.mxu2 %vm144_vm1, %v6804_v18  ;;  %vm2444_vm11 = vweird.f32 %v5271_v16  ;;  %v4903_v24 = vld [vmem:[%s7748_s7 + $0xa8] sm:$0xff] }
 0x873   :  { %5272 = vrsqrt.f32 %v2414_v32  ;;  %4887 = vmatmul.msk.f32.gmra.mxu3 %vm144_vm1, %v6804_v18  ;;  %4893 = vmatmul.msk.f32.gmra.mxu0 %vm144_vm1, %v6804_v18  ;;  %vm2445_vm13 = vmor %vm2443_vm12, %vm2444_vm11  ;;  %vm2453_vm15 = vweird.f32 %v2414_v32 }
 0x874   :  { %v2439_v20 = vmul.f32 %v5271_v16, %v2438_v50  ;;  %2742 = vmatpush.msrb.mxu2 %v4903_v24  ;;  %2778 = vmatpush.msra.mxu3 %v4906_v47 }
 0x876   :  { %v2440_v27 = vmul.f32 0.5, %v2439_v20  ;;  %v2401_v21 = vpop.xlane.xlu1 %2400  ;;  %2743 = vmatpush.msrb.mxu2 %v4902_v13 }
 0x877   :  { %v2409_v29 = vmul.f32 %v2401_v21, %v5614_v39 }
 0x878   :  { %v2441_v53 = vsub.f32 1.5, %v2440_v27 }
 0x879   :  { %v5273_v37 = vpop.eup %5272  ;;  %v2415_v52 = vadd.f32 1e-05, %v2409_v29 }
 0x87a   :  { %v2442_v34 = vmul.f32 %v5271_v16, %v2441_v53  ;;  %v2448_v33 = vmul.f32 %v5273_v37, %v2414_v32  ;;  %vm2454_vm14 = vweird.f32 %v5273_v37  ;;  %v4910_v32 = vld [vmem:[%s7748_s7 + $0xe0] sm:$0xff] }
 0x87b   :  { %5274 = vrsqrt.f32 %v2415_v52  ;;  %vm2455_vm3 = vmor %vm2453_vm15, %vm2454_vm14  ;;  %vm2463_vm5 = vweird.f32 %v2415_v52  ;;  %2813 = vmatpush.msra.mxu0 %v4910_v32 }
 0x87c   :  { %v2446_v45 = vsel %vm2445_vm13, %v5271_v16, %v2442_v34  ;;  %v2449_v15 = vmul.f32 %v5273_v37, %v2448_v33 }
 0x87d   :  { %v2479_v36 = vmul.f32 %v2446_v45, %v6700_v10  ;;  %v4953_v45 = vld [vmem:[%s7749_s8 + $0xf8] sm:$0xff] }
 0x87e   :  { %v2450_v3 = vmul.f32 0.5, %v2449_v15  ;;  %v4940_v15 = vld [vmem:[%s7749_s8 + $0x90] sm:$0xff]  ;;  %2967 = vmatpush.msrb.mxu0 %v4953_v45 }
 0x87f   :  { %v2488_v40 = vmul.f32 %v6779_v58, %v2479_v36  ;;  %v4944_v36 = vld [vmem:[%s7749_s8 + $0xb0] sm:$0xff] }
 0x880   :  { %v2451_v22 = vsub.f32 1.5, %v2450_v3  ;;  %v4948_v3 = vld [vmem:[%s7749_s8 + $0xd0] sm:$0xff] }
 0x881   :  { %v5275_v59 = vpop.eup %5274  ;;  %v6818_v6 = vadd.f32 %v6784_v28, %v2488_v40  ;;  %v4952_v40 = vld [vmem:[%s7749_s8 + $0xf0] sm:$0xff] }
 0x882   :  { %v2452_v51 = vmul.f32 %v5273_v37, %v2451_v22  ;;  %v2458_v63 = vmul.f32 %v5275_v59, %v2415_v52  ;;  %vm2464_vm4 = vweird.f32 %v5275_v59  ;;  %v4939_v22 = vld [vmem:[%s7749_s8 + $0x88] sm:$0xff]  ;;  %2968 = vmatpush.msrb.mxu0 %v4952_v40 }
 0x883   :  { %4876 = vmatmul.msk.f32.gmra.mxu1 %vm144_vm1, %v6818_v6  ;;  %4882 = vmatmul.msk.f32.gmra.mxu2 %vm144_vm1, %v6818_v6  ;;  %vm2465_vm6 = vmor %vm2463_vm5, %vm2464_vm4 }
 0x884   :  { %v2456_v10 = vsel %vm2455_vm3, %v5273_v37, %v2452_v51  ;;  %v2459_v12 = vmul.f32 %v5275_v59, %v2458_v63  ;;  %4888 = vmatmul.msk.f32.gmra.mxu3 %vm144_vm1, %v6818_v6  ;;  %4894 = vmatmul.msk.f32.gmra.mxu0 %vm144_vm1, %v6818_v6  ;;  %v4947_v51 = vld [vmem:[%s7749_s8 + $0xc8] sm:$0xff] }
 0x885   :  { %v2480_v43 = vmul.f32 %v2456_v10, %v6707_v48  ;;  %v4951_v63 = vld [vmem:[%s7749_s8 + $0xe8] sm:$0xff]  ;;  %v4938_v10 = vld [vmem:[%s7749_s8 + $0x80] sm:$0xff] }
 0x886   :  { %v2460_v26 = vmul.f32 0.5, %v2459_v12  ;;  %v4942_v12 = vld [vmem:[%s7749_s8 + $0xa0] sm:$0xff]  ;;  %2969 = vmatpush.msrb.mxu0 %v4951_v63 }
 0x887   :  { %v2489_v30 = vmul.f32 %v6779_v58, %v2480_v43  ;;  %v4946_v43 = vld [vmem:[%s7749_s8 + $0xc0] sm:$0xff] }
 0x888   :  { %v2461_v60 = vsub.f32 1.5, %v2460_v26  ;;  %v4950_v26 = vld [vmem:[%s7749_s8 + $0xe0] sm:$0xff] }
 0x889   :  { %v6831_v25 = vadd.f32 %v6784_v28, %v2489_v30  ;;  %2970 = vmatpush.msrb.mxu0 %v4950_v26 }
 0x88a   :  { %v2462_v61 = vmul.f32 %v5275_v59, %v2461_v60 }
 0x88b   :  { %4877 = vmatmul.msk.f32.gmra.mxu1 %vm144_vm1, %v6831_v25  ;;  %4883 = vmatmul.msk.f32.gmra.mxu2 %vm144_vm1, %v6831_v25 }
 0x88c   :  { %v2466_v23 = vsel %vm2465_vm6, %v5275_v59, %v2462_v61  ;;  %4889 = vmatmul.msk.f32.gmra.mxu3 %vm144_vm1, %v6831_v25  ;;  %4895 = vmatmul.msk.f32.gmra.mxu0 %vm144_vm1, %v6831_v25  ;;  %v4943_v59 = vld [vmem:[%s7749_s8 + $0xa8] sm:$0xff] }
 0x88d   :  { %v2481_v48 = vmul.f32 %v2466_v23, %v6714_v1  ;;  %v4901_v1 = vld [vmem:[%s7748_s7 + $0x98] sm:$0xff] }
 0x88e   :  { %2705 = vmatpush.msrb.mxu1 %v4901_v1 }
 0x88f   :  { %v2490_v57 = vmul.f32 %v6779_v58, %v2481_v48 }
 0x890   :  { %2706 = vmatpush.msrb.mxu1 %v4900_v8 }
 0x891   :  { %v6844_v7 = vadd.f32 %v6784_v28, %v2490_v57 }
 0x892   :  { %2707 = vmatpush.msrb.mxu1 %v4899_v0 }
 0x893   :  { %4878 = vmatmul.msk.f32.gmra.mxu1 %vm144_vm1, %v6844_v7  ;;  %4884 = vmatmul.msk.f32.gmra.mxu2 %vm144_vm1, %v6844_v7 }
 0x894   :  { %4890 = vmatmul.msk.f32.gmra.mxu3 %vm144_vm1, %v6844_v7  ;;  %4896 = vmatmul.msk.f32.gmra.mxu0 %vm144_vm1, %v6844_v7 }
 0x895   :  { %2708 = vmatpush.msrb.mxu1 %v4898_v5 }
 0x89a   :  { %v2404_v42 = vpop.xlane.xlu2 %2403 }
 0x89b   :  { %v2410_v44 = vmul.f32 %v2404_v42, %v5614_v39 }
 0x89d   :  { %v2416_v16 = vadd.f32 1e-05, %v2410_v44 }
 0x89f   :  { %5276 = vrsqrt.f32 %v2416_v16  ;;  %vm2473_vm10 = vweird.f32 %v2416_v16 }
 0x8a5   :  { %v5277_v50 = vpop.eup %5276 }
 0x8a6   :  { %v2468_v20 = vmul.f32 %v5277_v50, %v2416_v16  ;;  %vm2474_vm8 = vweird.f32 %v5277_v50 }
 0x8a7   :  { %vm2475_vm11 = vmor %vm2473_vm10, %vm2474_vm8 }
 0x8a8   :  { %v2469_v27 = vmul.f32 %v5277_v50, %v2468_v20 }
 0x8aa   :  { %v2470_v21 = vmul.f32 0.5, %v2469_v27 }
 0x8ac   :  { %v2471_v29 = vsub.f32 1.5, %v2470_v21 }
 0x8ae   :  { %v2472_v53 = vmul.f32 %v5277_v50, %v2471_v29 }
 0x8b0   :  { %v2476_v37 = vsel %vm2475_vm11, %v5277_v50, %v2472_v53 }
 0x8b1   :  { %v2482_v52 = vmul.f32 %v2476_v37, %v6721_v19  ;;  %v4941_v19 = vld [vmem:[%s7749_s8 + $0x98] sm:$0xff] }
 0x8b2   :  { %2862 = vmatpush.msra.mxu1 %v4941_v19 }
 0x8b3   :  { %v2491_v34 = vmul.f32 %v6779_v58, %v2482_v52  ;;  %v4945_v58 = vld [vmem:[%s7749_s8 + $0xb8] sm:$0xff] }
 0x8b4   :  { %2897 = vmatpush.msra.mxu2 %v4945_v58  ;;  %2863 = vmatpush.msra.mxu1 %v4940_v15 }
 0x8b5   :  { %v6906_v33 = vadd.f32 %v6784_v28, %v2491_v34  ;;  %v4949_v28 = vld [vmem:[%s7749_s8 + $0xd8] sm:$0xff] }
 0x8b6   :  { %2932 = vmatpush.msrb.mxu3 %v4949_v28  ;;  %2898 = vmatpush.msra.mxu2 %v4944_v36 }
 0x8b7   :  { %4879 = vmatmul.msk.f32.gmra.mxu1 %vm144_vm1, %v6906_v33  ;;  %4885 = vmatmul.msk.f32.gmra.mxu2 %vm144_vm1, %v6906_v33 }
 0x8b8   :  { %4891 = vmatmul.msk.f32.gmra.mxu3 %vm144_vm1, %v6906_v33  ;;  %4897 = vmatmul.msk.f32.gmra.mxu0 %vm144_vm1, %v6906_v33 }
 0x8b9   :  { %2933 = vmatpush.msrb.mxu3 %v4948_v3  ;;  %2864 = vmatpush.msra.mxu1 %v4939_v22 }
 0x8ba   :  { %2899 = vmatpush.msra.mxu2 %v4943_v59 }
 0x8bb   :  { %2934 = vmatpush.msrb.mxu3 %v4947_v51  ;;  %2865 = vmatpush.msra.mxu1 %v4938_v10 }
 0x8bc   :  { %2900 = vmatpush.msra.mxu2 %v4942_v12 }
 0x8bd   :  { %2935 = vmatpush.msrb.mxu3 %v4946_v43 }
 0x8bf   :  { %4914 = vmatmul.msk.f32.vlgmr.msrb.gmra.mxu1 %vm144_vm1, %v6790_v31  ;;  %4920 = vmatmul.msk.f32.vlgmr.msrb.gmra.mxu2 %vm144_vm1, %v6790_v31 }
 0x8c0   :  { %4926 = vmatmul.msk.f32.vlgmr.msra.gmra.mxu3 %vm144_vm1, %v6790_v31  ;;  %4932 = vmatmul.msk.f32.vlgmr.msra.gmra.mxu0 %vm144_vm1, %v6790_v31 }
 0x8c7   :  { %4915 = vmatmul.msk.f32.gmra.mxu1 %vm144_vm1, %v6804_v18  ;;  %4921 = vmatmul.msk.f32.gmra.mxu2 %vm144_vm1, %v6804_v18 }
 0x8c8   :  { %4927 = vmatmul.msk.f32.gmra.mxu3 %vm144_vm1, %v6804_v18  ;;  %4933 = vmatmul.msk.f32.gmra.mxu0 %vm144_vm1, %v6804_v18 }
 0x8cf   :  { %4916 = vmatmul.msk.f32.gmra.mxu1 %vm144_vm1, %v6818_v6  ;;  %4922 = vmatmul.msk.f32.gmra.mxu2 %vm144_vm1, %v6818_v6 }
 0x8d0   :  { %4928 = vmatmul.msk.f32.gmra.mxu3 %vm144_vm1, %v6818_v6  ;;  %4934 = vmatmul.msk.f32.gmra.mxu0 %vm144_vm1, %v6818_v6 }
 0x8d7   :  { %4917 = vmatmul.msk.f32.gmra.mxu1 %vm144_vm1, %v6831_v25  ;;  %4923 = vmatmul.msk.f32.gmra.mxu2 %vm144_vm1, %v6831_v25 }
 0x8d8   :  { %4929 = vmatmul.msk.f32.gmra.mxu3 %vm144_vm1, %v6831_v25  ;;  %4935 = vmatmul.msk.f32.gmra.mxu0 %vm144_vm1, %v6831_v25 }
 0x8df   :  { %4918 = vmatmul.msk.f32.gmra.mxu1 %vm144_vm1, %v6844_v7  ;;  %4924 = vmatmul.msk.f32.gmra.mxu2 %vm144_vm1, %v6844_v7 }
 0x8e0   :  { %4930 = vmatmul.msk.f32.gmra.mxu3 %vm144_vm1, %v6844_v7  ;;  %4936 = vmatmul.msk.f32.gmra.mxu0 %vm144_vm1, %v6844_v7 }
 0x8e7   :  { %4919 = vmatmul.msk.f32.gmra.mxu1 %vm144_vm1, %v6906_v33  ;;  %4925 = vmatmul.msk.f32.gmra.mxu2 %vm144_vm1, %v6906_v33 }
 0x8e8   :  { %4931 = vmatmul.msk.f32.gmra.mxu3 %vm144_vm1, %v6906_v33  ;;  %4937 = vmatmul.msk.f32.gmra.mxu0 %vm144_vm1, %v6906_v33  ;;  %v7036_v30 = vpop.f32.mrf.mxu0 }
 0x8ee   :  { %v2623_v60 = vpop.f32.mrf.mxu3 }
 0x8ef   :  { %4954 = vmatmul.msk.f32.vlgmr.msra.gmra.mxu1 %vm144_vm1, %v6790_v31  ;;  %4960 = vmatmul.msk.f32.vlgmr.msra.gmra.mxu2 %vm144_vm1, %v6790_v31 }
 0x8f0   :  { %4966 = vmatmul.msk.f32.vlgmr.msrb.gmra.mxu3 %vm144_vm1, %v6790_v31  ;;  %4972 = vmatmul.msk.f32.vlgmr.msrb.gmra.mxu0 %vm144_vm1, %v6790_v31  ;;  %v2553_v31 = vpop.f32.mrf.mxu1  ;;  %v7056_v61 = vpop.f32.mrf.mxu0 }
 0x8f7   :  { %4955 = vmatmul.msk.f32.gmra.mxu1 %vm144_vm1, %v6804_v18  ;;  %4961 = vmatmul.msk.f32.gmra.mxu2 %vm144_vm1, %v6804_v18 }
 0x8f8   :  { %4967 = vmatmul.msk.f32.gmra.mxu3 %vm144_vm1, %v6804_v18  ;;  %4973 = vmatmul.msk.f32.gmra.mxu0 %vm144_vm1, %v6804_v18  ;;  %v7046_v18 = vpop.f32.mrf.mxu2 }
 0x8ff   :  { %4956 = vmatmul.msk.f32.gmra.mxu1 %vm144_vm1, %v6818_v6  ;;  %4962 = vmatmul.msk.f32.gmra.mxu2 %vm144_vm1, %v6818_v6 }
 0x900   :  { %4968 = vmatmul.msk.f32.gmra.mxu3 %vm144_vm1, %v6818_v6  ;;  %4974 = vmatmul.msk.f32.gmra.mxu0 %vm144_vm1, %v6818_v6  ;;  %v2556_v6 = vpop.f32.mrf.mxu1  ;;  %v7058_v23 = vpop.f32.mrf.mxu2 }
 0x901   :  { %v7068_v57 = vpop.f32.mrf.mxu0 }
 0x907   :  { %4957 = vmatmul.msk.f32.gmra.mxu1 %vm144_vm1, %v6831_v25  ;;  %4963 = vmatmul.msk.f32.gmra.mxu2 %vm144_vm1, %v6831_v25 }
 0x908   :  { %4969 = vmatmul.msk.f32.gmra.mxu3 %vm144_vm1, %v6831_v25  ;;  %4975 = vmatmul.msk.f32.gmra.mxu0 %vm144_vm1, %v6831_v25  ;;  %v2626_v25 = vpop.f32.mrf.mxu3  ;;  %v2559_v48 = vpop.f32.mrf.mxu1 }
 0x909   :  { %v7072_v62 = vpop.f32.mrf.mxu0 }
 0x90f   :  { %4958 = vmatmul.msk.f32.gmra.mxu1 %vm144_vm1, %v6844_v7  ;;  %4964 = vmatmul.msk.f32.gmra.mxu2 %vm144_vm1, %v6844_v7 }
 0x910   :  { %4970 = vmatmul.msk.f32.gmra.mxu3 %vm144_vm1, %v6844_v7  ;;  %4976 = vmatmul.msk.f32.gmra.mxu0 %vm144_vm1, %v6844_v7  ;;  %v7070_v7 = vpop.f32.mrf.mxu2  ;;  %v2629_v1 = vpop.f32.mrf.mxu3 }
 0x911   :  { %v2562_v38 = vpop.f32.mrf.mxu1  ;;  %v7080_v4 = vpop.f32.mrf.mxu0 }
 0x917   :  { %4959 = vmatmul.msk.f32.gmra.mxu1 %vm144_vm1, %v6906_v33  ;;  %4965 = vmatmul.msk.f32.gmra.mxu2 %vm144_vm1, %v6906_v33 }
 0x918   :  { %4971 = vmatmul.msk.f32.gmra.mxu3 %vm144_vm1, %v6906_v33  ;;  %4977 = vmatmul.msk.f32.gmra.mxu0 %vm144_vm1, %v6906_v33  ;;  %v7074_v49 = vpop.f32.mrf.mxu2  ;;  %v7076_v8 = vpop.f32.mrf.mxu3 }
 0x919   :  { %v7078_v41 = vpop.f32.mrf.mxu1 }
 0x920   :  { %v7082_v42 = vpop.f32.mrf.mxu2  ;;  %v7084_v14 = vpop.f32.mrf.mxu3 }
 0x934   :  { %v7086_v0 = vpop.f32.mrf.mxu1 }
 0x935   :  { %v7088_v24 = vpop.f32.mrf.mxu0 }
 0x93a   :  { %v7090_v44 = vpop.f32.mrf.mxu2 }
 0x93b   :  { %v7092_v2 = vpop.f32.mrf.mxu3 }
 0x93c   :  { %v2710_v35 = vpop.f32.mrf.mxu1 }
 0x93d   :  { %v2815_v5 = vpop.f32.mrf.mxu0 }
 0x942   :  { %v2745_v13 = vpop.f32.mrf.mxu2 }
 0x943   :  { %v2780_v47 = vpop.f32.mrf.mxu3 }
 0x944   :  { %v2713_v16 = vpop.f32.mrf.mxu1 }
 0x945   :  { %v2818_v32 = vpop.f32.mrf.mxu0 }
 0x94a   :  { %v2748_v50 = vpop.f32.mrf.mxu2 }
 0x94b   :  { %v2783_v20 = vpop.f32.mrf.mxu3 }
 0x94c   :  { %v2716_v27 = vpop.f32.mrf.mxu1 }
 0x94d   :  { %v2821_v21 = vpop.f32.mrf.mxu0  ;;  %4978 = vmatpush.xpose.msk.msrb.mxu1 %vm788_vm7, %v2716_v27 }
 0x951   :  { %4979 = vmatpush.xpose.msk.msrb.mxu1 %vm788_vm7, %v2713_v16 }
 0x952   :  { %v2751_v29 = vpop.f32.mrf.mxu2 }
 0x953   :  { %v2786_v53 = vpop.f32.mrf.mxu3 }
 0x954   :  { %5002 = vmatpush.xpose.msk.msra.mxu3 %vm788_vm7, %v2786_v53  ;;  %v2719_v37 = vpop.f32.mrf.mxu1 }
 0x955   :  { %v2824_v52 = vpop.f32.mrf.mxu0  ;;  %4980 = vmatpush.xpose.msk.msrb.mxu1 %vm788_vm7, %v2710_v35 }
 0x958   :  { %5003 = vmatpush.xpose.msk.msra.mxu3 %vm788_vm7, %v2783_v20  ;;  %4981 = vmatmul.msk.f32.vlgmr.msrb.gmra.mxu1 %vm788_vm7, %v2553_v31 }
 0x959   :  { %4990 = vmatpush.xpose.msk.msra.mxu1 %vm788_vm7, %v2751_v29 }
 0x95a   :  { %v2754_v34 = vpop.f32.mrf.mxu2 }
 0x95b   :  { %v2789_v33 = vpop.f32.mrf.mxu3 }
 0x95c   :  { %5004 = vmatpush.xpose.msk.msra.mxu3 %vm788_vm7, %v2780_v47  ;;  %v2722_v19 = vpop.f32.mrf.mxu1 }
 0x95d   :  { %4991 = vmatpush.xpose.msk.msra.mxu1 %vm788_vm7, %v2748_v50  ;;  %v2827_v58 = vpop.f32.mrf.mxu0 }
 0x95f   :  { %5005 = vmatmul.msk.f32.vlgmr.msra.gmra.mxu3 %vm788_vm7, %v2623_v60 }
 0x960   :  { %4982 = vmatmul.msk.f32.gmra.mxu1 %vm788_vm7, %v2556_v6 }
 0x961   :  { %4992 = vmatpush.xpose.msk.msra.mxu1 %vm788_vm7, %v2745_v13 }
 0x962   :  { %v2757_v28 = vpop.f32.mrf.mxu2 }
 0x963   :  { %v2792_v45 = vpop.f32.mrf.mxu3 }
 0x964   :  { %v2725_v15 = vpop.f32.mrf.mxu1 }
 0x965   :  { %5014 = vmatpush.xpose.msk.msrb.mxu1 %vm788_vm7, %v2821_v21  ;;  %v2830_v36 = vpop.f32.mrf.mxu0  ;;  %4984 = vmatpush.xpose.msk.msrb.mxu2 %vm788_vm7, %v2725_v15 }
 0x967   :  { %5006 = vmatmul.msk.f32.gmra.mxu3 %vm788_vm7, %v2626_v25 }
 0x968   :  { %4983 = vmatmul.msk.f32.gmra.mxu1 %vm788_vm7, %v2559_v48 }
 0x969   :  { %5015 = vmatpush.xpose.msk.msrb.mxu1 %vm788_vm7, %v2818_v32  ;;  %4985 = vmatpush.xpose.msk.msrb.mxu2 %vm788_vm7, %v2722_v19 }
 0x96a   :  { %v2760_v3 = vpop.f32.mrf.mxu2 }
 0x96b   :  { %v2795_v40 = vpop.f32.mrf.mxu3 }
 0x96c   :  { %5008 = vmatpush.xpose.msk.msra.mxu0 %vm788_vm7, %v2795_v40  ;;  %v2867_v22 = vpop.f32.mrf.mxu1 }
 0x96d   :  { %5016 = vmatpush.xpose.msk.msrb.mxu1 %vm788_vm7, %v2815_v5  ;;  %4986 = vmatpush.xpose.msk.msrb.mxu2 %vm788_vm7, %v2719_v37  ;;  %v2972_v59 = vpop.f32.mrf.mxu0 }
 0x96f   :  { %5007 = vmatmul.msk.f32.gmra.mxu3 %vm788_vm7, %v2629_v1 }
 0x970   :  { %5009 = vmatpush.xpose.msk.msra.mxu0 %vm788_vm7, %v2792_v45  ;;  %4987 = vmatmul.msk.f32.vlgmr.msrb.gmra.mxu2 %vm788_vm7, %v2562_v38 }
 0x971   :  { %4996 = vmatpush.xpose.msk.msra.mxu2 %vm788_vm7, %v2760_v3  ;;  %4993 = vmatmul.msk.f32.vlgmr.msra.gmra.mxu1 %vm788_vm7, %v7046_v18 }
 0x972   :  { %v2902_v51 = vpop.f32.mrf.mxu2 }
 0x973   :  { %v2937_v63 = vpop.f32.mrf.mxu3 }
 0x974   :  { %5010 = vmatpush.xpose.msk.msra.mxu0 %vm788_vm7, %v2789_v33  ;;  %v2870_v10 = vpop.f32.mrf.mxu1 }
 0x975   :  { %4997 = vmatpush.xpose.msk.msra.mxu2 %vm788_vm7, %v2757_v28  ;;  %v2975_v12 = vpop.f32.mrf.mxu0 }
 0x977   :  { %5011 = vmatmul.msk.f32.vlgmr.msra.gmra.mxu0 %vm788_vm7, %v7076_v8 }
 0x978   :  { %4988 = vmatmul.msk.f32.gmra.mxu2 %vm788_vm7, %v7078_v41 }
 0x979   :  { %4998 = vmatpush.xpose.msk.msra.mxu2 %vm788_vm7, %v2754_v34  ;;  %4994 = vmatmul.msk.f32.gmra.mxu1 %vm788_vm7, %v7058_v23 }
 0x97a   :  { %v2905_v43 = vpop.f32.mrf.mxu2 }
 0x97b   :  { %v2940_v26 = vpop.f32.mrf.mxu3 }
 0x97c   :  { %v2873_v31 = vpop.f32.mrf.mxu1 }
 0x97d   :  { %5020 = vmatpush.xpose.msk.msrb.mxu2 %vm788_vm7, %v2830_v36  ;;  %3676 = vmatpush.msrb.mxu3 %v2873_v31  ;;  %v2978_v18 = vpop.f32.mrf.mxu0 }
 0x97f   :  { %5012 = vmatmul.msk.f32.gmra.mxu0 %vm788_vm7, %v7084_v14  ;;  %3677 = vmatpush.msrb.mxu3 %v2870_v10 }
 0x980   :  { %4989 = vmatmul.msk.f32.gmra.mxu2 %vm788_vm7, %v7086_v0 }
 0x981   :  { %5021 = vmatpush.xpose.msk.msrb.mxu2 %vm788_vm7, %v2827_v58  ;;  %4995 = vmatmul.msk.f32.gmra.mxu1 %vm788_vm7, %v7070_v7 }
 0x982   :  { %3678 = vmatpush.msrb.mxu3 %v2867_v22  ;;  %v2908_v60 = vpop.f32.mrf.mxu2 }
 0x983   :  { %v2943_v6 = vpop.f32.mrf.mxu3  ;;  %3746 = vmatpush.msra.mxu1 %v2908_v60 }
 0x984   :  { %3816 = vmatpush.msra.mxu3 %v2943_v6  ;;  %v2876_v23 = vpop.f32.mrf.mxu1 }
 0x985   :  { %5022 = vmatpush.xpose.msk.msrb.mxu2 %vm788_vm7, %v2824_v52  ;;  %3747 = vmatpush.msra.mxu1 %v2905_v43  ;;  %v2981_v7 = vpop.f32.mrf.mxu0 }
 0x986   :  { %3817 = vmatpush.msra.mxu3 %v2940_v26 }
 0x987   :  { %5013 = vmatmul.msk.f32.gmra.mxu0 %vm788_vm7, %v7092_v2  ;;  %3748 = vmatpush.msra.mxu1 %v2902_v51 }
 0x988   :  { %3818 = vmatpush.msra.mxu3 %v2937_v63  ;;  %4999 = vmatmul.msk.f32.vlgmr.msra.gmra.mxu2 %vm788_vm7, %v7074_v49 }
 0x989   :  { %5017 = vmatmul.msk.f32.vlgmr.msrb.gmra.mxu1 %vm788_vm7, %v7036_v30 }
 0x98a   :  { %3886 = vmatpush.msrb.mxu1 %v2978_v18  ;;  %v2911_v25 = vpop.f32.mrf.mxu2 }
 0x98b   :  { %v2946_v48 = vpop.f32.mrf.mxu3 }
 0x98c   :  { %3887 = vmatpush.msrb.mxu1 %v2975_v12  ;;  %v2879_v1 = vpop.f32.mrf.mxu1 }
 0x98d   :  { %v2984_v49 = vpop.f32.mrf.mxu0 }
 0x98e   :  { %3888 = vmatpush.msrb.mxu1 %v2972_v59 }
 0x990   :  { %5000 = vmatmul.msk.f32.gmra.mxu2 %vm788_vm7, %v7082_v42 }
 0x991   :  { %5018 = vmatmul.msk.f32.gmra.mxu1 %vm788_vm7, %v7056_v61 }
 0x992   :  { %v2914_v38 = vpop.f32.mrf.mxu2 }
 0x993   :  { %v2949_v8 = vpop.f32.mrf.mxu3 }
 0x994   :  { %v2882_v41 = vpop.f32.mrf.mxu1 }
 0x995   :  { %3711 = vmatpush.msrb.mxu0 %v2882_v41  ;;  %v2987_v61 = vpop.f32.mrf.mxu0 }
 0x997   :  { %3712 = vmatpush.msrb.mxu0 %v2879_v1 }
 0x998   :  { %5001 = vmatmul.msk.f32.gmra.mxu2 %vm788_vm7, %v7090_v44 }
 0x999   :  { %5019 = vmatmul.msk.f32.gmra.mxu1 %vm788_vm7, %v7068_v57  ;;  %3713 = vmatpush.msrb.mxu0 %v2876_v23 }
 0x99a   :  { %v2917_v30 = vpop.f32.mrf.mxu2 }
 0x99b   :  { %v2952_v14 = vpop.f32.mrf.mxu3  ;;  %3781 = vmatpush.msra.mxu2 %v2917_v30 }
 0x99c   :  { %3851 = vmatpush.msra.mxu0 %v2952_v14 }
 0x99d   :  { %3782 = vmatpush.msra.mxu2 %v2914_v38 }
 0x99e   :  { %3852 = vmatpush.msra.mxu0 %v2949_v8 }
 0x99f   :  { %3783 = vmatpush.msra.mxu2 %v2911_v25 }
 0x9a0   :  { %3853 = vmatpush.msra.mxu0 %v2946_v48  ;;  %5023 = vmatmul.msk.f32.vlgmr.msrb.gmra.mxu2 %vm788_vm7, %v7072_v62 }
 0x9a1   :  { %3921 = vmatpush.msrb.mxu2 %v2987_v61 }
 0x9a3   :  { %3922 = vmatpush.msrb.mxu2 %v2984_v49 }
 0x9a5   :  { %3923 = vmatpush.msrb.mxu2 %v2981_v7 }
 0x9a8   :  { %5024 = vmatmul.msk.f32.gmra.mxu2 %vm788_vm7, %v7080_v4 }
 0x9b0   :  { %5025 = vmatmul.msk.f32.gmra.mxu2 %vm788_vm7, %v7088_v24 }
 0x9d5   :  { %v3025_v57 = vpop.f32.mrf.mxu1 }
 0x9d6   :  { %v3342_v42 = vmul.f32 0.17677669, %v3025_v57 }
 0x9d8   :  { %v7160_v0 = vadd.f32 %v3342_v42, %v6125_v55 }
 0x9da   :  { %v3390_v44 = vsel %vm1189_vm9, %v7160_v0, -inf }
 0x9db   :  { %3391 = vmax.xlane.f32.xlu0 %v3390_v44 }
 0x9dd   :  { %v3028_v2 = vpop.f32.mrf.mxu1 }
 0x9de   :  { %v3343_v62 = vmul.f32 0.17677669, %v3028_v2 }
 0x9e0   :  { %v7165_v35 = vadd.f32 %v3343_v62, %v6125_v55 }
 0x9e2   :  { %v3201_v5 = vpop.f32.mrf.mxu3  ;;  %v3393_v4 = vsel %vm1189_vm9, %v7165_v35, -inf }
 0x9e3   :  { %3394 = vmax.xlane.f32.xlu2 %v3393_v4  ;;  %v3354_v52 = vmul.f32 0.17677669, %v3201_v5 }
 0x9e5   :  { %v3031_v24 = vpop.f32.mrf.mxu1  ;;  %v7190_v36 = vadd.f32 %v3354_v52, %v6125_v55 }
 0x9e6   :  { %v3344_v13 = vmul.f32 0.17677669, %v3031_v24 }
 0x9e7   :  { %v3426_v22 = vsel %vm1189_vm9, %v7190_v36, -inf }
 0x9e8   :  { %v7170_v47 = vadd.f32 %v3344_v13, %v6125_v55 }
 0x9ea   :  { %v3204_v16 = vpop.f32.mrf.mxu3  ;;  %v3396_v32 = vsel %vm1189_vm9, %v7170_v47, -inf }
 0x9eb   :  { %v3355_v50 = vmul.f32 0.17677669, %v3204_v16  ;;  %3397 = vmax.xlane.f32.xlu1 %v3396_v32 }
 0x9ed   :  { %v7175_v20 = vadd.f32 %v3355_v50, %v6125_v55 }
 0x9ee   :  { %v3113_v27 = vpop.f32.mrf.mxu1 }
 0x9ef   :  { %v3348_v21 = vmul.f32 0.17677669, %v3113_v27  ;;  %v3429_v29 = vsel %vm1189_vm9, %v7175_v20, -inf }
 0x9f0   :  { %3430 = vmax.xlane.f32.xlu2 %v3429_v29 }
 0x9f1   :  { %v7180_v53 = vadd.f32 %v3348_v21, %v6125_v55 }
 0x9f2   :  { %v3207_v37 = vpop.f32.mrf.mxu3 }
 0x9f3   :  { %v3356_v34 = vmul.f32 0.17677669, %v3207_v37  ;;  %v3069_v33 = vpop.f32.mrf.mxu2  ;;  %v3408_v19 = vsel %vm1189_vm9, %v7180_v53, -inf }
 0x9f4   :  { %3409 = vmax.xlane.f32.xlu1 %v3408_v19  ;;  %v3345_v3 = vmul.f32 0.17677669, %v3069_v33  ;;  %v3245_v42 = vpop.f32.mrf.mxu0 }
 0x9f5   :  { %v7185_v58 = vadd.f32 %v3356_v34, %v6125_v55 }
 0x9f6   :  { %v3116_v28 = vpop.f32.mrf.mxu1  ;;  %v7203_v43 = vadd.f32 %v3345_v3, %v6125_v55 }
 0x9f7   :  { %v3349_v45 = vmul.f32 0.17677669, %v3116_v28  ;;  %v3432_v15 = vsel %vm1189_vm9, %v7185_v58, -inf }
 0x9f8   :  { %3433 = vmax.xlane.f32.xlu0 %v3432_v15  ;;  %v3399_v60 = vsel %vm1189_vm9, %v7203_v43, -inf  ;;  %v3357_v15 = vmul.f32 0.17677669, %v3245_v42 }
 0x9f9   :  { %v7195_v59 = vadd.f32 %v3349_v45, %v6125_v55 }
 0x9fb   :  { %v3072_v40 = vpop.f32.mrf.mxu2  ;;  %v3411_v12 = vsel %vm1189_vm9, %v7195_v59, -inf }
 0x9fc   :  { %v3346_v51 = vmul.f32 0.17677669, %v3072_v40  ;;  %3427 = vmax.xlane.f32.xlu1 %v3426_v22  ;;  %v3248_v27 = vpop.f32.mrf.mxu0 }
 0x9fd   :  { %v3358_v37 = vmul.f32 0.17677669, %v3248_v27 }
 0x9fe   :  { %v3119_v63 = vpop.f32.mrf.mxu1  ;;  %v7198_v10 = vadd.f32 %v3346_v51, %v6125_v55 }
 0x9ff   :  { %v3350_v26 = vmul.f32 0.17677669, %v3119_v63  ;;  %v7251_v45 = vadd.f32 %v3358_v37, %v6125_v55 }
 0xa00   :  { %3412 = vmax.xlane.f32.xlu0 %v3411_v12  ;;  %v3402_v31 = vsel %vm1189_vm9, %v7198_v10, -inf  ;;  %v7260_v12 = vadd.f32 %v3357_v15, %v6125_v55 }
 0xa01   :  { %3403 = vmax.xlane.f32.xlu2 %v3402_v31  ;;  %v7210_v6 = vadd.f32 %v3350_v26, %v6125_v55  ;;  %v3438_v51 = vsel %vm1189_vm9, %v7251_v45, -inf }
 0xa02   :  { %v3435_v31 = vsel %vm1189_vm9, %v7260_v12, -inf }
 0xa03   :  { %v3075_v18 = vpop.f32.mrf.mxu2  ;;  %v3414_v48 = vsel %vm1189_vm9, %v7210_v6, -inf }
 0xa04   :  { %3400 = vmax.xlane.f32.xlu1 %v3399_v60  ;;  %v3347_v21 = vmul.f32 0.17677669, %v3075_v18  ;;  %v3251_v37 = vpop.f32.mrf.mxu0 }
 0xa06   :  { %v3289_v23 = vpop.f32.mrf.mxu1  ;;  %v7245_v19 = vadd.f32 %v3347_v21, %v6125_v55 }
 0xa07   :  { %v3360_v25 = vmul.f32 0.17677669, %v3289_v23 }
 0xa08   :  { %v3405_v40 = vsel %vm1189_vm9, %v7245_v19, -inf }
 0xa09   :  { %3415 = vmax.xlane.f32.xlu2 %v3414_v48  ;;  %v7215_v38 = vadd.f32 %v3360_v25, %v6125_v55 }
 0xa0b   :  { %v3157_v7 = vpop.f32.mrf.mxu2  ;;  %v3444_v14 = vsel %vm1189_vm9, %v7215_v38, -inf }
 0xa0c   :  { %v3351_v1 = vmul.f32 0.17677669, %v3157_v7 }
 0xa0e   :  { %v3292_v8 = vpop.f32.mrf.mxu1  ;;  %v7218_v41 = vadd.f32 %v3351_v1, %v6125_v55 }
 0xa0f   :  { %v3361_v49 = vmul.f32 0.17677669, %v3292_v8 }
 0xa10   :  { %v3417_v30 = vsel %vm1189_vm9, %v7218_v41, -inf }
 0xa11   :  { %3418 = vmax.xlane.f32.xlu0 %v3417_v30  ;;  %3445 = vmax.xlane.f32.xlu2 %v3444_v14  ;;  %v7225_v57 = vadd.f32 %v3361_v49, %v6125_v55 }
 0xa13   :  { %v3160_v61 = vpop.f32.mrf.mxu2  ;;  %v3447_v5 = vsel %vm1189_vm9, %v7225_v57, -inf }
 0xa14   :  { %v3352_v62 = vmul.f32 0.17677669, %v3160_v61 }
 0xa16   :  { %v3295_v44 = vpop.f32.mrf.mxu1  ;;  %v7235_v32 = vadd.f32 %v3352_v62, %v6125_v55 }
 0xa17   :  { %v3362_v2 = vmul.f32 0.17677669, %v3295_v44 }
 0xa18   :  { %v3420_v29 = vsel %vm1189_vm9, %v7235_v32, -inf }
 0xa19   :  { %3448 = vmax.xlane.f32.xlu0 %v3447_v5  ;;  %v7230_v4 = vadd.f32 %v3362_v2, %v6125_v55 }
 0xa1b   :  { %v3163_v24 = vpop.f32.mrf.mxu2  ;;  %v3450_v13 = vsel %vm1189_vm9, %v7230_v4, -inf }
 0xa1c   :  { %v3353_v16 = vmul.f32 0.17677669, %v3163_v24  ;;  %3451 = vmax.xlane.f32.xlu1 %v3450_v13 }
 0xa1e   :  { %v7238_v50 = vadd.f32 %v3353_v16, %v6125_v55 }
 0xa20   :  { %v3423_v34 = vsel %vm1189_vm9, %v7238_v50, -inf }
 0xa21   :  { %3421 = vmax.xlane.f32.xlu0 %v3420_v29 }
 0xa23   :  { %v3333_v52 = vpop.f32.mrf.mxu2 }
 0xa24   :  { %v3363_v33 = vmul.f32 0.17677669, %v3333_v52  ;;  %3424 = vmax.xlane.f32.xlu1 %v3423_v34 }
 0xa26   :  { %v7248_v28 = vadd.f32 %v3363_v33, %v6125_v55  ;;  %v3359_v33 = vmul.f32 0.17677669, %v3251_v37 }
 0xa28   :  { %v3453_v3 = vsel %vm1189_vm9, %v7248_v28, -inf }
 0xa29   :  { %3454 = vmax.xlane.f32.xlu2 %v3453_v3  ;;  %3406 = vmax.xlane.f32.xlu0 %v3405_v40 }
 0xa2b   :  { %v3336_v22 = vpop.f32.mrf.mxu2 }
 0xa2c   :  { %v3364_v63 = vmul.f32 0.17677669, %v3336_v22  ;;  %3439 = vmax.xlane.f32.xlu1 %v3438_v51 }
 0xa2e   :  { %v7263_v26 = vadd.f32 %v3364_v63, %v6125_v55 }
 0xa30   :  { %v3456_v60 = vsel %vm1189_vm9, %v7263_v26, -inf }
 0xa31   :  { %3436 = vmax.xlane.f32.xlu0 %v3435_v31  ;;  %v7299_v31 = vadd.f32 %v3359_v33, %v6125_v55 }
 0xa33   :  { %v3339_v18 = vpop.f32.mrf.mxu2 }
 0xa34   :  { %v3365_v23 = vmul.f32 0.17677669, %v3339_v18  ;;  %3457 = vmax.xlane.f32.xlu1 %v3456_v60 }
 0xa36   :  { %v7270_v25 = vadd.f32 %v3365_v23, %v6125_v55 }
 0xa38   :  { %v3459_v48 = vsel %vm1189_vm9, %v7270_v25, -inf }
 0xa39   :  { %3460 = vmax.xlane.f32.xlu2 %v3459_v48 }
 0xa4e   :  { %v3392_v7 = vpop.xlane.xlu0 %3391 }
 0xa4f   :  { %v3462_v1 = vsub.f32 %v7160_v0, %v3392_v7 }
 0xa51   :  { %v3486_v8 = vmul.f32 1.442695, %v3462_v1 }
 0xa53   :  { %5278 = vpow2.f32 %v3486_v8 }
 0xa56   :  { %v3395_v49 = vpop.xlane.xlu2 %3394 }
 0xa57   :  { %v3463_v30 = vsub.f32 %v7165_v35, %v3395_v49 }
 0xa59   :  { %v7276_v14 = vpop.eup %5278  ;;  %v3488_v61 = vmul.f32 1.442695, %v3463_v30 }
 0xa5a   :  { %v3534_v42 = vsel %vm1189_vm9, %v7276_v14, 0.0 }
 0xa5b   :  { %5280 = vpow2.f32 %v3488_v61  ;;  %3535 = vadd.xlane.f32.xlu2 %v3534_v42 }
 0xa5e   :  { %v3398_v44 = vpop.xlane.xlu1 %3397 }
 0xa5f   :  { %v3464_v2 = vsub.f32 %v7170_v47, %v3398_v44 }
 0xa61   :  { %v7281_v62 = vpop.eup %5280  ;;  %v3490_v5 = vmul.f32 1.442695, %v3464_v2 }
 0xa62   :  { %v3537_v0 = vsel %vm1189_vm9, %v7281_v62, 0.0 }
 0xa63   :  { %5282 = vpow2.f32 %v3490_v5  ;;  %3538 = vadd.xlane.f32.xlu0 %v3537_v0  ;;  %v3431_v47 = vpop.xlane.xlu2 %3430 }
 0xa64   :  { %v3475_v5 = vsub.f32 %v7175_v20, %v3431_v47 }
 0xa67   :  { %v3410_v35 = vpop.xlane.xlu1 %3409 }
 0xa68   :  { %v3468_v24 = vsub.f32 %v7180_v53, %v3410_v35 }
 0xa69   :  { %v7286_v13 = vpop.eup %5282 }
 0xa6a   :  { %v3498_v16 = vmul.f32 1.442695, %v3468_v24  ;;  %v3540_v27 = vsel %vm1189_vm9, %v7286_v13, 0.0 }
 0xa6b   :  { %v7290_v21 = vpop.xlane.xlu0 %3433  ;;  %3541 = vadd.xlane.f32.xlu0 %v3540_v27 }
 0xa6c   :  { %5284 = vpow2.f32 %v3498_v16 }
 0xa6f   :  { %v3428_v29 = vpop.xlane.xlu1 %3427 }
 0xa70   :  { %v3474_v34 = vsub.f32 %v7190_v36, %v3428_v29  ;;  %v3441_v36 = vsel %vm1189_vm9, %v7299_v31, -inf }
 0xa72   :  { %v7292_v52 = vpop.eup %5284  ;;  %v3510_v22 = vmul.f32 1.442695, %v3474_v34 }
 0xa73   :  { %v3413_v15 = vpop.xlane.xlu0 %3412  ;;  %v3552_v53 = vsel %vm1189_vm9, %v7292_v52, 0.0 }
 0xa74   :  { %v3469_v3 = vsub.f32 %v7195_v59, %v3413_v15  ;;  %3553 = vadd.xlane.f32.xlu1 %v3552_v53  ;;  %v3404_v40 = vpop.xlane.xlu2 %3403 }
 0xa75   :  { %v3466_v20 = vsub.f32 %v7198_v10, %v3404_v40 }
 0xa76   :  { %v3500_v51 = vmul.f32 1.442695, %v3469_v3 }
 0xa77   :  { %v3401_v63 = vpop.xlane.xlu1 %3400  ;;  %v3494_v37 = vmul.f32 1.442695, %v3466_v20 }
 0xa78   :  { %5286 = vpow2.f32 %v3500_v51  ;;  %v3465_v18 = vsub.f32 %v7203_v43, %v3401_v63 }
 0xa79   :  { %5288 = vpow2.f32 %v3510_v22 }
 0xa7a   :  { %v3492_v48 = vmul.f32 1.442695, %v3465_v18 }
 0xa7c   :  { %3442 = vmax.xlane.f32.xlu1 %v3441_v36  ;;  %v3416_v60 = vpop.xlane.xlu2 %3415 }
 0xa7d   :  { %v3470_v23 = vsub.f32 %v7210_v6, %v3416_v60 }
 0xa7e   :  { %v7305_v59 = vpop.eup %5286 }
 0xa7f   :  { %v3502_v7 = vmul.f32 1.442695, %v3470_v23  ;;  %v3555_v1 = vsel %vm1189_vm9, %v7305_v59, 0.0  ;;  %v7309_v55 = vpop.eup %5288 }
 0xa80   :  { %3556 = vadd.xlane.f32.xlu2 %v3555_v1  ;;  %v3570_v43 = vsel %vm1189_vm9, %v7309_v55, 0.0 }
 0xa81   :  { %5290 = vpow2.f32 %v3502_v7 }
 0xa82   :  { %5292 = vpow2.f32 %v3492_v48 }
 0xa84   :  { %3571 = vadd.xlane.f32.xlu1 %v3570_v43  ;;  %v3419_v8 = vpop.xlane.xlu0 %3418  ;;  %v3446_v49 = vpop.xlane.xlu2 %3445 }
 0xa85   :  { %v3471_v6 = vsub.f32 %v7218_v41, %v3419_v8  ;;  %v3480_v30 = vsub.f32 %v7215_v38, %v3446_v49  ;;  %v3512_v41 = vmul.f32 1.442695, %v3475_v5 }
 0xa87   :  { %v7315_v61 = vpop.eup %5290  ;;  %v3504_v42 = vmul.f32 1.442695, %v3471_v6  ;;  %v3522_v44 = vmul.f32 1.442695, %v3480_v30 }
 0xa88   :  { %v7317_v2 = vpop.eup %5292  ;;  %v3558_v0 = vsel %vm1189_vm9, %v7315_v61, 0.0 }
 0xa89   :  { %5294 = vpow2.f32 %v3504_v42  ;;  %3559 = vadd.xlane.f32.xlu2 %v3558_v0  ;;  %v3543_v35 = vsel %vm1189_vm9, %v7317_v2, 0.0 }
 0xa8a   :  { %5296 = vpow2.f32 %v3522_v44 }
 0xa8b   :  { %5298 = vpow2.f32 %v3512_v41 }
 0xa8c   :  { %3544 = vadd.xlane.f32.xlu1 %v3543_v35  ;;  %v3449_v38 = vpop.xlane.xlu0 %3448  ;;  %5300 = vpow2.f32 %v3494_v37 }
 0xa8d   :  { %v3481_v53 = vsub.f32 %v7225_v57, %v3449_v38 }
 0xa8f   :  { %v7324_v24 = vpop.eup %5294  ;;  %v3452_v16 = vpop.xlane.xlu1 %3451  ;;  %v3524_v18 = vmul.f32 1.442695, %v3481_v53 }
 0xa90   :  { %v7326_v27 = vpop.eup %5296  ;;  %v3561_v47 = vsel %vm1189_vm9, %v7324_v24, 0.0  ;;  %v3482_v51 = vsub.f32 %v7230_v4, %v3452_v16 }
 0xa91   :  { %v3588_v29 = vsel %vm1189_vm9, %v7326_v27, 0.0  ;;  %3562 = vadd.xlane.f32.xlu0 %v3561_v47  ;;  %v7334_v15 = vpop.eup %5298 }
 0xa92   :  { %3589 = vadd.xlane.f32.xlu2 %v3588_v29  ;;  %v3573_v40 = vsel %vm1189_vm9, %v7334_v15, 0.0  ;;  %v7342_v57 = vpop.eup %5300  ;;  %v3526_v23 = vmul.f32 1.442695, %v3482_v51 }
 0xa93   :  { %v3546_v43 = vsel %vm1189_vm9, %v7342_v57, 0.0 }
 0xa94   :  { %v3422_v34 = vpop.xlane.xlu0 %3421 }
 0xa95   :  { %v3472_v33 = vsub.f32 %v7235_v32, %v3422_v34 }
 0xa97   :  { %v3506_v3 = vmul.f32 1.442695, %v3472_v33  ;;  %v3425_v22 = vpop.xlane.xlu1 %3424 }
 0xa98   :  { %v3473_v10 = vsub.f32 %v7238_v50, %v3425_v22  ;;  %v3476_v50 = vsub.f32 %v7185_v58, %v7290_v21 }
 0xa99   :  { %5302 = vpow2.f32 %v3506_v3 }
 0xa9a   :  { %v3508_v63 = vmul.f32 1.442695, %v3473_v10  ;;  %3574 = vadd.xlane.f32.xlu2 %v3573_v40  ;;  %v3514_v8 = vmul.f32 1.442695, %v3476_v50 }
 0xa9c   :  { %5304 = vpow2.f32 %v3508_v63  ;;  %v3455_v32 = vpop.xlane.xlu2 %3454  ;;  %v3407_v36 = vpop.xlane.xlu0 %3406 }
 0xa9d   :  { %v3483_v60 = vsub.f32 %v7248_v28, %v3455_v32  ;;  %5306 = vpow2.f32 %v3524_v18  ;;  %v3467_v42 = vsub.f32 %v7245_v19, %v3407_v36 }
 0xa9f   :  { %v7344_v48 = vpop.eup %5302  ;;  %v3528_v7 = vmul.f32 1.442695, %v3483_v60  ;;  %v3440_v1 = vpop.xlane.xlu1 %3439  ;;  %v3496_v20 = vmul.f32 1.442695, %v3467_v42 }
 0xaa0   :  { %v3564_v4 = vsel %vm1189_vm9, %v7344_v48, 0.0 }
 0xaa1   :  { %5308 = vpow2.f32 %v3528_v7  ;;  %3565 = vadd.xlane.f32.xlu0 %v3564_v4 }
 0xaa2   :  { %v7352_v28 = vpop.eup %5304  ;;  %5310 = vpow2.f32 %v3526_v23  ;;  %3547 = vadd.xlane.f32.xlu2 %v3546_v43 }
 0xaa3   :  { %v3567_v49 = vsel %vm1189_vm9, %v7352_v28, 0.0  ;;  %v7356_v21 = vpop.eup %5306  ;;  %5312 = vpow2.f32 %v3514_v8 }
 0xaa4   :  { %3568 = vadd.xlane.f32.xlu1 %v3567_v49  ;;  %v3437_v58 = vpop.xlane.xlu0 %3436  ;;  %v3591_v38 = vsel %vm1189_vm9, %v7356_v21, 0.0 }
 0xaa5   :  { %v3477_v6 = vsub.f32 %v7260_v12, %v3437_v58  ;;  %v3478_v12 = vsub.f32 %v7251_v45, %v3440_v1 }
 0xaa7   :  { %v7359_v30 = vpop.eup %5308  ;;  %v3516_v44 = vmul.f32 1.442695, %v3477_v6  ;;  %v3458_v5 = vpop.xlane.xlu1 %3457  ;;  %v3518_v29 = vmul.f32 1.442695, %v3478_v12 }
 0xaa8   :  { %v7362_v0 = vpop.eup %5310  ;;  %v3484_v35 = vsub.f32 %v7263_v26, %v3458_v5  ;;  %v3597_v41 = vsel %vm1189_vm9, %v7359_v30, 0.0 }
 0xaa9   :  { %5314 = vpow2.f32 %v3516_v44  ;;  %3592 = vadd.xlane.f32.xlu0 %v3591_v38  ;;  %v3594_v19 = vsel %vm1189_vm9, %v7362_v0, 0.0  ;;  %v7372_v26 = vpop.eup %5312 }
 0xaaa   :  { %v3530_v16 = vmul.f32 1.442695, %v3484_v35  ;;  %3598 = vadd.xlane.f32.xlu2 %v3597_v41  ;;  %v3576_v45 = vsel %vm1189_vm9, %v7372_v26, 0.0 }
 0xaac   :  { %5316 = vpow2.f32 %v3530_v16  ;;  %3595 = vadd.xlane.f32.xlu1 %v3594_v19  ;;  %v3461_v47 = vpop.xlane.xlu2 %3460 }
 0xaad   :  { %5318 = vpow2.f32 %v3496_v20  ;;  %v3485_v34 = vsub.f32 %v7270_v25, %v3461_v47 }
 0xaae   :  { %5320 = vpow2.f32 %v3518_v29 }
 0xaaf   :  { %v7374_v37 = vpop.eup %5314  ;;  %v3532_v3 = vmul.f32 1.442695, %v3485_v34 }
 0xab0   :  { %v3579_v33 = vsel %vm1189_vm9, %v7374_v37, 0.0 }
 0xab1   :  { %3577 = vadd.xlane.f32.xlu0 %v3576_v45  ;;  %5322 = vpow2.f32 %v3532_v3 }
 0xab2   :  { %v7381_v53 = vpop.eup %5316  ;;  %3580 = vadd.xlane.f32.xlu2 %v3579_v33 }
 0xab3   :  { %v3600_v22 = vsel %vm1189_vm9, %v7381_v53, 0.0  ;;  %v7385_v10 = vpop.eup %5318 }
 0xab4   :  { %3601 = vadd.xlane.f32.xlu1 %v3600_v22  ;;  %v7387_v25 = vpop.eup %5320  ;;  %v3549_v40 = vsel %vm1189_vm9, %v7385_v10, 0.0 }
 0xab5   :  { %v3582_v51 = vsel %vm1189_vm9, %v7387_v25, 0.0 }
 0xab7   :  { %v7393_v63 = vpop.eup %5322 }
 0xab8   :  { %v3603_v18 = vsel %vm1189_vm9, %v7393_v63, 0.0 }
 0xab9   :  { %3550 = vadd.xlane.f32.xlu0 %v3549_v40 }
 0xabc   :  { %3583 = vadd.xlane.f32.xlu1 %v3582_v51 }
 0xac1   :  { %3604 = vadd.xlane.f32.xlu0 %v3603_v18 }
 0xace   :  { %v3536_v32 = vpop.xlane.xlu2 %3535 }
 0xacf   :  { %5324 = vrcp.f32 %v3536_v32 }
 0xad5   :  { %v5325_v36 = vpop.eup %5324 }
 0xad6   :  { %v3630_v60 = vmul.f32 %v5325_v36, %v7276_v14  ;;  %v3539_v23 = vpop.xlane.xlu0 %3538 }
 0xad7   :  { %5326 = vrcp.f32 %v3539_v23 }
 0xad8   :  { %5026 = vmatmul.msk.f32.vlgmr.msrb.gmra.mxu3 %vm1189_vm9, %v3630_v60 }
 0xadd   :  { %v5327_v50 = vpop.eup %5326 }
 0xade   :  { %v3542_v7 = vpop.xlane.xlu0 %3541  ;;  %v3631_v1 = vmul.f32 %v5327_v50, %v7281_v62 }
 0xadf   :  { %5328 = vrcp.f32 %v3542_v7 }
 0xae0   :  { %5027 = vmatmul.msk.f32.gmra.mxu3 %vm1189_vm9, %v3631_v1 }
 0xae5   :  { %v5329_v4 = vpop.eup %5328 }
 0xae6   :  { %v3632_v43 = vmul.f32 %v5329_v4, %v7286_v13 }
 0xae7   :  { %v3554_v8 = vpop.xlane.xlu1 %3553 }
 0xae8   :  { %5330 = vrcp.f32 %v3554_v8  ;;  %5028 = vmatmul.msk.f32.gmra.mxu3 %vm1189_vm9, %v3632_v43 }
 0xaee   :  { %v5331_v49 = vpop.eup %5330 }
 0xaef   :  { %v3636_v14 = vmul.f32 %v5331_v49, %v7292_v52  ;;  %v3443_v58 = vpop.xlane.xlu1 %3442 }
 0xaf0   :  { %v3479_v6 = vsub.f32 %v7299_v31, %v3443_v58 }
 0xaf1   :  { %5032 = vmatmul.msk.f32.vlgmr.msra.gmra.mxu1 %vm1189_vm9, %v3636_v14 }
 0xaf2   :  { %v3520_v42 = vmul.f32 1.442695, %v3479_v6 }
 0xaf3   :  { %v3557_v62 = vpop.xlane.xlu2 %3556 }
 0xaf4   :  { %5332 = vpow2.f32 %v3520_v42 }
 0xaf5   :  { %5334 = vrcp.f32 %v3557_v62 }
 0xaf7   :  { %v3572_v44 = vpop.xlane.xlu1 %3571 }
 0xaf8   :  { %5336 = vrcp.f32 %v3572_v44 }
 0xafa   :  { %v7406_v5 = vpop.eup %5332 }
 0xafb   :  { %v5335_v13 = vpop.eup %5334  ;;  %v3585_v35 = vsel %vm1189_vm9, %v7406_v5, 0.0 }
 0xafc   :  { %3586 = vadd.xlane.f32.xlu2 %v3585_v35  ;;  %v3560_v41 = vpop.xlane.xlu2 %3559  ;;  %v3637_v52 = vmul.f32 %v5335_v13, %v7305_v59  ;;  %v5050_v35 = vld [vmem:[%s7750_s9 + $0x20] sm:$0xff] }
 0xafd   :  { %5338 = vrcp.f32 %v3560_v41  ;;  %3972 = vmatpush.msrb.mxu3 %v5050_v35 }
 0xafe   :  { %v5337_v31 = vpop.eup %5336  ;;  %5033 = vmatmul.msk.f32.gmra.mxu1 %vm1189_vm9, %v3637_v52 }
 0xaff   :  { %v3642_v38 = vmul.f32 %v5337_v31, %v7309_v55  ;;  %v3545_v12 = vpop.xlane.xlu1 %3544 }
 0xb00   :  { %5340 = vrcp.f32 %v3545_v12 }
 0xb01   :  { %5038 = vmatmul.msk.f32.vlgmr.msra.gmra.mxu3 %vm1189_vm9, %v3642_v38  ;;  %v5051_v38 = vld [vmem:[%s7750_s9 + $0x28] sm:$0xff] }
 0xb03   :  { %v5339_v16 = vpop.eup %5338 }
 0xb04   :  { %v3563_v20 = vpop.xlane.xlu0 %3562  ;;  %v3638_v19 = vmul.f32 %v5339_v16, %v7315_v61 }
 0xb05   :  { %v3590_v47 = vpop.xlane.xlu2 %3589  ;;  %5342 = vrcp.f32 %v3563_v20 }
 0xb06   :  { %v5341_v29 = vpop.eup %5340  ;;  %5344 = vrcp.f32 %v3590_v47  ;;  %5034 = vmatmul.msk.f32.gmra.mxu1 %vm1189_vm9, %v3638_v19 }
 0xb07   :  { %v3633_v59 = vmul.f32 %v5341_v29, %v7317_v2 }
 0xb09   :  { %5029 = vmatmul.msk.f32.vlgmr.msrb.gmra.mxu0 %vm1189_vm9, %v3633_v59 }
 0xb0a   :  { %4025 = vmatpush.msrb.mxu0 %v5051_v38 }
 0xb0b   :  { %v5343_v34 = vpop.eup %5342 }
 0xb0c   :  { %v5345_v55 = vpop.eup %5344  ;;  %v3639_v45 = vmul.f32 %v5343_v34, %v7324_v24 }
 0xb0d   :  { %v3648_v33 = vmul.f32 %v5345_v55, %v7326_v27  ;;  %v3575_v3 = vpop.xlane.xlu2 %3574 }
 0xb0e   :  { %5346 = vrcp.f32 %v3575_v3  ;;  %5035 = vmatmul.msk.f32.vlgmr.msra.gmra.mxu2 %vm1189_vm9, %v3639_v45 }
 0xb0f   :  { %5044 = vmatmul.msk.f32.vlgmr.msrb.gmra.mxu1 %vm1189_vm9, %v3648_v33 }
 0xb14   :  { %v5347_v61 = vpop.eup %5346  ;;  %v3566_v22 = vpop.xlane.xlu0 %3565 }
 0xb15   :  { %v3548_v40 = vpop.xlane.xlu2 %3547  ;;  %5348 = vrcp.f32 %v3566_v22  ;;  %v3643_v2 = vmul.f32 %v5347_v61, %v7334_v15 }
 0xb16   :  { %5350 = vrcp.f32 %v3548_v40 }
 0xb17   :  { %5039 = vmatmul.msk.f32.gmra.mxu3 %vm1189_vm9, %v3643_v2  ;;  %v3569_v51 = vpop.xlane.xlu1 %3568 }
 0xb18   :  { %5352 = vrcp.f32 %v3569_v51 }
 0xb1b   :  { %v5349_v18 = vpop.eup %5348 }
 0xb1c   :  { %v5351_v24 = vpop.eup %5350  ;;  %v3593_v27 = vpop.xlane.xlu0 %3592  ;;  %v3640_v32 = vmul.f32 %v5349_v18, %v7344_v48 }
 0xb1d   :  { %5354 = vrcp.f32 %v3593_v27  ;;  %v3634_v36 = vmul.f32 %v5351_v24, %v7342_v57  ;;  %v3599_v15 = vpop.xlane.xlu2 %3598 }
 0xb1e   :  { %5036 = vmatmul.msk.f32.gmra.mxu2 %vm1189_vm9, %v3640_v32  ;;  %v5353_v23 = vpop.eup %5352 }
 0xb1f   :  { %5030 = vmatmul.msk.f32.gmra.mxu0 %vm1189_vm9, %v3634_v36  ;;  %v3596_v60 = vpop.xlane.xlu1 %3595  ;;  %v3641_v1 = vmul.f32 %v5353_v23, %v7352_v28 }
 0xb20   :  { %5356 = vrcp.f32 %v3596_v60 }
 0xb21   :  { %5358 = vrcp.f32 %v3599_v15 }
 0xb23   :  { %v5355_v50 = vpop.eup %5354 }
 0xb24   :  { %v3578_v7 = vpop.xlane.xlu0 %3577  ;;  %v3649_v4 = vmul.f32 %v5355_v50, %v7356_v21 }
 0xb25   :  { %5360 = vrcp.f32 %v3578_v7  ;;  %v3581_v28 = vpop.xlane.xlu2 %3580 }
 0xb26   :  { %5037 = vmatmul.msk.f32.gmra.mxu2 %vm1189_vm9, %v3641_v1  ;;  %5045 = vmatmul.msk.f32.gmra.mxu1 %vm1189_vm9, %v3649_v4  ;;  %v5357_v57 = vpop.eup %5356 }
 0xb27   :  { %v3602_v48 = vpop.xlane.xlu1 %3601  ;;  %v5359_v43 = vpop.eup %5358  ;;  %v3650_v58 = vmul.f32 %v5357_v57, %v7362_v0 }
 0xb28   :  { %5362 = vrcp.f32 %v3602_v48  ;;  %v3651_v6 = vmul.f32 %v5359_v43, %v7359_v30 }
 0xb2b   :  { %v5361_v8 = vpop.eup %5360 }
 0xb2c   :  { %v3551_v49 = vpop.xlane.xlu0 %3550  ;;  %v3644_v14 = vmul.f32 %v5361_v8, %v7372_v26 }
 0xb2d   :  { %5364 = vrcp.f32 %v3551_v49  ;;  %v7492_v49 = vld [vmem:[%s7751_s10 + $0x1] ss:$0 sm:$0xff] }
 0xb2e   :  { %5040 = vmatmul.msk.f32.gmra.mxu3 %vm1189_vm9, %v3644_v14  ;;  %5046 = vmatmul.msk.f32.gmra.mxu1 %vm1189_vm9, %v3650_v58  ;;  %v5363_v21 = vpop.eup %5362  ;;  %5366 = vrcp.f32 %v3581_v28 }
 0xb2f   :  { %5047 = vmatmul.msk.f32.vlgmr.msrb.gmra.mxu2 %vm1189_vm9, %v3651_v6  ;;  %v3652_v26 = vmul.f32 %v5363_v21, %v7381_v53  ;;  %v3584_v30 = vpop.xlane.xlu1 %3583 }
 0xb33   :  { %v5365_v42 = vpop.eup %5364 }
 0xb34   :  { %v3605_v62 = vpop.xlane.xlu0 %3604  ;;  %v3635_v44 = vmul.f32 %v5365_v42, %v7385_v10  ;;  %v5367_v0 = vpop.eup %5366 }
 0xb35   :  { %5368 = vrcp.f32 %v3605_v62  ;;  %v3645_v41 = vmul.f32 %v5367_v0, %v7374_v37 }
 0xb36   :  { %5031 = vmatmul.msk.f32.gmra.mxu0 %vm1189_vm9, %v3635_v44  ;;  %5370 = vrcp.f32 %v3584_v30 }
 0xb37   :  { %5048 = vmatmul.msk.f32.gmra.mxu2 %vm1189_vm9, %v3652_v26 }
 0xb3b   :  { %v5369_v13 = vpop.eup %5368 }
 0xb3c   :  { %v3653_v52 = vmul.f32 %v5369_v13, %v7393_v63  ;;  %v5371_v53 = vpop.eup %5370  ;;  %v5052_v63 = vld [vmem:[%s7750_s9 + $0x30] sm:$0xff] }
 0xb3d   :  { %v3646_v10 = vmul.f32 %v5371_v53, %v7387_v25  ;;  %4078 = vmatpush.msra.mxu1 %v5052_v63  ;;  %v5053_v25 = vld [vmem:[%s7750_s9 + $0x38] sm:$0xff] }
 0xb3e   :  { %5041 = vmatmul.msk.f32.vlgmr.msra.gmra.mxu0 %vm1189_vm9, %v3645_v41  ;;  %4131 = vmatpush.msra.mxu2 %v5053_v25 }
 0xb3f   :  { %5049 = vmatmul.msk.f32.gmra.mxu2 %vm1189_vm9, %v3653_v52 }
 0xb46   :  { %5042 = vmatmul.msk.f32.gmra.mxu0 %vm1189_vm9, %v3646_v10 }
 0xb5b   :  { %v3680_v31 = vpop.f32.mrf.mxu3 }
 0xb5c   :  { %5054 = vmatmul.msk.f32.vlgmr.msrb.gmra.mxu3 %vm788_vm7, %v3680_v31 }
 0xb63   :  { %v3683_v37 = vpop.f32.mrf.mxu3 }
 0xb64   :  { %5055 = vmatmul.msk.f32.gmra.mxu3 %vm788_vm7, %v3683_v37 }
 0xb6b   :  { %v3686_v12 = vpop.f32.mrf.mxu3 }
 0xb6c   :  { %5056 = vmatmul.msk.f32.gmra.mxu3 %vm788_vm7, %v3686_v12 }
 0xb6e   :  { %v3750_v20 = vpop.f32.mrf.mxu1 }
 0xb6f   :  { %v3587_v16 = vpop.xlane.xlu2 %3586 }
 0xb70   :  { %5372 = vrcp.f32 %v3587_v16 }
 0xb76   :  { %v5373_v19 = vpop.eup %5372 }
 0xb77   :  { %v3647_v47 = vmul.f32 %v5373_v19, %v7406_v5 }
 0xb79   :  { %5043 = vmatmul.msk.f32.gmra.mxu0 %vm1189_vm9, %v3647_v47 }
 0xb7b   :  { %v3753_v29 = vpop.f32.mrf.mxu1 }
 0xb81   :  { %5060 = vmatmul.msk.f32.vlgmr.msrb.gmra.mxu0 %vm788_vm7, %v3750_v20 }
 0xb83   :  { %v3756_v59 = vpop.f32.mrf.mxu1 }
 0xb84   :  { %v3820_v34 = vpop.f32.mrf.mxu3 }
 0xb85   :  { %5066 = vmatmul.msk.f32.vlgmr.msra.gmra.mxu1 %vm788_vm7, %v3820_v34 }
 0xb86   :  { %v3715_v55 = vpop.f32.mrf.mxu0 }
 0xb87   :  { %5057 = vmatmul.msk.f32.gmra.mxu3 %vm788_vm7, %v3715_v55 }
 0xb89   :  { %5061 = vmatmul.msk.f32.gmra.mxu0 %vm788_vm7, %v3753_v29 }
 0xb8c   :  { %v3890_v45 = vpop.f32.mrf.mxu1 }
 0xb8d   :  { %5072 = vmatmul.msk.f32.vlgmr.msra.gmra.mxu2 %vm788_vm7, %v3890_v45 }
 0xb91   :  { %5062 = vmatmul.msk.f32.gmra.mxu0 %vm788_vm7, %v3756_v59  ;;  %v3785_v5 = vpop.f32.mrf.mxu2 }
 0xb99   :  { %5063 = vmatmul.msk.f32.gmra.mxu0 %vm788_vm7, %v3785_v5 }
 0xb9a   :  { %v3823_v33 = vpop.f32.mrf.mxu3 }
 0xb9b   :  { %5067 = vmatmul.msk.f32.gmra.mxu1 %vm788_vm7, %v3823_v33 }
 0xb9c   :  { %v3718_v3 = vpop.f32.mrf.mxu0 }
 0xb9d   :  { %5058 = vmatmul.msk.f32.gmra.mxu3 %vm788_vm7, %v3718_v3 }
 0xba1   :  { %v3788_v61 = vpop.f32.mrf.mxu2 }
 0xba2   :  { %5064 = vmatmul.msk.f32.gmra.mxu0 %vm788_vm7, %v3788_v61 }
 0xba3   :  { %v3893_v22 = vpop.f32.mrf.mxu1 }
 0xba4   :  { %5073 = vmatmul.msk.f32.gmra.mxu2 %vm788_vm7, %v3893_v22 }
 0xba9   :  { %v3791_v40 = vpop.f32.mrf.mxu2 }
 0xbaa   :  { %5065 = vmatmul.msk.f32.gmra.mxu0 %vm788_vm7, %v3791_v40 }
 0xbab   :  { %v3896_v2 = vpop.f32.mrf.mxu1 }
 0xbac   :  { %5074 = vmatmul.msk.f32.gmra.mxu2 %vm788_vm7, %v3896_v2 }
 0xbb1   :  { %v3826_v51 = vpop.f32.mrf.mxu3 }
 0xbb2   :  { %v3925_v18 = vpop.f32.mrf.mxu2  ;;  %5068 = vmatmul.msk.f32.gmra.mxu1 %vm788_vm7, %v3826_v51 }
 0xbb3   :  { %v3721_v24 = vpop.f32.mrf.mxu0 }
 0xbb4   :  { %5059 = vmatmul.msk.f32.gmra.mxu3 %vm788_vm7, %v3721_v24  ;;  %5075 = vmatmul.msk.f32.gmra.mxu2 %vm788_vm7, %v3925_v18 }
 0xbba   :  { %v3928_v27 = vpop.f32.mrf.mxu2 }
 0xbbb   :  { %v3855_v32 = vpop.f32.mrf.mxu0 }
 0xbbc   :  { %5069 = vmatmul.msk.f32.gmra.mxu1 %vm788_vm7, %v3855_v32  ;;  %5076 = vmatmul.msk.f32.gmra.mxu2 %vm788_vm7, %v3928_v27 }
 0xbc2   :  { %v3931_v36 = vpop.f32.mrf.mxu2 }
 0xbc3   :  { %v3858_v60 = vpop.f32.mrf.mxu0 }
 0xbc4   :  { %5070 = vmatmul.msk.f32.gmra.mxu1 %vm788_vm7, %v3858_v60  ;;  %5077 = vmatmul.msk.f32.gmra.mxu2 %vm788_vm7, %v3931_v36 }
 0xbdf   :  { %v3974_v50 = vpop.f32.mrf.mxu3 }
 0xbe0   :  { %v4151_v4 = vsel %vm144_vm1, %v3974_v50, 0.0 }
 0xbe7   :  { %v3977_v62 = vpop.f32.mrf.mxu3 }
 0xbe8   :  { %v4158_v30 = vsel %vm144_vm1, %v3977_v62, 0.0 }
 0xbef   :  { %v3980_v10 = vpop.f32.mrf.mxu3 }
 0xbf0   :  { %v4165_v63 = vsel %vm144_vm1, %v3980_v10, 0.0 }
 0xbf6   :  { %v3861_v23 = vpop.f32.mrf.mxu0 }
 0xbf7   :  { %5071 = vmatmul.msk.f32.gmra.mxu1 %vm788_vm7, %v3861_v23 }
 0xbfe   :  { %v4027_v15 = vpop.f32.mrf.mxu0 }
 0xbff   :  { %v4152_v1 = vsel %vm144_vm1, %v4027_v15, 0.0 }
 0xc00   :  { %v4153_v48 = vadd.f32 %v4152_v1, %v4151_v4 }
 0xc02   :  { %v4080_v7 = vpop.f32.mrf.mxu1 }
 0xc03   :  { %v4154_v57 = vsel %vm144_vm1, %v4080_v7, 0.0 }
 0xc04   :  { %v4155_v43 = vadd.f32 %v4154_v57, %v4153_v48 }
 0xc06   :  { %v4030_v42 = vpop.f32.mrf.mxu0 }
 0xc07   :  { %v4159_v26 = vsel %vm144_vm1, %v4030_v42, 0.0 }
 0xc08   :  { %v4160_v13 = vadd.f32 %v4159_v26, %v4158_v30 }
 0xc0a   :  { %v3983_v59 = vpop.f32.mrf.mxu3 }
 0xc0b   :  { %v4172_v3 = vsel %vm144_vm1, %v3983_v59, 0.0 }
 0xc10   :  { %v4133_v8 = vpop.f32.mrf.mxu2 }
 0xc11   :  { %v4156_v14 = vsel %vm144_vm1, %v4133_v8, 0.0 }
 0xc12   :  { %v4157_v58 = vadd.f32 %v4156_v14, %v4155_v43 }
 0xc14   :  { %v4198_v6 = vadd.f32 %v7492_v49, %v4157_v58 }
 0xc16   :  { %v7497_v28 = vadd.f32 %v4198_v6, %v6655_v46  ;;  %v4033_v46 = vpop.f32.mrf.mxu0 }
 0xc17   :  { %v4166_v38 = vsel %vm144_vm1, %v4033_v46, 0.0 }
 0xc18   :  { %v4214_v21 = vsel %vm144_vm1, %v7497_v28, 0.0  ;;  %v4083_v44 = vpop.f32.mrf.mxu1  ;;  %v4167_v12 = vadd.f32 %v4166_v38, %v4165_v63 }
 0xc19   :  { %4215 = vadd.xlane.f32.xlu0 %v4214_v21  ;;  %v4161_v0 = vsel %vm144_vm1, %v4083_v44, 0.0 }
 0xc1a   :  { %v4162_v35 = vadd.f32 %v4161_v0, %v4160_v13 }
 0xc1e   :  { %v4036_v34 = vpop.f32.mrf.mxu0 }
 0xc1f   :  { %v4173_v45 = vsel %vm144_vm1, %v4036_v34, 0.0 }
 0xc20   :  { %v4174_v61 = vadd.f32 %v4173_v45, %v4172_v3  ;;  %v3986_v51 = vpop.f32.mrf.mxu3 }
 0xc21   :  { %v4179_v36 = vsel %vm144_vm1, %v3986_v51, 0.0 }
 0xc26   :  { %v4039_v18 = vpop.f32.mrf.mxu0 }
 0xc27   :  { %v4136_v41 = vpop.f32.mrf.mxu2 }
 0xc28   :  { %v4163_v52 = vsel %vm144_vm1, %v4136_v41, 0.0 }
 0xc29   :  { %v4164_v53 = vadd.f32 %v4163_v52, %v4162_v35 }
 0xc2b   :  { %v4199_v31 = vadd.f32 %v7492_v49, %v4164_v53 }
 0xc2d   :  { %v7508_v37 = vadd.f32 %v4199_v31, %v6660_v9 }
 0xc2e   :  { %v4042_v6 = vpop.f32.mrf.mxu0 }
 0xc2f   :  { %v4086_v25 = vpop.f32.mrf.mxu1  ;;  %v4139_v16 = vpop.f32.mrf.mxu2  ;;  %v4217_v20 = vsel %vm144_vm1, %v7508_v37, 0.0  ;;  %v4187_v42 = vsel %vm144_vm1, %v4042_v6, 0.0  ;;  %v7610_v6 = vld [vmem:[%s7753_s12 + $0x1] ss:$0 sm:$0xff] }
 0xc30   :  { %v4168_v19 = vsel %vm144_vm1, %v4086_v25, 0.0  ;;  %4218 = vadd.xlane.f32.xlu1 %v4217_v20  ;;  %v4170_v29 = vsel %vm144_vm1, %v4139_v16, 0.0 }
 0xc31   :  { %v4169_v47 = vadd.f32 %v4168_v19, %v4167_v12 }
 0xc33   :  { %v4171_v55 = vadd.f32 %v4170_v29, %v4169_v47 }
 0xc35   :  { %v4200_v9 = vadd.f32 %v7492_v49, %v4171_v55 }
 0xc37   :  { %v4142_v5 = vpop.f32.mrf.mxu2  ;;  %v7518_v33 = vadd.f32 %v4200_v9, %v6665_v17  ;;  %v4180_v17 = vsel %vm144_vm1, %v4039_v18, 0.0 }
 0xc38   :  { %v4177_v27 = vsel %vm144_vm1, %v4142_v5, 0.0  ;;  %v4181_v23 = vadd.f32 %v4180_v17, %v4179_v36  ;;  %v5083_v36 = vld [vmem:[%s7754_s13 + $0x30] sm:$0xff]  ;;  %v5082_v17 = vld [vmem:[%s7754_s13 + $0x28] sm:$0xff] }
 0xc39   :  { %v4089_v22 = vpop.f32.mrf.mxu1  ;;  %v4220_v40 = vsel %vm144_vm1, %v7518_v33, 0.0 }
 0xc3a   :  { %v4175_v2 = vsel %vm144_vm1, %v4089_v22, 0.0  ;;  %4221 = vadd.xlane.f32.xlu2 %v4220_v40 }
 0xc3b   :  { %v4176_v24 = vadd.f32 %v4175_v2, %v4174_v61 }
 0xc3d   :  { %v4178_v32 = vadd.f32 %v4177_v27, %v4176_v24 }
 0xc3f   :  { %v4201_v60 = vadd.f32 %v7492_v49, %v4178_v32  ;;  %v4145_v15 = vpop.f32.mrf.mxu2  ;;  %v5084_v32 = vld [vmem:[%s7754_s13 + $0x38] sm:$0xff] }
 0xc40   :  { %v4184_v48 = vsel %vm144_vm1, %v4145_v15, 0.0  ;;  %4404 = vmatpush.msra.mxu3 %v5084_v32 }
 0xc41   :  { %v4092_v50 = vpop.f32.mrf.mxu1  ;;  %v7529_v7 = vadd.f32 %v4201_v60, %v6670_v54  ;;  %v3989_v54 = vpop.f32.mrf.mxu3  ;;  %v5081_v60 = vld [vmem:[%s7754_s13 + $0x20] sm:$0xff]  ;;  %s5428_s13 = smov [#allocation2]  }
 0xc42   :  { %v4182_v1 = vsel %vm144_vm1, %v4092_v50, 0.0  ;;  %v4186_v21 = vsel %vm144_vm1, %v3989_v54, 0.0  ;;  %4405 = vmatpush.msra.mxu3 %v5083_v36 }
 0xc43   :  { %v4183_v4 = vadd.f32 %v4182_v1, %v4181_v23  ;;  %v4223_v57 = vsel %vm144_vm1, %v7529_v7, 0.0  ;;  %v4188_v62 = vadd.f32 %v4187_v42, %v4186_v21 }
 0xc44   :  { %4224 = vadd.xlane.f32.xlu0 %v4223_v57  ;;  %4406 = vmatpush.msra.mxu3 %v5082_v17 }
 0xc45   :  { %v4185_v43 = vadd.f32 %v4184_v48, %v4183_v4 }
 0xc46   :  { %4407 = vmatpush.msra.mxu3 %v5081_v60 }
 0xc47   :  { %v4202_v8 = vadd.f32 %v7492_v49, %v4185_v43  ;;  %v4148_v44 = vpop.f32.mrf.mxu2 }
 0xc48   :  { %v4191_v13 = vsel %vm144_vm1, %v4148_v44, 0.0 }
 0xc49   :  { %v7537_v14 = vadd.f32 %v4202_v8, %v6675_v11 }
 0xc4b   :  { %v4226_v58 = vsel %vm144_vm1, %v7537_v14, 0.0 }
 0xc4c   :  { %4227 = vadd.xlane.f32.xlu1 %v4226_v58  ;;  %v7605_v58 = vld [vmem:[%s7752_s11 + $0x1] ss:$0 sm:$0xff] }
 0xc74   :  { %v4095_v26 = vpop.f32.mrf.mxu1 }
 0xc75   :  { %v4189_v30 = vsel %vm144_vm1, %v4095_v26, 0.0 }
 0xc76   :  { %v4190_v0 = vadd.f32 %v4189_v30, %v4188_v62 }
 0xc78   :  { %v4192_v11 = vadd.f32 %v4191_v13, %v4190_v0 }
 0xc7a   :  { %v4203_v35 = vadd.f32 %v7492_v49, %v4192_v11 }
 0xc7c   :  { %v7547_v41 = vadd.f32 %v4203_v35, %v6680_v56 }
 0xc7e   :  { %v4229_v52 = vsel %vm144_vm1, %v7547_v41, 0.0 }
 0xc7f   :  { %4230 = vadd.xlane.f32.xlu2 %v4229_v52 }
 0xc8c   :  { %v4216_v46 = vpop.xlane.xlu0 %4215 }
 0xc8d   :  { %v4232_v53 = vmul.f32 %v4216_v46, %v5614_v39 }
 0xc8f   :  { %v4238_v10 = vsub.f32 %v7497_v28, %v4232_v53 }
 0xc91   :  { %v4244_v31 = vmul.f32 %v4238_v10, %v4238_v10 }
 0xc93   :  { %v4250_v38 = vsel %vm144_vm1, %v4244_v31, 0.0 }
 0xc94   :  { %4251 = vadd.xlane.f32.xlu0 %v4250_v38 }
 0xca3   :  { %v4219_v63 = vpop.xlane.xlu1 %4218 }
 0xca4   :  { %v4233_v12 = vmul.f32 %v4219_v63, %v5614_v39 }
 0xca6   :  { %v7556_v49 = vsub.f32 %v7508_v37, %v4233_v12 }
 0xca8   :  { %v4245_v56 = vmul.f32 %v7556_v49, %v7556_v49 }
 0xcaa   :  { %v4253_v25 = vsel %vm144_vm1, %v4245_v56, 0.0 }
 0xcab   :  { %4254 = vadd.xlane.f32.xlu1 %v4253_v25 }
 0xcad   :  { %v4222_v16 = vpop.xlane.xlu2 %4221 }
 0xcae   :  { %v4234_v20 = vmul.f32 %v4222_v16, %v5614_v39 }
 0xcb0   :  { %v7563_v19 = vsub.f32 %v7518_v33, %v4234_v20 }
 0xcb2   :  { %v4246_v47 = vmul.f32 %v7563_v19, %v7563_v19 }
 0xcb4   :  { %v4256_v29 = vsel %vm144_vm1, %v4246_v47, 0.0 }
 0xcb5   :  { %4257 = vadd.xlane.f32.xlu2 %v4256_v29 }
 0xcb7   :  { %v4225_v59 = vpop.xlane.xlu0 %4224 }
 0xcb8   :  { %v4235_v34 = vmul.f32 %v4225_v59, %v5614_v39 }
 0xcba   :  { %v7570_v55 = vsub.f32 %v7529_v7, %v4235_v34 }
 0xcbc   :  { %v4247_v9 = vmul.f32 %v7570_v55, %v7570_v55 }
 0xcbe   :  { %v4259_v45 = vsel %vm144_vm1, %v4247_v9, 0.0 }
 0xcbf   :  { %4260 = vadd.xlane.f32.xlu0 %v4259_v45  ;;  %v4228_v5 = vpop.xlane.xlu1 %4227 }
 0xcc0   :  { %v4236_v3 = vmul.f32 %v4228_v5, %v5614_v39 }
 0xcc2   :  { %v7577_v61 = vsub.f32 %v7537_v14, %v4236_v3 }
 0xcc4   :  { %v4248_v22 = vmul.f32 %v7577_v61, %v7577_v61 }
 0xcc6   :  { %v4262_v40 = vsel %vm144_vm1, %v4248_v22, 0.0 }
 0xcc7   :  { %4263 = vadd.xlane.f32.xlu1 %v4262_v40 }
 0xcf2   :  { %v4231_v2 = vpop.xlane.xlu2 %4230 }
 0xcf3   :  { %v4237_v51 = vmul.f32 %v4231_v2, %v5614_v39 }
 0xcf5   :  { %v7584_v18 = vsub.f32 %v7547_v41, %v4237_v51 }
 0xcf7   :  { %v4249_v24 = vmul.f32 %v7584_v18, %v7584_v18 }
 0xcf9   :  { %v4265_v27 = vsel %vm144_vm1, %v4249_v24, 0.0 }
 0xcfa   :  { %4266 = vadd.xlane.f32.xlu2 %v4265_v27 }
 0xd07   :  { %v4252_v23 = vpop.xlane.xlu0 %4251 }
 0xd08   :  { %v4268_v15 = vmul.f32 %v4252_v23, %v5614_v39 }
 0xd0a   :  { %v4274_v50 = vadd.f32 1e-05, %v4268_v15 }
 0xd0c   :  { %5374 = vrsqrt.f32 %v4274_v50  ;;  %vm4286_vm9 = vweird.f32 %v4274_v50 }
 0xd12   :  { %v5375_v1 = vpop.eup %5374 }
 0xd13   :  { %v4281_v4 = vmul.f32 %v5375_v1, %v4274_v50  ;;  %vm4287_vm7 = vweird.f32 %v5375_v1 }
 0xd14   :  { %vm4288_vm12 = vmor %vm4286_vm9, %vm4287_vm7 }
 0xd15   :  { %v4282_v57 = vmul.f32 %v5375_v1, %v4281_v4 }
 0xd17   :  { %v4283_v48 = vmul.f32 0.5, %v4282_v57 }
 0xd19   :  { %v4284_v43 = vsub.f32 1.5, %v4283_v48 }
 0xd1b   :  { %v4285_v8 = vmul.f32 %v5375_v1, %v4284_v43 }
 0xd1d   :  { %v4289_v54 = vsel %vm4288_vm12, %v5375_v1, %v4285_v8 }
 0xd1e   :  { %v4340_v21 = vmul.f32 %v4289_v54, %v4238_v10  ;;  %v4255_v42 = vpop.xlane.xlu1 %4254 }
 0xd1f   :  { %v4269_v62 = vmul.f32 %v4255_v42, %v5614_v39 }
 0xd20   :  { %v4349_v44 = vmul.f32 %v7605_v58, %v4340_v21 }
 0xd21   :  { %v4275_v26 = vadd.f32 1e-05, %v4269_v62 }
 0xd22   :  { %v4358_v30 = vadd.f32 %v7610_v6, %v4349_v44 }
 0xd23   :  { %5376 = vrsqrt.f32 %v4275_v26  ;;  %vm4296_vm14 = vweird.f32 %v4275_v26 }
 0xd24   :  { %5086 = vmatmul.msk.f32.vlgmr.msra.gmra.mxu3 %vm144_vm1, %v4358_v30 }
 0xd28   :  { %v4258_v0 = vpop.xlane.xlu2 %4257 }
 0xd29   :  { %v5377_v13 = vpop.eup %5376  ;;  %v4270_v11 = vmul.f32 %v4258_v0, %v5614_v39 }
 0xd2a   :  { %v4291_v35 = vmul.f32 %v5377_v13, %v4275_v26  ;;  %vm4297_vm13 = vweird.f32 %v5377_v13 }
 0xd2b   :  { %v4276_v52 = vadd.f32 1e-05, %v4270_v11  ;;  %vm4298_vm15 = vmor %vm4296_vm14, %vm4297_vm13 }
 0xd2c   :  { %v4292_v46 = vmul.f32 %v5377_v13, %v4291_v35 }
 0xd2d   :  { %5378 = vrsqrt.f32 %v4276_v52  ;;  %vm4306_vm4 = vweird.f32 %v4276_v52 }
 0xd2e   :  { %v4293_v53 = vmul.f32 0.5, %v4292_v46 }
 0xd30   :  { %v4294_v10 = vsub.f32 1.5, %v4293_v53 }
 0xd32   :  { %v4295_v31 = vmul.f32 %v5377_v13, %v4294_v10  ;;  %v4261_v38 = vpop.xlane.xlu0 %4260 }
 0xd33   :  { %v5379_v63 = vpop.eup %5378  ;;  %v4271_v12 = vmul.f32 %v4261_v38, %v5614_v39  ;;  %v5094_v38 = vld [vmem:[%s7756_s15 + $0x50] sm:$0xff] }
 0xd34   :  { %v4299_v56 = vsel %vm4298_vm15, %v5377_v13, %v4295_v31  ;;  %v4301_v25 = vmul.f32 %v5379_v63, %v4276_v52  ;;  %vm4307_vm3 = vweird.f32 %v5379_v63  ;;  %v5098_v31 = vld [vmem:[%s7756_s15 + $0x70] sm:$0xff] }
 0xd35   :  { %v4341_v16 = vmul.f32 %v4299_v56, %v7556_v49  ;;  %v4277_v20 = vadd.f32 1e-05, %v4271_v12  ;;  %vm4308_vm5 = vmor %vm4306_vm4, %vm4307_vm3  ;;  %v5092_v12 = vld [vmem:[%s7756_s15 + $0x40] sm:$0xff] }
 0xd36   :  { %v4302_v47 = vmul.f32 %v5379_v63, %v4301_v25  ;;  %v7667_v56 = vld [vmem:[%s7755_s14 + $0x1] ss:$0 sm:$0xff] }
 0xd37   :  { %5380 = vrsqrt.f32 %v4277_v20  ;;  %v4350_v29 = vmul.f32 %v7605_v58, %v4341_v16  ;;  %vm4316_vm8 = vweird.f32 %v4277_v20 }
 0xd38   :  { %v4303_v59 = vmul.f32 0.5, %v4302_v47 }
 0xd39   :  { %v4359_v34 = vadd.f32 %v7610_v6, %v4350_v29 }
 0xd3a   :  { %v4304_v9 = vsub.f32 1.5, %v4303_v59  ;;  %v4264_v45 = vpop.xlane.xlu1 %4263 }
 0xd3b   :  { %v4272_v5 = vmul.f32 %v4264_v45, %v5614_v39  ;;  %5087 = vmatmul.msk.f32.gmra.mxu3 %vm144_vm1, %v4359_v34 }
 0xd3c   :  { %v4305_v3 = vmul.f32 %v5379_v63, %v4304_v9 }
 0xd3d   :  { %v5381_v22 = vpop.eup %5380  ;;  %v4278_v49 = vadd.f32 1e-05, %v4272_v5 }
 0xd3e   :  { %v4309_v40 = vsel %vm4308_vm5, %v5379_v63, %v4305_v3  ;;  %v4311_v2 = vmul.f32 %v5381_v22, %v4277_v20  ;;  %vm4317_vm6 = vweird.f32 %v5381_v22  ;;  %v5093_v63 = vld [vmem:[%s7756_s15 + $0x48] sm:$0xff] }
 0xd3f   :  { %v4342_v51 = vmul.f32 %v4309_v40, %v7563_v19  ;;  %5382 = vrsqrt.f32 %v4278_v49  ;;  %vm4318_vm10 = vmor %vm4316_vm8, %vm4317_vm6  ;;  %vm4326_vm7 = vweird.f32 %v4278_v49 }
 0xd40   :  { %v4312_v24 = vmul.f32 %v5381_v22, %v4311_v2 }
 0xd41   :  { %v4351_v27 = vmul.f32 %v7605_v58, %v4342_v51 }
 0xd42   :  { %v4313_v32 = vmul.f32 0.5, %v4312_v24 }
 0xd43   :  { %v4360_v36 = vadd.f32 %v7610_v6, %v4351_v27 }
 0xd44   :  { %v4314_v17 = vsub.f32 1.5, %v4313_v32 }
 0xd45   :  { %v5383_v60 = vpop.eup %5382  ;;  %5088 = vmatmul.msk.f32.gmra.mxu3 %vm144_vm1, %v4360_v36 }
 0xd46   :  { %v4315_v23 = vmul.f32 %v5381_v22, %v4314_v17  ;;  %v4321_v15 = vmul.f32 %v5383_v60, %v4278_v49  ;;  %vm4327_vm11 = vweird.f32 %v5383_v60 }
 0xd47   :  { %vm4328_vm9 = vmor %vm4326_vm7, %vm4327_vm11 }
 0xd48   :  { %v4319_v50 = vsel %vm4318_vm10, %v5381_v22, %v4315_v23  ;;  %v4322_v1 = vmul.f32 %v5383_v60, %v4321_v15 }
 0xd49   :  { %v4343_v19 = vmul.f32 %v4319_v50, %v7570_v55 }
 0xd4a   :  { %v4323_v4 = vmul.f32 0.5, %v4322_v1 }
 0xd4b   :  { %v4352_v57 = vmul.f32 %v7605_v58, %v4343_v19 }
 0xd4c   :  { %v4324_v48 = vsub.f32 1.5, %v4323_v4 }
 0xd4d   :  { %v4361_v43 = vadd.f32 %v7610_v6, %v4352_v57 }
 0xd4e   :  { %v4325_v8 = vmul.f32 %v5383_v60, %v4324_v48 }
 0xd4f   :  { %5089 = vmatmul.msk.f32.gmra.mxu3 %vm144_vm1, %v4361_v43 }
 0xd50   :  { %v4329_v54 = vsel %vm4328_vm9, %v5383_v60, %v4325_v8 }
 0xd51   :  { %v4344_v21 = vmul.f32 %v4329_v54, %v7577_v61 }
 0xd53   :  { %v4353_v42 = vmul.f32 %v7605_v58, %v4344_v21 }
 0xd55   :  { %v4362_v62 = vadd.f32 %v7610_v6, %v4353_v42 }
 0xd57   :  { %5090 = vmatmul.msk.f32.gmra.mxu3 %vm144_vm1, %v4362_v62 }
 0xd6d   :  { %v4267_v55 = vpop.xlane.xlu2 %4266 }
 0xd6e   :  { %v4273_v44 = vmul.f32 %v4267_v55, %v5614_v39  ;;  %v5099_v39 = vld [vmem:[%s7756_s15 + $0x78] sm:$0xff] }
 0xd6f   :  { %4521 = vmatpush.msra.mxu0 %v5099_v39 }
 0xd70   :  { %v4279_v26 = vadd.f32 1e-05, %v4273_v44 }
 0xd71   :  { %4522 = vmatpush.msra.mxu0 %v5098_v31 }
 0xd72   :  { %5384 = vrsqrt.f32 %v4279_v26  ;;  %vm4336_vm13 = vweird.f32 %v4279_v26 }
 0xd78   :  { %v5385_v30 = vpop.eup %5384 }
 0xd79   :  { %v4331_v0 = vmul.f32 %v5385_v30, %v4279_v26  ;;  %vm4337_vm12 = vweird.f32 %v5385_v30 }
 0xd7a   :  { %vm4338_vm14 = vmor %vm4336_vm13, %vm4337_vm12 }
 0xd7b   :  { %v4332_v13 = vmul.f32 %v5385_v30, %v4331_v0 }
 0xd7d   :  { %v4333_v11 = vmul.f32 0.5, %v4332_v13 }
 0xd7f   :  { %v4334_v35 = vsub.f32 1.5, %v4333_v11 }
 0xd81   :  { %v4335_v52 = vmul.f32 %v5385_v30, %v4334_v35 }
 0xd83   :  { %v4339_v61 = vsel %vm4338_vm14, %v5385_v30, %v4335_v52 }
 0xd84   :  { %v4345_v46 = vmul.f32 %v4339_v61, %v7584_v18  ;;  %v5097_v18 = vld [vmem:[%s7756_s15 + $0x68] sm:$0xff] }
 0xd85   :  { %4523 = vmatpush.msra.mxu0 %v5097_v18 }
 0xd86   :  { %v4354_v53 = vmul.f32 %v7605_v58, %v4345_v46  ;;  %v5096_v58 = vld [vmem:[%s7756_s15 + $0x60] sm:$0xff] }
 0xd87   :  { %4524 = vmatpush.msra.mxu0 %v5096_v58 }
 0xd88   :  { %v4363_v10 = vadd.f32 %v7610_v6, %v4354_v53  ;;  %v5095_v6 = vld [vmem:[%s7756_s15 + $0x58] sm:$0xff] }
 0xd89   :  { %4525 = vmatpush.msra.mxu0 %v5095_v6 }
 0xd8a   :  { %5091 = vmatmul.msk.f32.gmra.mxu3 %vm144_vm1, %v4363_v10 }
 0xd8b   :  { %4526 = vmatpush.msra.mxu0 %v5094_v38 }
 0xd8d   :  { %4527 = vmatpush.msra.mxu0 %v5093_v63 }
 0xd8f   :  { %4528 = vmatpush.msra.mxu0 %v5092_v12 }
 0xda7   :  { %v4409_v25 = vpop.f32.mrf.mxu3 }
 0xda8   :  { %v4410_v16 = vadd.f32 %v7667_v56, %v4409_v25 }
 0xdaa   :  { %v4433_v20 = vmul.f32 0.044715, %v4410_v16  ;;  %v4427_v45 = vmul.f32 0.5, %v4410_v16 }
 0xdac   :  { %v4439_v47 = vmul.f32 %v4433_v20, %v4410_v16 }
 0xdae   :  { %v4445_v29 = vmul.f32 %v4439_v47, %v4410_v16 }
 0xdb0   :  { %v4451_v59 = vadd.f32 %v4445_v29, %v4410_v16 }
 0xdb2   :  { %v4457_v34 = vmul.f32 0.7978846, %v4451_v59 }
 0xdb4   :  { %5386 = vtanh.f32 %v4457_v34 }
 0xdba   :  { %v5387_v9 = vpop.eup %5386 }
 0xdbb   :  { %v4469_v5 = vadd.f32 1.0, %v5387_v9 }
 0xdbd   :  { %v4475_v3 = vmul.f32 %v4469_v5, %v4427_v45 }
 0xdbe   :  { %v4412_v22 = vpop.f32.mrf.mxu3 }
 0xdbf   :  { %v4413_v49 = vadd.f32 %v7667_v56, %v4412_v22  ;;  %5101 = vmatmul.msk.f32.vlgmr.msra.gmra.mxu0 %vm2287_vm2, %v4475_v3 }
 0xdc1   :  { %v4434_v40 = vmul.f32 0.044715, %v4413_v49  ;;  %v4428_v19 = vmul.f32 0.5, %v4413_v49 }
 0xdc3   :  { %v4440_v2 = vmul.f32 %v4434_v40, %v4413_v49  ;;  %v4580_v40 = vld [vmem:[%s7758_s17 + $0x10] sm:$0xff] }
 0xdc5   :  { %v4446_v51 = vmul.f32 %v4440_v2, %v4413_v49  ;;  %v4579_v2 = vld [vmem:[%s7758_s17 + $0x8] sm:$0xff] }
 0xdc7   :  { %v4452_v24 = vadd.f32 %v4446_v51, %v4413_v49 }
 0xdc8   :  { %v4415_v27 = vpop.f32.mrf.mxu3 }
 0xdc9   :  { %v4416_v32 = vadd.f32 %v7667_v56, %v4415_v27  ;;  %v4458_v36 = vmul.f32 0.7978846, %v4452_v24  ;;  %v5129_v24 = vld [vmem:[%s7757_s16 + $0x1] ss:$0 sm:$0xff]  ;;  %s4661_s16 = sshll.u32 %s7762_s21, 4  ;;  %s4662_s16 = int_to_ptr.hbm [resolvable:$true] %s4661_s16 }
 0xdcb   :  { %v4435_v17 = vmul.f32 0.044715, %v4416_v32  ;;  %5388 = vtanh.f32 %v4458_v36  ;;  %v4429_v26 = vmul.f32 0.5, %v4416_v32 }
 0xdcd   :  { %v4441_v60 = vmul.f32 %v4435_v17, %v4416_v32 }
 0xdcf   :  { %v4447_v23 = vmul.f32 %v4441_v60, %v4416_v32 }
 0xdd1   :  { %v5389_v15 = vpop.eup %5388  ;;  %v4453_v50 = vadd.f32 %v4447_v23, %v4416_v32 }
 0xdd2   :  { %v4418_v1 = vpop.f32.mrf.mxu3  ;;  %v4470_v4 = vadd.f32 1.0, %v5389_v15 }
 0xdd3   :  { %v4419_v57 = vadd.f32 %v7667_v56, %v4418_v1  ;;  %v4459_v48 = vmul.f32 0.7978846, %v4453_v50 }
 0xdd4   :  { %v4476_v43 = vmul.f32 %v4470_v4, %v4428_v19 }
 0xdd5   :  { %v4436_v8 = vmul.f32 0.044715, %v4419_v57  ;;  %5390 = vtanh.f32 %v4459_v48  ;;  %v4430_v10 = vmul.f32 0.5, %v4419_v57 }
 0xdd6   :  { %5102 = vmatmul.msk.f32.gmra.mxu0 %vm2287_vm2, %v4476_v43  ;;  %v4622_v43 = vld [vmem:[%s7760_s19 + $0x20] sm:$0xff] }
 0xdd7   :  { %v4442_v54 = vmul.f32 %v4436_v8, %v4419_v57  ;;  %v4621_v8 = vld [vmem:[%s7760_s19 + $0x18] sm:$0xff] }
 0xdd9   :  { %v4448_v21 = vmul.f32 %v4442_v54, %v4419_v57  ;;  %v4620_v54 = vld [vmem:[%s7760_s19 + $0x10] sm:$0xff] }
 0xdda   :  { %v4421_v42 = vpop.f32.mrf.mxu3 }
 0xddb   :  { %v5391_v62 = vpop.eup %5390  ;;  %v4422_v55 = vadd.f32 %v7667_v56, %v4421_v42  ;;  %v4454_v44 = vadd.f32 %v4448_v21, %v4419_v57  ;;  %v4619_v21 = vld [vmem:[%s7760_s19 + $0x8] sm:$0xff]  ;;  %v4618_v42 = vld [vmem:[%s7760_s19] sm:$0xff] }
 0xddc   :  { %v4471_v30 = vadd.f32 1.0, %v5391_v62  ;;  %v5130_v62 = vld [vmem:[%s7759_s18] ss:$0 sm:$0xff]  ;;  %s4659_s18 = sshll.u32 %s5428_s13, 4  ;;  %s4660_s18 = int_to_ptr.vmem [resolvable:$true] %s4659_s18 }
 0xddd   :  { %v4437_v0 = vmul.f32 0.044715, %v4422_v55  ;;  %v4460_v13 = vmul.f32 0.7978846, %v4454_v44  ;;  %v4431_v58 = vmul.f32 0.5, %v4422_v55 }
 0xdde   :  { %v4477_v11 = vmul.f32 %v4471_v30, %v4429_v26 }
 0xddf   :  { %v4443_v35 = vmul.f32 %v4437_v0, %v4422_v55  ;;  %5392 = vtanh.f32 %v4460_v13 }
 0xde0   :  { %5103 = vmatmul.msk.f32.gmra.mxu0 %vm2287_vm2, %v4477_v11 }
 0xde1   :  { %v4449_v52 = vmul.f32 %v4443_v35, %v4422_v55 }
 0xde3   :  { %v4455_v61 = vadd.f32 %v4449_v52, %v4422_v55 }
 0xde5   :  { %v5393_v46 = vpop.eup %5392  ;;  %v4461_v53 = vmul.f32 0.7978846, %v4455_v61 }
 0xde6   :  { %v4472_v39 = vadd.f32 1.0, %v5393_v46 }
 0xde7   :  { %5394 = vtanh.f32 %v4461_v53  ;;  %v5131_v53 = vld [vmem:[%s7761_s20] ss:$0 sm:$0xff] }
 0xde8   :  { %v4478_v31 = vmul.f32 %v4472_v39, %v4430_v10 }
 0xdea   :  { %5104 = vmatmul.msk.f32.gmra.mxu0 %vm2287_vm2, %v4478_v31 }
 0xded   :  { %v5395_v18 = vpop.eup %5394 }
 0xdee   :  { %v4473_v6 = vadd.f32 1.0, %v5395_v18 }
 0xdf0   :  { %v4479_v38 = vmul.f32 %v4473_v6, %v4431_v58 }
 0xdf2   :  { %5105 = vmatmul.msk.f32.gmra.mxu0 %vm2287_vm2, %v4479_v38 }
 0xe0d   :  { %v4424_v63 = vpop.f32.mrf.mxu3 }
 0xe0e   :  { %v4425_v12 = vadd.f32 %v7667_v56, %v4424_v63  ;;  %v4581_v56 = vld [vmem:[%s7758_s17 + $0x18] sm:$0xff] }
 0xe0f   :  { %4601 = vmatpush.msrb.mxu2 %v4581_v56 }
 0xe10   :  { %v4438_v25 = vmul.f32 0.044715, %v4425_v12  ;;  %v4432_v34 = vmul.f32 0.5, %v4425_v12 }
 0xe11   :  { %4602 = vmatpush.msrb.mxu2 %v4580_v40 }
 0xe12   :  { %v4444_v16 = vmul.f32 %v4438_v25, %v4425_v12 }
 0xe13   :  { %4603 = vmatpush.msrb.mxu2 %v4579_v2 }
 0xe14   :  { %v4450_v20 = vmul.f32 %v4444_v16, %v4425_v12 }
 0xe16   :  { %v4456_v47 = vadd.f32 %v4450_v20, %v4425_v12 }
 0xe18   :  { %v4462_v29 = vmul.f32 0.7978846, %v4456_v47 }
 0xe1a   :  { %5396 = vtanh.f32 %v4462_v29 }
 0xe20   :  { %v5397_v59 = vpop.eup %5396 }
 0xe21   :  { %v4474_v9 = vadd.f32 1.0, %v5397_v59 }
 0xe23   :  { %v4480_v45 = vmul.f32 %v4474_v9, %v4432_v34 }
 0xe25   :  { %5106 = vmatmul.msk.f32.gmra.mxu0 %vm2287_vm2, %v4480_v45 }
 0xe3c   :  { %v4530_v5 = vpop.f32.mrf.mxu0 }
 0xe3d   :  { %v4531_v19 = vadd.f32 %v5129_v24, %v4530_v5 }
 0xe3f   :  { %v4548_v48 = vadd.f32 %v4531_v19, %v7497_v28  ;;  %v4625_v28 = vld [vmem:[%s7760_s19 + $0x38] sm:$0xff] }
 0xe53   :  { %v4533_v3 = vpop.f32.mrf.mxu0 }
 0xe54   :  { %v4534_v50 = vadd.f32 %v5129_v24, %v4533_v3 }
 0xe56   :  { %v4549_v57 = vadd.f32 %v4534_v50, %v7508_v37  ;;  %v4624_v37 = vld [vmem:[%s7760_s19 + $0x30] sm:$0xff] }
 0xe5d   :  { %v4536_v22 = vpop.f32.mrf.mxu0 }
 0xe5e   :  { %v4537_v23 = vadd.f32 %v5129_v24, %v4536_v22 }
 0xe60   :  { %v4550_v4 = vadd.f32 %v4537_v23, %v7518_v33 }
 0xe67   :  { %v4539_v49 = vpop.f32.mrf.mxu0 }
 0xe68   :  { %v4540_v17 = vadd.f32 %v5129_v24, %v4539_v49 }
 0xe6a   :  { %v4551_v1 = vadd.f32 %v4540_v17, %v7529_v7  ;;  %v4578_v7 = vld [vmem:[%s7758_s17] sm:$0xff] }
 0xe6b   :  { %4604 = vmatpush.msrb.mxu2 %v4578_v7 }
 0xe6f   :  { %v4542_v51 = vpop.f32.mrf.mxu0 }
 0xe70   :  { %v4543_v32 = vadd.f32 %v5129_v24, %v4542_v51 }
 0xe72   :  { %v4552_v15 = vadd.f32 %v4543_v32, %v7537_v14  ;;  %v4623_v14 = vld [vmem:[%s7760_s19 + $0x28] sm:$0xff] }
 0xea2   :  { %v4545_v27 = vpop.f32.mrf.mxu0 }
 0xea3   :  { %v4546_v36 = vadd.f32 %v5129_v24, %v4545_v27 }
 0xea5   :  { %v4553_v60 = vadd.f32 %v4546_v36, %v7547_v41  ;;  %v4554_v41 = vld [vmem:[%s7779_s26] sm:$0x3] }
 0xea7   :  { %4568 = vmatpush.msrb.mxu1 %v4553_v60 }
 0xea9   :  { %4569 = vmatpush.msrb.mxu1 %v4552_v15 }
 0xeab   :  { %4570 = vmatpush.msrb.mxu1 %v4551_v1 }
 0xead   :  { %4571 = vmatpush.msrb.mxu1 %v4550_v4 }
 0xeaf   :  { %4572 = vmatpush.msrb.mxu1 %v4549_v57 }
 0xeb1   :  { %4573 = vmatpush.msrb.mxu1 %v4548_v48 }
 0xeb2   :  { %5107 = vmatmul.msk.f32.vlgmr.msrb.gmra.mxu1 %vm84_vm0, %v4554_v41 }
 0xeb3   :  { %4641 = vmatpush.msra.mxu1 %v4625_v28 }
 0xeb5   :  { %4642 = vmatpush.msra.mxu1 %v4624_v37 }
 0xeb7   :  { %4643 = vmatpush.msra.mxu1 %v4623_v14 }
 0xeb9   :  { %4644 = vmatpush.msra.mxu1 %v4622_v43 }
 0xebb   :  { %4645 = vmatpush.msra.mxu1 %v4621_v8 }
 0xebd   :  { %4646 = vmatpush.msra.mxu1 %v4620_v54 }
 0xebf   :  { %4647 = vmatpush.msra.mxu1 %v4619_v21 }
 0xec1   :  { %4648 = vmatpush.msra.mxu1 %v4618_v42 }
 0xf2f   :  { %v4575_v33 = vpop.f32.mrf.mxu1 }
 0xf30   :  { %5108 = vmatmul.msk.f32.vlgmr.msrb.gmra.mxu2 %vm144_vm1, %v4575_v33 }
 0xfb3   :  { %v4606_v55 = vpop.f32.mrf.mxu2 }
 0xfb4   :  { %v4607_v44 = vadd.f32 %v5130_v62, %v4606_v55 }
 0xfb6   :  { %v4610_v26 = vmul.f32 0.044715, %v4607_v44  ;;  %v4609_v52 = vmul.f32 0.5, %v4607_v44 }
 0xfb8   :  { %v4611_v30 = vmul.f32 %v4610_v26, %v4607_v44 }
 0xfba   :  { %v4612_v0 = vmul.f32 %v4611_v30, %v4607_v44 }
 0xfbc   :  { %v4613_v13 = vadd.f32 %v4612_v0, %v4607_v44 }
 0xfbe   :  { %v4614_v11 = vmul.f32 0.7978846, %v4613_v13 }
 0xfc0   :  { %5398 = vtanh.f32 %v4614_v11 }
 0xfc6   :  { %v5399_v35 = vpop.eup %5398 }
 0xfc7   :  { %v4616_v61 = vadd.f32 1.0, %v5399_v35 }
 0xfc9   :  { %v4617_v46 = vmul.f32 %v4616_v61, %v4609_v52 }
 0xfcb   :  { %5109 = vmatmul.msk.f32.vlgmr.msra.gmra.mxu1 %vm2287_vm2, %v4617_v46 }
0x1048   :  { %v4650_v10 = vpop.f32.mrf.mxu1 }
0x1049   :  { %v4651_v39 = vadd.f32 %v5131_v53, %v4650_v10 }
0x104b   :  { %4653 = vst [vmem:[#allocation2] sm:$0x3] %v4651_v39 }
0x104c   :  { %4664 = dma.vmem_to_hbm [thread:$0]  %s4660_s18, 32, %s4662_s16, [#allocation3]  }
0x104d   :  { %5424 = dma.done.wait [#allocation3], 32  }
0x104e   :  { %5425 = vsyncadd [#allocation3], 4294967264 }
0x104f   :  { %4669 = vsyncpa [#allocation3], 1 }

</bundles_post_ra>
